<compile_context>
chip_gen: v7x
topology: tpu7x:2x2x1
jax: 0.10.0
libtpu: 0.0.40
codegen_flags: <defaults>
</compile_context>

<pallas_src>
import jax
import jax.numpy as jnp
from jax.experimental import pallas as pl
from jax.experimental.pallas import tpu as pltpu

LANE = 128
BN_EPS = 1e-5


# ------------------------------ small helpers ------------------------------

def _round_up(v, m):
    return (v + m - 1) // m * m


def _vmem_limit_bytes():
    # Explicit scoped-VMEM budget: half the physical capacity of the chip
    # (64 MiB on v5e/v6e, 32 MiB on v7x), never below 32 MiB.
    try:
        cap = pltpu.get_tpu_info().vmem_capacity_bytes
    except Exception:
        cap = 128 * 1024 * 1024
    return int(min(96 * 1024 * 1024, max(32 * 1024 * 1024, cap // 2)))


def _choose_row_tile(ho, wo):
    """Output-row tile: each grid step computes (tro*wo, Coutp).  Aim for
    >= 512 flattened rows per step (HBM-roofline regime) while keeping
    several grid steps for pipelining / multiple TensorCores."""
    if ho * wo <= 2048:
        return ho
    for t in range(1, ho + 1):
        if ho % t == 0 and (t * wo) % 16 == 0 and t * wo >= 512:
            return t
    return ho


def _fold_bn_into_weight(w_oihw, gamma, beta, mean, var, cinp, coutp):
    """Fold inference-mode BN into the conv weight.

    Returns w:(KH*KW, cinp, coutp) bf16 (BN scale folded in, zero padded)
    and shift:(1, coutp) f32.
    """
    o, i, kh, kw = w_oihw.shape
    scale = gamma / jnp.sqrt(var + BN_EPS)            # (O,)
    shift = beta - mean * scale                       # (O,)
    w = jnp.transpose(w_oihw, (2, 3, 1, 0)).reshape(kh * kw, i, o)
    w = w * scale[None, None, :]
    w = jnp.pad(w, ((0, 0), (0, cinp - i), (0, coutp - o)))
    shift = jnp.pad(shift, (0, coutp - o)).reshape(1, coutp)
    return w.astype(jnp.bfloat16), shift.astype(jnp.float32)


def _space_to_depth(xp, stride):
    """(N,Hp,Wp,C) -> (N,ceil(Hp/s),ceil(Wp/s),s*s*C); phase (ph,pw) lives at
    channel offset (ph*s+pw)*C.  Identity for stride == 1.  This is the ~1x
    byte rearrangement that replaces the 9x im2col blow-up."""
    if stride == 1:
        return xp
    n, hp, wp, c = xp.shape
    s = stride
    hp2, wp2 = _round_up(hp, s), _round_up(wp, s)
    xp = jnp.pad(xp, ((0, 0), (0, hp2 - hp), (0, wp2 - wp), (0, 0)))
    x = xp.reshape(n, hp2 // s, s, wp2 // s, s, c)
    x = jnp.transpose(x, (0, 1, 3, 2, 4, 5))
    return x.reshape(n, hp2 // s, wp2 // s, s * s * c)


# ------------------------------ Pallas kernels ------------------------------

def _make_conv_kernel(*, ksize, stride, tro, wo, cinp, relu, shortcut):
    """Fused conv(ksize,stride) + folded-BN shift (+act) (+fused shortcut).

    The k*k taps are accumulated in-kernel (unrolled) with bf16 MXU matmuls
    into an f32 accumulator; each tap reads a contiguous window of the
    space-to-depth input block (static column / channel offsets, the only
    dynamic index is the output-row-tile start)."""
    rows = tro * wo

    def conv_taps(x_ref, w_ref):
        t = pl.program_id(1)
        acc = jnp.zeros((rows, w_ref.shape[-1]), jnp.float32)
        for kh in range(ksize):
            for kw in range(ksize):
                ph, qh = kh % stride, kh // stride
                pw, qw = kw % stride, kw // stride
                coff = (ph * stride + pw) * cinp          # static, 128-aligned
                xa = x_ref[0,
                           pl.ds(t * tro + qh, tro),
                           pl.ds(qw, wo),
                           pl.ds(coff, cinp)]
                acc = acc + jnp.dot(xa.reshape(rows, cinp),
                                    w_ref[kh * ksize + kw],
                                    preferred_element_type=jnp.float32)
        return acc

    if shortcut == "proj":
        # out = conv + shift + relu(xs @ ws + shs)   (1x1-conv shortcut fused)
        def kernel(x_ref, w_ref, shift_ref, xs_ref, ws_ref, shs_ref, o_ref):
            y = conv_taps(x_ref, w_ref) + shift_ref[...]
            sc = jnp.dot(xs_ref[0], ws_ref[...],
                         preferred_element_type=jnp.float32) + shs_ref[...]
            sc = jnp.maximum(sc, 0.0)
            o_ref[0] = (y + sc).astype(o_ref.dtype)
    elif shortcut == "identity":
        # out = conv + shift + relu(x)               (identity shortcut fused)
        def kernel(x_ref, w_ref, shift_ref, xs_ref, o_ref):
            y = conv_taps(x_ref, w_ref) + shift_ref[...]
            sc = jnp.maximum(xs_ref[0].astype(jnp.float32), 0.0)
            o_ref[0] = (y + sc).astype(o_ref.dtype)
    else:
        def kernel(x_ref, w_ref, shift_ref, o_ref):
            y = conv_taps(x_ref, w_ref) + shift_ref[...]
            if relu:
                y = jnp.maximum(y, 0.0)
            o_ref[0] = y.astype(o_ref.dtype)
    return kernel


def _conv_bn_pallas(x_bf, w_folded, shift, *, ksize, stride, relu,
                    out_dtype=jnp.float32, shortcut=None, xs=None, ws=None,
                    shs=None):
    """x_bf:(N,H,W,Cinp) bf16 (channels lane-padded), w_folded:(k*k,Cinp,Coutp)
    bf16 with BN scale folded in, shift:(1,Coutp) f32.
    shortcut: None | "proj" (xs bf16 (N,Ho,Wo,Csp), ws (Csp,Coutp) bf16,
    shs (1,Coutp) f32) | "identity" (xs f32 (N,Ho,Wo,Coutp)).
    Returns (N,Ho,Wo,Coutp) in out_dtype."""
    n, h, w, cinp = x_bf.shape
    pad = ksize // 2
    ho = (h + 2 * pad - ksize) // stride + 1
    wo = (w + 2 * pad - ksize) // stride + 1
    coutp = w_folded.shape[-1]

    xp = jnp.pad(x_bf, ((0, 0), (pad, pad), (pad, pad), (0, 0)))
    xsd = _space_to_depth(xp, stride)
    _, hs, ws_dim, cs = xsd.shape

    tro = _choose_row_tile(ho, wo)
    n_tiles = ho // tro
    rows = tro * wo

    kernel = _make_conv_kernel(ksize=ksize, stride=stride, tro=tro, wo=wo,
                               cinp=cinp, relu=relu, shortcut=shortcut)

    in_specs = [
        # Full (padded, space-to-depth) image: index_map ignores the row-tile
        # axis -> fetched once per image, resident across row tiles.
        pl.BlockSpec((1, hs, ws_dim, cs), lambda i, t: (i, 0, 0, 0)),
        pl.BlockSpec(w_folded.shape, lambda i, t: (0, 0, 0)),
        pl.BlockSpec(shift.shape, lambda i, t: (0, 0)),
    ]
    operands = [xsd, w_folded, shift]

    if shortcut == "proj":
        xs3 = xs.reshape(n, ho * wo, xs.shape[-1])
        in_specs += [
            pl.BlockSpec((1, rows, xs3.shape[-1]), lambda i, t: (i, t, 0)),
            pl.BlockSpec(ws.shape, lambda i, t: (0, 0)),
            pl.BlockSpec(shs.shape, lambda i, t: (0, 0)),
        ]
        operands += [xs3, ws, shs]
    elif shortcut == "identity":
        xs3 = xs.reshape(n, ho * wo, xs.shape[-1])
        in_specs += [pl.BlockSpec((1, rows, xs3.shape[-1]),
                                  lambda i, t: (i, t, 0))]
        operands += [xs3]

    out = pl.pallas_call(
        kernel,
        grid=(n, n_tiles),
        in_specs=in_specs,
        out_specs=pl.BlockSpec((1, rows, coutp), lambda i, t: (i, t, 0)),
        out_shape=jax.ShapeDtypeStruct((n, ho * wo, coutp), out_dtype),
        compiler_params=pltpu.CompilerParams(
            # Each (image, row-tile) grid point writes a disjoint output block
            # with no carried scratch state -> both axes are parallel
            # (lets megacore shard over row tiles even at batch=1).
            dimension_semantics=("parallel", "parallel"),
            vmem_limit_bytes=_vmem_limit_bytes()),
    )(*operands)
    return out.reshape(n, ho, wo, coutp)


# ------------------------------- BasicBlock --------------------------------

def basic_block_forward_nhwc(x_nhwc, params, stride):
    """BasicBlock forward, NHWC in / NHWC out (keep NHWC end-to-end inside a
    network; only convert layout at model boundaries)."""
    x = x_nhwc.astype(jnp.float32)
    n, h, w, cin = x.shape
    planes = params["w1"].shape[0]
    cinp = _round_up(cin, LANE)
    coutp = _round_up(planes, LANE)

    identity_shortcut = (stride == 1 and cin == planes)

    # Channel-pad once; only materialise the f32 padded copy when the
    # identity shortcut actually needs it (the residual add stays f32 for
    # full-precision fidelity with the reference).
    if identity_shortcut:
        x_f32p = jnp.pad(x, ((0, 0), (0, 0), (0, 0), (0, cinp - cin)))
        x_bf = x_f32p.astype(jnp.bfloat16)
    else:
        x_f32p = None
        x_bf = jnp.pad(x.astype(jnp.bfloat16),
                       ((0, 0), (0, 0), (0, 0), (0, cinp - cin)))

    # conv1 (3x3, stride) + BN1 + ReLU  -> bf16 activations feed conv2 directly
    w1, sh1 = _fold_bn_into_weight(params["w1"], params["g1"], params["b1"],
                                   params["m1"], params["v1"], cinp, coutp)
    h1 = _conv_bn_pallas(x_bf, w1, sh1, ksize=3, stride=stride, relu=True,
                         out_dtype=jnp.bfloat16)

    # conv2 (3x3, stride 1) + BN2 + fused shortcut residual (single kernel)
    w2, sh2 = _fold_bn_into_weight(params["w2"], params["g2"], params["b2"],
                                   params["m2"], params["v2"], coutp, coutp)
    if not identity_shortcut:
        wsf, shs = _fold_bn_into_weight(params["ws"], params["gs"],
                                        params["bs"], params["ms"],
                                        params["vs"], cinp, coutp)
        xs = x_bf[:, ::stride, ::stride, :]          # strided 1x1-conv input
        out = _conv_bn_pallas(h1, w2, sh2, ksize=3, stride=1, relu=False,
                              shortcut="proj", xs=xs, ws=wsf[0], shs=shs)
    else:
        # identity shortcut: act(x) added in-kernel, kept in f32 on the VPU
        out = _conv_bn_pallas(h1, w2, sh2, ksize=3, stride=1, relu=False,
                              shortcut="identity", xs=x_f32p)

    return out[..., :planes]


def basic_block_forward(x_nchw, params, stride):
    """NCHW wrapper (PyTorch layout) around the NHWC implementation."""
    x = jnp.transpose(x_nchw, (0, 2, 3, 1))
    out = basic_block_forward_nhwc(x, params, stride)
    return jnp.transpose(out, (0, 3, 1, 2))


# ---------------------------- pure-JAX reference ----------------------------

def _ref_forward(x_nchw, params, stride):
    def conv(x, w, s, pad):
        return jax.lax.conv_general_dilated(
            x, w, (s, s), ((pad, pad), (pad, pad)),
            dimension_numbers=("NCHW", "OIHW", "NCHW"))

    def bn(x, g, b, m, v):
        sc = g / jnp.sqrt(v + BN_EPS)
        return x * sc[None, :, None, None] + (b - m * sc)[None, :, None, None]

    h = conv(x_nchw, params["w1"], stride, 1)
    h = jnp.maximum(bn(h, params["g1"], params["b1"], params["m1"], params["v1"]), 0.0)
    h = conv(h, params["w2"], 1, 1)
    h = bn(h, params["g2"], params["b2"], params["m2"], params["v2"])
    cin = x_nchw.shape[1]
    planes = params["w1"].shape[0]
    if stride != 1 or cin != planes:
        s = conv(x_nchw, params["ws"], stride, 0)
        s = jnp.maximum(bn(s, params["gs"], params["bs"], params["ms"], params["vs"]), 0.0)
    else:
        s = jnp.maximum(x_nchw, 0.0)
    return h + s


# ----------------------------------- main -----------------------------------

def _make_params(key, in_planes, planes, with_proj):
    ks = jax.random.split(key, 15)

    def bn_params(k0, k1, k2, k3):
        return (1.0 + 0.1 * jax.random.normal(ks[k0], (planes,), jnp.float32),
                0.1 * jax.random.normal(ks[k1], (planes,), jnp.float32),
                0.1 * jax.random.normal(ks[k2], (planes,), jnp.float32),
                1.0 + 0.1 * jnp.abs(jax.random.normal(ks[k3], (planes,), jnp.float32)))

    p = {"w1": 0.1 * jax.random.normal(ks[0], (planes, in_planes, 3, 3), jnp.float32)}
    p["g1"], p["b1"], p["m1"], p["v1"] = bn_params(1, 2, 3, 4)
    p["w2"] = 0.1 * jax.random.normal(ks[5], (planes, planes, 3, 3), jnp.float32)
    p["g2"], p["b2"], p["m2"], p["v2"] = bn_params(6, 7, 8, 9)
    if with_proj:
        p["ws"] = 0.1 * jax.random.normal(ks[10], (planes, in_planes, 1, 1), jnp.float32)
        p["gs"], p["bs"], p["ms"], p["vs"] = bn_params(11, 12, 13, 14)
    return p


def _check(out, ref, name):
    assert out.shape == ref.shape, (name, out.shape, ref.shape)
    err_max = float(jnp.max(jnp.abs(out - ref)))
    err_mean = float(jnp.mean(jnp.abs(out - ref)))
    # bf16 MXU operands with f32 accumulation -> relaxed tolerance vs f32 ref.
    assert jnp.allclose(out, ref, atol=1.5e-1, rtol=1e-1), (name, err_max)
    assert err_mean < 3e-2, (name, err_mean)


if __name__ == "__main__":
    key = jax.random.PRNGKey(0)
    kx1, kp1, kx2, kp2 = jax.random.split(key, 4)

    fwd = jax.jit(basic_block_forward, static_argnums=2)

    # projection-shortcut path: stride 2, in_planes != planes
    batch, in_planes, planes, spatial, stride = 2, 4, 8, 16, 2
    x = jax.random.normal(kx1, (batch, in_planes, spatial, spatial), jnp.float32)
    params = _make_params(kp1, in_planes, planes, with_proj=True)
    out = jax.block_until_ready(fwd(x, params, stride))
    assert out.shape == (batch, planes, spatial // stride, spatial // stride), out.shape
    ref = jax.block_until_ready(_ref_forward(x, params, stride))
    _check(out, ref, "projection")

    # identity-shortcut path: stride 1, in_planes == planes
    x2 = jax.random.normal(kx2, (batch, planes, spatial, spatial), jnp.float32)
    params2 = _make_params(kp2, planes, planes, with_proj=False)
    out2 = jax.block_until_ready(fwd(x2, params2, 1))
    assert out2.shape == (batch, planes, spatial, spatial), out2.shape
    ref2 = jax.block_until_ready(_ref_forward(x2, params2, 1))
    _check(out2, ref2, "identity")

    print("KERNEL_OK")
</pallas_src>

<mosaic_0001>
module attributes {stable_mosaic.version = 11 : i64} {
  func.func @kernel(%arg0: i32, %arg1: i32, %arg2: memref<1x9x9x512xbf16, #tpu.memory_space<vmem>>, %arg3: memref<9x128x128xbf16, #tpu.memory_space<vmem>>, %arg4: memref<1x128xf32, #tpu.memory_space<vmem>>, %arg5: memref<1x64x128xbf16, #tpu.memory_space<vmem>>) attributes {dimension_semantics = [#tpu.dimension_semantics<parallel>, #tpu.dimension_semantics<parallel>], iteration_bounds = array<i64: 2, 1>, scalar_prefetch = 0 : i64, scratch_operands = 0 : i64, tpu.core_type = #tpu.core_type<tc>, window_params = [{transform_indices = @transform_0, window_bounds = array<i64: 1, 9, 9, 512>}, {pipeline_mode = #tpu.pipeline_mode<synchronous>, transform_indices = @transform_1, window_bounds = array<i64: 9, 128, 128>}, {pipeline_mode = #tpu.pipeline_mode<synchronous>, transform_indices = @transform_2, window_bounds = array<i64: 1, 128>}, {transform_indices = @transform_3, window_bounds = array<i64: 1, 64, 128>}]} {
    %cst = arith.constant 0.000000e+00 : f32
    %0 = vector.broadcast %cst : f32 to vector<64x128xf32>
    %c8_i32 = arith.constant 8 : i32
    %1 = arith.muli %arg1, %c8_i32 : i32
    %c0_i32 = arith.constant 0 : i32
    %2 = arith.addi %1, %c0_i32 : i32
    %c0 = arith.constant 0 : index
    %3 = arith.index_cast %2 : i32 to index
    %c0_0 = arith.constant 0 : index
    %c0_1 = arith.constant 0 : index
    %4 = vector.load %arg2[%c0, %3, %c0_0, %c0_1] : memref<1x9x9x512xbf16, #tpu.memory_space<vmem>>, vector<1x8x8x128xbf16>
    %5 = vector.shape_cast %4 : vector<1x8x8x128xbf16> to vector<8x8x128xbf16>
    %6 = vector.shape_cast %5 : vector<8x8x128xbf16> to vector<64x128xbf16>
    %c0_2 = arith.constant 0 : index
    %c0_3 = arith.constant 0 : index
    %c0_4 = arith.constant 0 : index
    %7 = vector.load %arg3[%c0_2, %c0_3, %c0_4] : memref<9x128x128xbf16, #tpu.memory_space<vmem>>, vector<1x128x128xbf16>
    %8 = vector.shape_cast %7 : vector<1x128x128xbf16> to vector<128x128xbf16>
    %cst_5 = arith.constant dense<0.000000e+00> : vector<64x128xf32>
    %9 = tpu.matmul %6, %8, %cst_5 {dimension_numbers = #tpu.dot_dimension_numbers<[1], [0], [0], [1], [0, 0, 1, 1], [], []>} : vector<64x128xbf16>, vector<128x128xbf16>, vector<64x128xf32> -> vector<64x128xf32>
    %10 = arith.addf %0, %9 : vector<64x128xf32>
    %c8_i32_6 = arith.constant 8 : i32
    %11 = arith.muli %arg1, %c8_i32_6 : i32
    %c0_i32_7 = arith.constant 0 : i32
    %12 = arith.addi %11, %c0_i32_7 : i32
    %c0_8 = arith.constant 0 : index
    %13 = arith.index_cast %12 : i32 to index
    %c0_9 = arith.constant 0 : index
    %c128 = arith.constant 128 : index
    %14 = vector.load %arg2[%c0_8, %13, %c0_9, %c128] : memref<1x9x9x512xbf16, #tpu.memory_space<vmem>>, vector<1x8x8x128xbf16>
    %15 = vector.shape_cast %14 : vector<1x8x8x128xbf16> to vector<8x8x128xbf16>
    %16 = vector.shape_cast %15 : vector<8x8x128xbf16> to vector<64x128xbf16>
    %c1 = arith.constant 1 : index
    %c0_10 = arith.constant 0 : index
    %c0_11 = arith.constant 0 : index
    %17 = vector.load %arg3[%c1, %c0_10, %c0_11] : memref<9x128x128xbf16, #tpu.memory_space<vmem>>, vector<1x128x128xbf16>
    %18 = vector.shape_cast %17 : vector<1x128x128xbf16> to vector<128x128xbf16>
    %cst_12 = arith.constant dense<0.000000e+00> : vector<64x128xf32>
    %19 = tpu.matmul %16, %18, %cst_12 {dimension_numbers = #tpu.dot_dimension_numbers<[1], [0], [0], [1], [0, 0, 1, 1], [], []>} : vector<64x128xbf16>, vector<128x128xbf16>, vector<64x128xf32> -> vector<64x128xf32>
    %20 = arith.addf %10, %19 : vector<64x128xf32>
    %c8_i32_13 = arith.constant 8 : i32
    %21 = arith.muli %arg1, %c8_i32_13 : i32
    %c0_i32_14 = arith.constant 0 : i32
    %22 = arith.addi %21, %c0_i32_14 : i32
    %c0_15 = arith.constant 0 : index
    %23 = arith.index_cast %22 : i32 to index
    %c1_16 = arith.constant 1 : index
    %c0_17 = arith.constant 0 : index
    %24 = vector.load %arg2[%c0_15, %23, %c1_16, %c0_17] : memref<1x9x9x512xbf16, #tpu.memory_space<vmem>>, vector<1x8x8x128xbf16>
    %25 = vector.shape_cast %24 : vector<1x8x8x128xbf16> to vector<8x8x128xbf16>
    %26 = vector.shape_cast %25 : vector<8x8x128xbf16> to vector<64x128xbf16>
    %c2 = arith.constant 2 : index
    %c0_18 = arith.constant 0 : index
    %c0_19 = arith.constant 0 : index
    %27 = vector.load %arg3[%c2, %c0_18, %c0_19] : memref<9x128x128xbf16, #tpu.memory_space<vmem>>, vector<1x128x128xbf16>
    %28 = vector.shape_cast %27 : vector<1x128x128xbf16> to vector<128x128xbf16>
    %cst_20 = arith.constant dense<0.000000e+00> : vector<64x128xf32>
    %29 = tpu.matmul %26, %28, %cst_20 {dimension_numbers = #tpu.dot_dimension_numbers<[1], [0], [0], [1], [0, 0, 1, 1], [], []>} : vector<64x128xbf16>, vector<128x128xbf16>, vector<64x128xf32> -> vector<64x128xf32>
    %30 = arith.addf %20, %29 : vector<64x128xf32>
    %c8_i32_21 = arith.constant 8 : i32
    %31 = arith.muli %arg1, %c8_i32_21 : i32
    %c0_i32_22 = arith.constant 0 : i32
    %32 = arith.addi %31, %c0_i32_22 : i32
    %c0_23 = arith.constant 0 : index
    %33 = arith.index_cast %32 : i32 to index
    %c0_24 = arith.constant 0 : index
    %c256 = arith.constant 256 : index
    %34 = vector.load %arg2[%c0_23, %33, %c0_24, %c256] : memref<1x9x9x512xbf16, #tpu.memory_space<vmem>>, vector<1x8x8x128xbf16>
    %35 = vector.shape_cast %34 : vector<1x8x8x128xbf16> to vector<8x8x128xbf16>
    %36 = vector.shape_cast %35 : vector<8x8x128xbf16> to vector<64x128xbf16>
    %c3 = arith.constant 3 : index
    %c0_25 = arith.constant 0 : index
    %c0_26 = arith.constant 0 : index
    %37 = vector.load %arg3[%c3, %c0_25, %c0_26] : memref<9x128x128xbf16, #tpu.memory_space<vmem>>, vector<1x128x128xbf16>
    %38 = vector.shape_cast %37 : vector<1x128x128xbf16> to vector<128x128xbf16>
    %cst_27 = arith.constant dense<0.000000e+00> : vector<64x128xf32>
    %39 = tpu.matmul %36, %38, %cst_27 {dimension_numbers = #tpu.dot_dimension_numbers<[1], [0], [0], [1], [0, 0, 1, 1], [], []>} : vector<64x128xbf16>, vector<128x128xbf16>, vector<64x128xf32> -> vector<64x128xf32>
    %40 = arith.addf %30, %39 : vector<64x128xf32>
    %c8_i32_28 = arith.constant 8 : i32
    %41 = arith.muli %arg1, %c8_i32_28 : i32
    %c0_i32_29 = arith.constant 0 : i32
    %42 = arith.addi %41, %c0_i32_29 : i32
    %c0_30 = arith.constant 0 : index
    %43 = arith.index_cast %42 : i32 to index
    %c0_31 = arith.constant 0 : index
    %c384 = arith.constant 384 : index
    %44 = vector.load %arg2[%c0_30, %43, %c0_31, %c384] : memref<1x9x9x512xbf16, #tpu.memory_space<vmem>>, vector<1x8x8x128xbf16>
    %45 = vector.shape_cast %44 : vector<1x8x8x128xbf16> to vector<8x8x128xbf16>
    %46 = vector.shape_cast %45 : vector<8x8x128xbf16> to vector<64x128xbf16>
    %c4 = arith.constant 4 : index
    %c0_32 = arith.constant 0 : index
    %c0_33 = arith.constant 0 : index
    %47 = vector.load %arg3[%c4, %c0_32, %c0_33] : memref<9x128x128xbf16, #tpu.memory_space<vmem>>, vector<1x128x128xbf16>
    %48 = vector.shape_cast %47 : vector<1x128x128xbf16> to vector<128x128xbf16>
    %cst_34 = arith.constant dense<0.000000e+00> : vector<64x128xf32>
    %49 = tpu.matmul %46, %48, %cst_34 {dimension_numbers = #tpu.dot_dimension_numbers<[1], [0], [0], [1], [0, 0, 1, 1], [], []>} : vector<64x128xbf16>, vector<128x128xbf16>, vector<64x128xf32> -> vector<64x128xf32>
    %50 = arith.addf %40, %49 : vector<64x128xf32>
    %c8_i32_35 = arith.constant 8 : i32
    %51 = arith.muli %arg1, %c8_i32_35 : i32
    %c0_i32_36 = arith.constant 0 : i32
    %52 = arith.addi %51, %c0_i32_36 : i32
    %c0_37 = arith.constant 0 : index
    %53 = arith.index_cast %52 : i32 to index
    %c1_38 = arith.constant 1 : index
    %c256_39 = arith.constant 256 : index
    %54 = vector.load %arg2[%c0_37, %53, %c1_38, %c256_39] : memref<1x9x9x512xbf16, #tpu.memory_space<vmem>>, vector<1x8x8x128xbf16>
    %55 = vector.shape_cast %54 : vector<1x8x8x128xbf16> to vector<8x8x128xbf16>
    %56 = vector.shape_cast %55 : vector<8x8x128xbf16> to vector<64x128xbf16>
    %c5 = arith.constant 5 : index
    %c0_40 = arith.constant 0 : index
    %c0_41 = arith.constant 0 : index
    %57 = vector.load %arg3[%c5, %c0_40, %c0_41] : memref<9x128x128xbf16, #tpu.memory_space<vmem>>, vector<1x128x128xbf16>
    %58 = vector.shape_cast %57 : vector<1x128x128xbf16> to vector<128x128xbf16>
    %cst_42 = arith.constant dense<0.000000e+00> : vector<64x128xf32>
    %59 = tpu.matmul %56, %58, %cst_42 {dimension_numbers = #tpu.dot_dimension_numbers<[1], [0], [0], [1], [0, 0, 1, 1], [], []>} : vector<64x128xbf16>, vector<128x128xbf16>, vector<64x128xf32> -> vector<64x128xf32>
    %60 = arith.addf %50, %59 : vector<64x128xf32>
    %c8_i32_43 = arith.constant 8 : i32
    %61 = arith.muli %arg1, %c8_i32_43 : i32
    %c1_i32 = arith.constant 1 : i32
    %62 = arith.addi %61, %c1_i32 : i32
    %c0_44 = arith.constant 0 : index
    %63 = arith.index_cast %62 : i32 to index
    %c0_45 = arith.constant 0 : index
    %c0_46 = arith.constant 0 : index
    %64 = vector.load %arg2[%c0_44, %63, %c0_45, %c0_46] : memref<1x9x9x512xbf16, #tpu.memory_space<vmem>>, vector<1x8x8x128xbf16>
    %65 = vector.shape_cast %64 : vector<1x8x8x128xbf16> to vector<8x8x128xbf16>
    %66 = vector.shape_cast %65 : vector<8x8x128xbf16> to vector<64x128xbf16>
    %c6 = arith.constant 6 : index
    %c0_47 = arith.constant 0 : index
    %c0_48 = arith.constant 0 : index
    %67 = vector.load %arg3[%c6, %c0_47, %c0_48] : memref<9x128x128xbf16, #tpu.memory_space<vmem>>, vector<1x128x128xbf16>
    %68 = vector.shape_cast %67 : vector<1x128x128xbf16> to vector<128x128xbf16>
    %cst_49 = arith.constant dense<0.000000e+00> : vector<64x128xf32>
    %69 = tpu.matmul %66, %68, %cst_49 {dimension_numbers = #tpu.dot_dimension_numbers<[1], [0], [0], [1], [0, 0, 1, 1], [], []>} : vector<64x128xbf16>, vector<128x128xbf16>, vector<64x128xf32> -> vector<64x128xf32>
    %70 = arith.addf %60, %69 : vector<64x128xf32>
    %c8_i32_50 = arith.constant 8 : i32
    %71 = arith.muli %arg1, %c8_i32_50 : i32
    %c1_i32_51 = arith.constant 1 : i32
    %72 = arith.addi %71, %c1_i32_51 : i32
    %c0_52 = arith.constant 0 : index
    %73 = arith.index_cast %72 : i32 to index
    %c0_53 = arith.constant 0 : index
    %c128_54 = arith.constant 128 : index
    %74 = vector.load %arg2[%c0_52, %73, %c0_53, %c128_54] : memref<1x9x9x512xbf16, #tpu.memory_space<vmem>>, vector<1x8x8x128xbf16>
    %75 = vector.shape_cast %74 : vector<1x8x8x128xbf16> to vector<8x8x128xbf16>
    %76 = vector.shape_cast %75 : vector<8x8x128xbf16> to vector<64x128xbf16>
    %c7 = arith.constant 7 : index
    %c0_55 = arith.constant 0 : index
    %c0_56 = arith.constant 0 : index
    %77 = vector.load %arg3[%c7, %c0_55, %c0_56] : memref<9x128x128xbf16, #tpu.memory_space<vmem>>, vector<1x128x128xbf16>
    %78 = vector.shape_cast %77 : vector<1x128x128xbf16> to vector<128x128xbf16>
    %cst_57 = arith.constant dense<0.000000e+00> : vector<64x128xf32>
    %79 = tpu.matmul %76, %78, %cst_57 {dimension_numbers = #tpu.dot_dimension_numbers<[1], [0], [0], [1], [0, 0, 1, 1], [], []>} : vector<64x128xbf16>, vector<128x128xbf16>, vector<64x128xf32> -> vector<64x128xf32>
    %80 = arith.addf %70, %79 : vector<64x128xf32>
    %c8_i32_58 = arith.constant 8 : i32
    %81 = arith.muli %arg1, %c8_i32_58 : i32
    %c1_i32_59 = arith.constant 1 : i32
    %82 = arith.addi %81, %c1_i32_59 : i32
    %c0_60 = arith.constant 0 : index
    %83 = arith.index_cast %82 : i32 to index
    %c1_61 = arith.constant 1 : index
    %c0_62 = arith.constant 0 : index
    %84 = vector.load %arg2[%c0_60, %83, %c1_61, %c0_62] : memref<1x9x9x512xbf16, #tpu.memory_space<vmem>>, vector<1x8x8x128xbf16>
    %85 = vector.shape_cast %84 : vector<1x8x8x128xbf16> to vector<8x8x128xbf16>
    %86 = vector.shape_cast %85 : vector<8x8x128xbf16> to vector<64x128xbf16>
    %c8 = arith.constant 8 : index
    %c0_63 = arith.constant 0 : index
    %c0_64 = arith.constant 0 : index
    %87 = vector.load %arg3[%c8, %c0_63, %c0_64] : memref<9x128x128xbf16, #tpu.memory_space<vmem>>, vector<1x128x128xbf16>
    %88 = vector.shape_cast %87 : vector<1x128x128xbf16> to vector<128x128xbf16>
    %cst_65 = arith.constant dense<0.000000e+00> : vector<64x128xf32>
    %89 = tpu.matmul %86, %88, %cst_65 {dimension_numbers = #tpu.dot_dimension_numbers<[1], [0], [0], [1], [0, 0, 1, 1], [], []>} : vector<64x128xbf16>, vector<128x128xbf16>, vector<64x128xf32> -> vector<64x128xf32>
    %90 = arith.addf %80, %89 : vector<64x128xf32>
    %c0_66 = arith.constant 0 : index
    %c0_67 = arith.constant 0 : index
    %91 = vector.load %arg4[%c0_66, %c0_67] : memref<1x128xf32, #tpu.memory_space<vmem>>, vector<1x128xf32>
    %92 = vector.broadcast %91 : vector<1x128xf32> to vector<64x128xf32>
    %93 = arith.addf %90, %92 : vector<64x128xf32>
    %cst_68 = arith.constant 0.000000e+00 : f32
    %94 = vector.broadcast %cst_68 : f32 to vector<64x128xf32>
    %95 = arith.maximumf %93, %94 : vector<64x128xf32>
    %96 = arith.truncf %95 : vector<64x128xf32> to vector<64x128xbf16>
    %c0_69 = arith.constant 0 : index
    %c0_70 = arith.constant 0 : index
    %c0_71 = arith.constant 0 : index
    %97 = vector.load %arg5[%c0_69, %c0_70, %c0_71] : memref<1x64x128xbf16, #tpu.memory_space<vmem>>, vector<1x64x128xbf16>
    %98 = vector.shape_cast %97 : vector<1x64x128xbf16> to vector<64x128xbf16>
    %99 = vector.shape_cast %96 : vector<64x128xbf16> to vector<1x64x128xbf16>
    tpu.vector_store %arg5[%c0_69, %c0_70, %c0_71], %99 {strides = array<i32>} : memref<1x64x128xbf16, #tpu.memory_space<vmem>>, vector<1x64x128xbf16>,
    return
  }
  func.func @transform_0(%arg0: i32, %arg1: i32) -> (i32, i32, i32, i32) {
    %c0_i32 = arith.constant 0 : i32
    %c0_i32_0 = arith.constant 0 : i32
    %c0_i32_1 = arith.constant 0 : i32
    %c0_i32_2 = arith.constant 0 : i32
    return %arg0, %c0_i32, %c0_i32_0, %c0_i32_1 : i32, i32, i32, i32
  }
  func.func @transform_1(%arg0: i32, %arg1: i32) -> (i32, i32, i32) {
    %c0_i32 = arith.constant 0 : i32
    %c0_i32_0 = arith.constant 0 : i32
    %c0_i32_1 = arith.constant 0 : i32
    %c0_i32_2 = arith.constant 0 : i32
    return %c0_i32, %c0_i32_0, %c0_i32_1 : i32, i32, i32
  }
  func.func @transform_2(%arg0: i32, %arg1: i32) -> (i32, i32) {
    %c0_i32 = arith.constant 0 : i32
    %c0_i32_0 = arith.constant 0 : i32
    %c0_i32_1 = arith.constant 0 : i32
    return %c0_i32, %c0_i32_0 : i32, i32
  }
  func.func @transform_3(%arg0: i32, %arg1: i32) -> (i32, i32, i32) {
    %c0_i32 = arith.constant 0 : i32
    %c0_i32_0 = arith.constant 0 : i32
    return %arg0, %arg1, %c0_i32 : i32, i32, i32
  }
}

module attributes {stable_mosaic.version = 11 : i64} {
  func.func @kernel(%arg0: i32, %arg1: i32, %arg2: memref<1x10x10x128xbf16, #tpu.memory_space<vmem>>, %arg3: memref<9x128x128xbf16, #tpu.memory_space<vmem>>, %arg4: memref<1x128xf32, #tpu.memory_space<vmem>>, %arg5: memref<1x64x128xbf16, #tpu.memory_space<vmem>>, %arg6: memref<128x128xbf16, #tpu.memory_space<vmem>>, %arg7: memref<1x128xf32, #tpu.memory_space<vmem>>, %arg8: memref<1x64x128xf32, #tpu.memory_space<vmem>>) attributes {dimension_semantics = [#tpu.dimension_semantics<parallel>, #tpu.dimension_semantics<parallel>], iteration_bounds = array<i64: 2, 1>, scalar_prefetch = 0 : i64, scratch_operands = 0 : i64, tpu.core_type = #tpu.core_type<tc>, window_params = [{transform_indices = @transform_0, window_bounds = array<i64: 1, 10, 10, 128>}, {pipeline_mode = #tpu.pipeline_mode<synchronous>, transform_indices = @transform_1, window_bounds = array<i64: 9, 128, 128>}, {pipeline_mode = #tpu.pipeline_mode<synchronous>, transform_indices = @transform_2, window_bounds = array<i64: 1, 128>}, {transform_indices = @transform_3, window_bounds = array<i64: 1, 64, 128>}, {pipeline_mode = #tpu.pipeline_mode<synchronous>, transform_indices = @transform_4, window_bounds = array<i64: 128, 128>}, {pipeline_mode = #tpu.pipeline_mode<synchronous>, transform_indices = @transform_5, window_bounds = array<i64: 1, 128>}, {transform_indices = @transform_6, window_bounds = array<i64: 1, 64, 128>}]} {
    %cst = arith.constant 0.000000e+00 : f32
    %0 = vector.broadcast %cst : f32 to vector<64x128xf32>
    %c8_i32 = arith.constant 8 : i32
    %1 = arith.muli %arg1, %c8_i32 : i32
    %c0_i32 = arith.constant 0 : i32
    %2 = arith.addi %1, %c0_i32 : i32
    %c0 = arith.constant 0 : index
    %3 = arith.index_cast %2 : i32 to index
    %c0_0 = arith.constant 0 : index
    %c0_1 = arith.constant 0 : index
    %4 = vector.load %arg2[%c0, %3, %c0_0, %c0_1] : memref<1x10x10x128xbf16, #tpu.memory_space<vmem>>, vector<1x8x8x128xbf16>
    %5 = vector.shape_cast %4 : vector<1x8x8x128xbf16> to vector<8x8x128xbf16>
    %6 = vector.shape_cast %5 : vector<8x8x128xbf16> to vector<64x128xbf16>
    %c0_2 = arith.constant 0 : index
    %c0_3 = arith.constant 0 : index
    %c0_4 = arith.constant 0 : index
    %7 = vector.load %arg3[%c0_2, %c0_3, %c0_4] : memref<9x128x128xbf16, #tpu.memory_space<vmem>>, vector<1x128x128xbf16>
    %8 = vector.shape_cast %7 : vector<1x128x128xbf16> to vector<128x128xbf16>
    %cst_5 = arith.constant dense<0.000000e+00> : vector<64x128xf32>
    %9 = tpu.matmul %6, %8, %cst_5 {dimension_numbers = #tpu.dot_dimension_numbers<[1], [0], [0], [1], [0, 0, 1, 1], [], []>} : vector<64x128xbf16>, vector<128x128xbf16>, vector<64x128xf32> -> vector<64x128xf32>
    %10 = arith.addf %0, %9 : vector<64x128xf32>
    %c8_i32_6 = arith.constant 8 : i32
    %11 = arith.muli %arg1, %c8_i32_6 : i32
    %c0_i32_7 = arith.constant 0 : i32
    %12 = arith.addi %11, %c0_i32_7 : i32
    %c0_8 = arith.constant 0 : index
    %13 = arith.index_cast %12 : i32 to index
    %c1 = arith.constant 1 : index
    %c0_9 = arith.constant 0 : index
    %14 = vector.load %arg2[%c0_8, %13, %c1, %c0_9] : memref<1x10x10x128xbf16, #tpu.memory_space<vmem>>, vector<1x8x8x128xbf16>
    %15 = vector.shape_cast %14 : vector<1x8x8x128xbf16> to vector<8x8x128xbf16>
    %16 = vector.shape_cast %15 : vector<8x8x128xbf16> to vector<64x128xbf16>
    %c1_10 = arith.constant 1 : index
    %c0_11 = arith.constant 0 : index
    %c0_12 = arith.constant 0 : index
    %17 = vector.load %arg3[%c1_10, %c0_11, %c0_12] : memref<9x128x128xbf16, #tpu.memory_space<vmem>>, vector<1x128x128xbf16>
    %18 = vector.shape_cast %17 : vector<1x128x128xbf16> to vector<128x128xbf16>
    %cst_13 = arith.constant dense<0.000000e+00> : vector<64x128xf32>
    %19 = tpu.matmul %16, %18, %cst_13 {dimension_numbers = #tpu.dot_dimension_numbers<[1], [0], [0], [1], [0, 0, 1, 1], [], []>} : vector<64x128xbf16>, vector<128x128xbf16>, vector<64x128xf32> -> vector<64x128xf32>
    %20 = arith.addf %10, %19 : vector<64x128xf32>
    %c8_i32_14 = arith.constant 8 : i32
    %21 = arith.muli %arg1, %c8_i32_14 : i32
    %c0_i32_15 = arith.constant 0 : i32
    %22 = arith.addi %21, %c0_i32_15 : i32
    %c0_16 = arith.constant 0 : index
    %23 = arith.index_cast %22 : i32 to index
    %c2 = arith.constant 2 : index
    %c0_17 = arith.constant 0 : index
    %24 = vector.load %arg2[%c0_16, %23, %c2, %c0_17] : memref<1x10x10x128xbf16, #tpu.memory_space<vmem>>, vector<1x8x8x128xbf16>
    %25 = vector.shape_cast %24 : vector<1x8x8x128xbf16> to vector<8x8x128xbf16>
    %26 = vector.shape_cast %25 : vector<8x8x128xbf16> to vector<64x128xbf16>
    %c2_18 = arith.constant 2 : index
    %c0_19 = arith.constant 0 : index
    %c0_20 = arith.constant 0 : index
    %27 = vector.load %arg3[%c2_18, %c0_19, %c0_20] : memref<9x128x128xbf16, #tpu.memory_space<vmem>>, vector<1x128x128xbf16>
    %28 = vector.shape_cast %27 : vector<1x128x128xbf16> to vector<128x128xbf16>
    %cst_21 = arith.constant dense<0.000000e+00> : vector<64x128xf32>
    %29 = tpu.matmul %26, %28, %cst_21 {dimension_numbers = #tpu.dot_dimension_numbers<[1], [0], [0], [1], [0, 0, 1, 1], [], []>} : vector<64x128xbf16>, vector<128x128xbf16>, vector<64x128xf32> -> vector<64x128xf32>
    %30 = arith.addf %20, %29 : vector<64x128xf32>
    %c8_i32_22 = arith.constant 8 : i32
    %31 = arith.muli %arg1, %c8_i32_22 : i32
    %c1_i32 = arith.constant 1 : i32
    %32 = arith.addi %31, %c1_i32 : i32
    %c0_23 = arith.constant 0 : index
    %33 = arith.index_cast %32 : i32 to index
    %c0_24 = arith.constant 0 : index
    %c0_25 = arith.constant 0 : index
    %34 = vector.load %arg2[%c0_23, %33, %c0_24, %c0_25] : memref<1x10x10x128xbf16, #tpu.memory_space<vmem>>, vector<1x8x8x128xbf16>
    %35 = vector.shape_cast %34 : vector<1x8x8x128xbf16> to vector<8x8x128xbf16>
    %36 = vector.shape_cast %35 : vector<8x8x128xbf16> to vector<64x128xbf16>
    %c3 = arith.constant 3 : index
    %c0_26 = arith.constant 0 : index
    %c0_27 = arith.constant 0 : index
    %37 = vector.load %arg3[%c3, %c0_26, %c0_27] : memref<9x128x128xbf16, #tpu.memory_space<vmem>>, vector<1x128x128xbf16>
    %38 = vector.shape_cast %37 : vector<1x128x128xbf16> to vector<128x128xbf16>
    %cst_28 = arith.constant dense<0.000000e+00> : vector<64x128xf32>
    %39 = tpu.matmul %36, %38, %cst_28 {dimension_numbers = #tpu.dot_dimension_numbers<[1], [0], [0], [1], [0, 0, 1, 1], [], []>} : vector<64x128xbf16>, vector<128x128xbf16>, vector<64x128xf32> -> vector<64x128xf32>
    %40 = arith.addf %30, %39 : vector<64x128xf32>
    %c8_i32_29 = arith.constant 8 : i32
    %41 = arith.muli %arg1, %c8_i32_29 : i32
    %c1_i32_30 = arith.constant 1 : i32
    %42 = arith.addi %41, %c1_i32_30 : i32
    %c0_31 = arith.constant 0 : index
    %43 = arith.index_cast %42 : i32 to index
    %c1_32 = arith.constant 1 : index
    %c0_33 = arith.constant 0 : index
    %44 = vector.load %arg2[%c0_31, %43, %c1_32, %c0_33] : memref<1x10x10x128xbf16, #tpu.memory_space<vmem>>, vector<1x8x8x128xbf16>
    %45 = vector.shape_cast %44 : vector<1x8x8x128xbf16> to vector<8x8x128xbf16>
    %46 = vector.shape_cast %45 : vector<8x8x128xbf16> to vector<64x128xbf16>
    %c4 = arith.constant 4 : index
    %c0_34 = arith.constant 0 : index
    %c0_35 = arith.constant 0 : index
    %47 = vector.load %arg3[%c4, %c0_34, %c0_35] : memref<9x128x128xbf16, #tpu.memory_space<vmem>>, vector<1x128x128xbf16>
    %48 = vector.shape_cast %47 : vector<1x128x128xbf16> to vector<128x128xbf16>
    %cst_36 = arith.constant dense<0.000000e+00> : vector<64x128xf32>
    %49 = tpu.matmul %46, %48, %cst_36 {dimension_numbers = #tpu.dot_dimension_numbers<[1], [0], [0], [1], [0, 0, 1, 1], [], []>} : vector<64x128xbf16>, vector<128x128xbf16>, vector<64x128xf32> -> vector<64x128xf32>
    %50 = arith.addf %40, %49 : vector<64x128xf32>
    %c8_i32_37 = arith.constant 8 : i32
    %51 = arith.muli %arg1, %c8_i32_37 : i32
    %c1_i32_38 = arith.constant 1 : i32
    %52 = arith.addi %51, %c1_i32_38 : i32
    %c0_39 = arith.constant 0 : index
    %53 = arith.index_cast %52 : i32 to index
    %c2_40 = arith.constant 2 : index
    %c0_41 = arith.constant 0 : index
    %54 = vector.load %arg2[%c0_39, %53, %c2_40, %c0_41] : memref<1x10x10x128xbf16, #tpu.memory_space<vmem>>, vector<1x8x8x128xbf16>
    %55 = vector.shape_cast %54 : vector<1x8x8x128xbf16> to vector<8x8x128xbf16>
    %56 = vector.shape_cast %55 : vector<8x8x128xbf16> to vector<64x128xbf16>
    %c5 = arith.constant 5 : index
    %c0_42 = arith.constant 0 : index
    %c0_43 = arith.constant 0 : index
    %57 = vector.load %arg3[%c5, %c0_42, %c0_43] : memref<9x128x128xbf16, #tpu.memory_space<vmem>>, vector<1x128x128xbf16>
    %58 = vector.shape_cast %57 : vector<1x128x128xbf16> to vector<128x128xbf16>
    %cst_44 = arith.constant dense<0.000000e+00> : vector<64x128xf32>
    %59 = tpu.matmul %56, %58, %cst_44 {dimension_numbers = #tpu.dot_dimension_numbers<[1], [0], [0], [1], [0, 0, 1, 1], [], []>} : vector<64x128xbf16>, vector<128x128xbf16>, vector<64x128xf32> -> vector<64x128xf32>
    %60 = arith.addf %50, %59 : vector<64x128xf32>
    %c8_i32_45 = arith.constant 8 : i32
    %61 = arith.muli %arg1, %c8_i32_45 : i32
    %c2_i32 = arith.constant 2 : i32
    %62 = arith.addi %61, %c2_i32 : i32
    %c0_46 = arith.constant 0 : index
    %63 = arith.index_cast %62 : i32 to index
    %c0_47 = arith.constant 0 : index
    %c0_48 = arith.constant 0 : index
    %64 = vector.load %arg2[%c0_46, %63, %c0_47, %c0_48] : memref<1x10x10x128xbf16, #tpu.memory_space<vmem>>, vector<1x8x8x128xbf16>
    %65 = vector.shape_cast %64 : vector<1x8x8x128xbf16> to vector<8x8x128xbf16>
    %66 = vector.shape_cast %65 : vector<8x8x128xbf16> to vector<64x128xbf16>
    %c6 = arith.constant 6 : index
    %c0_49 = arith.constant 0 : index
    %c0_50 = arith.constant 0 : index
    %67 = vector.load %arg3[%c6, %c0_49, %c0_50] : memref<9x128x128xbf16, #tpu.memory_space<vmem>>, vector<1x128x128xbf16>
    %68 = vector.shape_cast %67 : vector<1x128x128xbf16> to vector<128x128xbf16>
    %cst_51 = arith.constant dense<0.000000e+00> : vector<64x128xf32>
    %69 = tpu.matmul %66, %68, %cst_51 {dimension_numbers = #tpu.dot_dimension_numbers<[1], [0], [0], [1], [0, 0, 1, 1], [], []>} : vector<64x128xbf16>, vector<128x128xbf16>, vector<64x128xf32> -> vector<64x128xf32>
    %70 = arith.addf %60, %69 : vector<64x128xf32>
    %c8_i32_52 = arith.constant 8 : i32
    %71 = arith.muli %arg1, %c8_i32_52 : i32
    %c2_i32_53 = arith.constant 2 : i32
    %72 = arith.addi %71, %c2_i32_53 : i32
    %c0_54 = arith.constant 0 : index
    %73 = arith.index_cast %72 : i32 to index
    %c1_55 = arith.constant 1 : index
    %c0_56 = arith.constant 0 : index
    %74 = vector.load %arg2[%c0_54, %73, %c1_55, %c0_56] : memref<1x10x10x128xbf16, #tpu.memory_space<vmem>>, vector<1x8x8x128xbf16>
    %75 = vector.shape_cast %74 : vector<1x8x8x128xbf16> to vector<8x8x128xbf16>
    %76 = vector.shape_cast %75 : vector<8x8x128xbf16> to vector<64x128xbf16>
    %c7 = arith.constant 7 : index
    %c0_57 = arith.constant 0 : index
    %c0_58 = arith.constant 0 : index
    %77 = vector.load %arg3[%c7, %c0_57, %c0_58] : memref<9x128x128xbf16, #tpu.memory_space<vmem>>, vector<1x128x128xbf16>
    %78 = vector.shape_cast %77 : vector<1x128x128xbf16> to vector<128x128xbf16>
    %cst_59 = arith.constant dense<0.000000e+00> : vector<64x128xf32>
    %79 = tpu.matmul %76, %78, %cst_59 {dimension_numbers = #tpu.dot_dimension_numbers<[1], [0], [0], [1], [0, 0, 1, 1], [], []>} : vector<64x128xbf16>, vector<128x128xbf16>, vector<64x128xf32> -> vector<64x128xf32>
    %80 = arith.addf %70, %79 : vector<64x128xf32>
    %c8_i32_60 = arith.constant 8 : i32
    %81 = arith.muli %arg1, %c8_i32_60 : i32
    %c2_i32_61 = arith.constant 2 : i32
    %82 = arith.addi %81, %c2_i32_61 : i32
    %c0_62 = arith.constant 0 : index
    %83 = arith.index_cast %82 : i32 to index
    %c2_63 = arith.constant 2 : index
    %c0_64 = arith.constant 0 : index
    %84 = vector.load %arg2[%c0_62, %83, %c2_63, %c0_64] : memref<1x10x10x128xbf16, #tpu.memory_space<vmem>>, vector<1x8x8x128xbf16>
    %85 = vector.shape_cast %84 : vector<1x8x8x128xbf16> to vector<8x8x128xbf16>
    %86 = vector.shape_cast %85 : vector<8x8x128xbf16> to vector<64x128xbf16>
    %c8 = arith.constant 8 : index
    %c0_65 = arith.constant 0 : index
    %c0_66 = arith.constant 0 : index
    %87 = vector.load %arg3[%c8, %c0_65, %c0_66] : memref<9x128x128xbf16, #tpu.memory_space<vmem>>, vector<1x128x128xbf16>
    %88 = vector.shape_cast %87 : vector<1x128x128xbf16> to vector<128x128xbf16>
    %cst_67 = arith.constant dense<0.000000e+00> : vector<64x128xf32>
    %89 = tpu.matmul %86, %88, %cst_67 {dimension_numbers = #tpu.dot_dimension_numbers<[1], [0], [0], [1], [0, 0, 1, 1], [], []>} : vector<64x128xbf16>, vector<128x128xbf16>, vector<64x128xf32> -> vector<64x128xf32>
    %90 = arith.addf %80, %89 : vector<64x128xf32>
    %c0_68 = arith.constant 0 : index
    %c0_69 = arith.constant 0 : index
    %91 = vector.load %arg4[%c0_68, %c0_69] : memref<1x128xf32, #tpu.memory_space<vmem>>, vector<1x128xf32>
    %92 = vector.broadcast %91 : vector<1x128xf32> to vector<64x128xf32>
    %93 = arith.addf %90, %92 : vector<64x128xf32>
    %c0_70 = arith.constant 0 : index
    %c0_71 = arith.constant 0 : index
    %c0_72 = arith.constant 0 : index
    %94 = vector.load %arg5[%c0_70, %c0_71, %c0_72] : memref<1x64x128xbf16, #tpu.memory_space<vmem>>, vector<1x64x128xbf16>
    %95 = vector.shape_cast %94 : vector<1x64x128xbf16> to vector<64x128xbf16>
    %c0_73 = arith.constant 0 : index
    %c0_74 = arith.constant 0 : index
    %96 = vector.load %arg6[%c0_73, %c0_74] : memref<128x128xbf16, #tpu.memory_space<vmem>>, vector<128x128xbf16>
    %cst_75 = arith.constant dense<0.000000e+00> : vector<64x128xf32>
    %97 = tpu.matmul %95, %96, %cst_75 {dimension_numbers = #tpu.dot_dimension_numbers<[1], [0], [0], [1], [0, 0, 1, 1], [], []>} : vector<64x128xbf16>, vector<128x128xbf16>, vector<64x128xf32> -> vector<64x128xf32>
    %c0_76 = arith.constant 0 : index
    %c0_77 = arith.constant 0 : index
    %98 = vector.load %arg7[%c0_76, %c0_77] : memref<1x128xf32, #tpu.memory_space<vmem>>, vector<1x128xf32>
    %99 = vector.broadcast %98 : vector<1x128xf32> to vector<64x128xf32>
    %100 = arith.addf %97, %99 : vector<64x128xf32>
    %cst_78 = arith.constant 0.000000e+00 : f32
    %101 = vector.broadcast %cst_78 : f32 to vector<64x128xf32>
    %102 = arith.maximumf %100, %101 : vector<64x128xf32>
    %103 = arith.addf %93, %102 : vector<64x128xf32>
    %c0_79 = arith.constant 0 : index
    %c0_80 = arith.constant 0 : index
    %c0_81 = arith.constant 0 : index
    %104 = vector.load %arg8[%c0_79, %c0_80, %c0_81] : memref<1x64x128xf32, #tpu.memory_space<vmem>>, vector<1x64x128xf32>
    %105 = vector.shape_cast %104 : vector<1x64x128xf32> to vector<64x128xf32>
    %106 = vector.shape_cast %103 : vector<64x128xf32> to vector<1x64x128xf32>
    tpu.vector_store %arg8[%c0_79, %c0_80, %c0_81], %106 {strides = array<i32>} : memref<1x64x128xf32, #tpu.memory_space<vmem>>, vector<1x64x128xf32>,
    return
  }
  func.func @transform_0(%arg0: i32, %arg1: i32) -> (i32, i32, i32, i32) {
    %c0_i32 = arith.constant 0 : i32
    %c0_i32_0 = arith.constant 0 : i32
    %c0_i32_1 = arith.constant 0 : i32
    %c0_i32_2 = arith.constant 0 : i32
    return %arg0, %c0_i32, %c0_i32_0, %c0_i32_1 : i32, i32, i32, i32
  }
  func.func @transform_1(%arg0: i32, %arg1: i32) -> (i32, i32, i32) {
    %c0_i32 = arith.constant 0 : i32
    %c0_i32_0 = arith.constant 0 : i32
    %c0_i32_1 = arith.constant 0 : i32
    %c0_i32_2 = arith.constant 0 : i32
    return %c0_i32, %c0_i32_0, %c0_i32_1 : i32, i32, i32
  }
  func.func @transform_2(%arg0: i32, %arg1: i32) -> (i32, i32) {
    %c0_i32 = arith.constant 0 : i32
    %c0_i32_0 = arith.constant 0 : i32
    %c0_i32_1 = arith.constant 0 : i32
    return %c0_i32, %c0_i32_0 : i32, i32
  }
  func.func @transform_3(%arg0: i32, %arg1: i32) -> (i32, i32, i32) {
    %c0_i32 = arith.constant 0 : i32
    %c0_i32_0 = arith.constant 0 : i32
    return %arg0, %arg1, %c0_i32 : i32, i32, i32
  }
  func.func @transform_4(%arg0: i32, %arg1: i32) -> (i32, i32) {
    %c0_i32 = arith.constant 0 : i32
    %c0_i32_0 = arith.constant 0 : i32
    %c0_i32_1 = arith.constant 0 : i32
    return %c0_i32, %c0_i32_0 : i32, i32
  }
  func.func @transform_5(%arg0: i32, %arg1: i32) -> (i32, i32) {
    %c0_i32 = arith.constant 0 : i32
    %c0_i32_0 = arith.constant 0 : i32
    %c0_i32_1 = arith.constant 0 : i32
    return %c0_i32, %c0_i32_0 : i32, i32
  }
  func.func @transform_6(%arg0: i32, %arg1: i32) -> (i32, i32, i32) {
    %c0_i32 = arith.constant 0 : i32
    %c0_i32_0 = arith.constant 0 : i32
    return %arg0, %arg1, %c0_i32 : i32, i32, i32
  }
}

</mosaic_0001>

<bundles_post_ra>
// kernel: basic_block_forward.2
= control target key start
LH: loop header
LB: loop body
LE: loop exit
PB: predicated region body
PF: predicated region fallthrough
CT: control target
= control target key end

     0   :  { %8 = vsyncpa [#allocation3], 0  ;;  %s3662_s0 = inlined_call_operand.hbm [shape: bf16[2,9,9,512], index: 0, kind: input, shape index: {}]   ;;  %s3663_s1 = inlined_call_operand.hbm [shape: bf16[9,128,128], index: 1, kind: input, shape index: {}]   ;;  %s3664_s2 = inlined_call_operand.hbm [shape: f32[1,128], index: 2, kind: input, shape index: {}]   ;;  %s3665_s3 = inlined_call_operand.hbm [shape: bf16[2,64,128], index: 3, kind: output, shape index: {}]  }
   0x1   :  { %10 = vsyncpa [#allocation3 + $0x1], 0 }
   0x2   :  { %11 = vsyncpa [#allocation6], 0 }
   0x3   :  { %12 = vsyncpa [#allocation4], 0 }
   0x4   :  { %14 = vsyncpa [#allocation4 + $0x1], 0  ;;  %s3249_s12 = smov 0   ;;  %s3251_s13 = smov 0  }
   0x5   :  { %s3253_s14 = smov 0   ;;  %s3255_s15 = smov 0  }
   0x6   :  { %s3257_s16 = smov 0   ;;  %s3259_s17 = smov 0  }
   0x7 LB: > { %s2280_s18 = sadd.s32 4294967295, %s3217_s17   ;;  %s2281_s19 = sadd.s32 4294967294, %s3217_s17   ;;  %s3217_s17 = sphi %s3259_s17, %s20_s17   ;;  %s3213_s16 = sphi %s3257_s16, %s3689_s16   ;;  %s3209_s15 = sphi %s3255_s15, %s3688_s15   ;;  %s3205_s14 = sphi %s3253_s14, %s3687_s14   ;;  %s3201_s13 = sphi %s3251_s13, %s3686_s13   ;;  %s3197_s12 = sphi %s3249_s12, %s3685_s12  }
   0x8   : > { %p52_p0 = scmp.ne.s32.totalorder %s3201_s13, %s3197_s12  ;;  %p3283_p1 = scmp.eq.s32.totalorder %s2280_s18, 0 }
   0x9   : > { %p3287_p2 = scmp.eq.s32.totalorder %s2280_s18, 1  ;;  %p126_p3 = scmp.eq.s32.totalorder %s2281_s19, 1 }
   0xa   : > { %s3670_s20 = scalar_select %p3283_p1, 1, 0 }
   0xb   : > { %p3293_p4 = por %p3283_p1, %p52_p0  ;;  %p2282_p5 = scmp.ge.s32.totalorder %s3217_s17, 1 }
   0xc   : > { %p3298_p6 = por %p126_p3, %p52_p0  ;;  %p133_p7 = scmp.lt.s32.totalorder %s3217_s17, 3 }
   0xd   : > { %s3672_s22 = scalar_select %p3293_p4, 1, 0 }
   0xe   : > { %s3673_s23 = scalar_select %p3298_p6, 1, 0 }
   0xf   : > { %p3303_p8 = pnand %p2282_p5, %p133_p7  ;;  %s3219_s25 = smov [#allocation5]  }
  0x10   : > { %s145_s26 = sshll.u32 %s3219_s25, 4  ;;  %s3220_s28 = smov [#allocation7]   ;;  %s3307_s26 = int_to_ptr.vmem [resolvable:$true] %s145_s26 }
  0x11   : > { %p2896_p9 = pneg %p3303_p8  ;;  %s159_s29 = sshll.u32 %s3220_s28, 4  ;;  %s3318_s29 = int_to_ptr.vmem [resolvable:$true] %s159_s29 }
  0x12   : > { %s3045_s5 = scalar_lea.hbm %s3663_s1, 9216 }
  0x13   : > { %p3314_p11 = pnand %p2896_p9, %p3283_p1  ;;  %p3046_p12 = scmp.ne.s32.totalorder %s3663_s1, %s3045_s5 }
  0x14   : > { %p3052_p5 = scmp.lt.u32.totalorder %s3045_s5, %s3663_s1 }
  0x15   : > { %p3047_p13 = pneg %p3314_p11 }
  0x17   : > { %p3048_p0 = pnand %p3047_p13, %p3046_p12 }
  0x19   : > { %p3049_p3 = pneg %p3048_p0 }
  0x1b   : > { %p3054_p7 = pnand %p3052_p5, %p3049_p3 }
  0x1d   : > { %3057 = shalt.err (!%p3054_p7)
}
  0x1e   : > { %s3058_s10 = scalar_lea.vmem %s3307_s26, 9216  ;;  %p3066_p1 = scmp.lt.s32.totalorder %s3307_s26, %s3307_s26 }
  0x1f   : > { %p3059_p9 = scmp.ne.s32.totalorder %s3307_s26, %s3058_s10  ;;  %p3067_p12 = scmp.lt.s32.totalorder %s3058_s10, %s3058_s10 }
  0x21   : > { %p3061_p10 = pnand %p3059_p9, %p3047_p13  ;;  %p3068_p0 = por %p3067_p12, %p3066_p1 }
  0x23   : > { %p3062_p6 = pneg %p3061_p10 }
  0x25   : > { %p3069_p4 = pnand %p3068_p0, %p3062_p6 }
  0x27   : > { %3072 = shalt.err (!%p3069_p4)
}
  0x28   : > { %s3221_s11 = smov 64   ;;  %s3222_s18 = smov 4  }
  0x29   : > { %2899 = dma.hbm_to_vmem [thread:$0]  (!%p3314_p11), %s3663_s1, 9216, %s3307_s26, [#allocation6], %s3221_s11, %s3221_s11, %s3222_s18  }
  0x2a   : > { %s3073_s4 = scalar_lea.hbm %s3664_s2, 16 }
  0x2b   : > { %p3074_p1 = scmp.ne.s32.totalorder %s3664_s2, %s3073_s4  ;;  %p3080_p10 = scmp.lt.u32.totalorder %s3073_s4, %s3664_s2 }
  0x2d   : > { %p3076_p4 = pnand %p3074_p1, %p3047_p13 }
  0x2f   : > { %p3077_p6 = pneg %p3076_p4 }
  0x31   : > { %p3082_p3 = pnand %p3080_p10, %p3077_p6 }
  0x33   : > { %3085 = shalt.err (!%p3082_p3)
}
  0x34   : > { %s3086_s26 = scalar_lea.vmem %s3318_s29, 16  ;;  %s3093_s9 = scalar_lea.vmem %s3318_s29, 32 }
  0x35   : > { %p3087_p5 = scmp.ne.s32.totalorder %s3318_s29, %s3086_s26  ;;  %p3094_p12 = scmp.lt.s32.totalorder %s3318_s29, %s3318_s29 }
  0x36   : > { %p3095_p0 = scmp.lt.s32.totalorder %s3093_s9, %s3086_s26 }
  0x37   : > { %p3089_p7 = pnand %p3087_p5, %p3047_p13 }
  0x38   : > { %p3096_p1 = por %p3095_p0, %p3094_p12 }
  0x39   : > { %p3090_p9 = pneg %p3089_p7 }
  0x3b   : > { %p3097_p4 = pnand %p3096_p1, %p3090_p9 }
  0x3d   : > { %3100 = shalt.err (!%p3097_p4)
}
  0x3e   : > { %2902 = dma.hbm_to_vmem [thread:$0]  (!%p3314_p11), %s3664_s2, 16, %s3318_s29, [#allocation6]  }
  0x3f   : > { %s32_s18 = sadd.s32 1, %s3213_s16  ;;  %s39_s19 = sadd.s32 1, %s3205_s14 }
  0x40   : > { %p34_p13 = scmp.ge.s32.totalorder %s32_s18, 2  ;;  %p46_p6 = scmp.ne.s32.totalorder %s3205_s14, %s3201_s13 }
  0x41   : > { %p47_p10 = scmp.eq.s32.totalorder %s3217_s17, 0  ;;  %p2913_p3 = scmp.lt.s32.totalorder %s3217_s17, 2 }
  0x42   : > { %s3691_s18 = smov (%p34_p13, %s32_s18), 0  ;;  %p3383_p7 = por %p3287_p2, %p46_p6 }
  0x43   : > { %p48_p5 = por %p47_p10, %p46_p6  ;;  %s36_s25 = ssub.s32 %s3213_s16, %s3691_s18 }
  0x44   : > { %s3676_s27 = scalar_select %p3383_p7, 1, 0 }
  0x45   : > { %s170_s28 = sand.u32 1, %s3205_s14   ;;  %p37_p9 = scmp.eq.s32.totalorder %s36_s25, 0 }
  0x46   : > { %s2881_s29 = smul.u32 288, %s170_s28  ;;  %p3390_p11 = pnand %p2913_p3, %p48_p5 }
  0x47   : > { %s3395_s4 = scalar_select %p37_p9, %s3205_s14, %s39_s19  }
  0x48   : > { %s2882_s5 = smul.u32 4608, %s3213_s16  ;;  %s174_s6 = scalar_lea.vmem [#allocation2], %s2881_s29 }
  0x49   : > { %s181_s7 = sshll.u32 %s174_s6, 4  ;;  %s3405_s9 = scalar_lea.sflag [#allocation3], %s170_s28  ;;  %s3403_s7 = int_to_ptr.vmem [resolvable:$true] %s181_s7 }
  0x4a   : > { %s3401_s26 = scalar_lea.hbm %s3662_s0, %s2882_s5  ;;  %p3103_p12 = pneg %p3390_p11 }
  0x4b   : > { %s3101_s10 = scalar_lea.hbm %s3401_s26, 4608  ;;  %s3106_s25 = scalar_lea.hbm %s3662_s0, 9216 }
  0x4c   : > { %p3102_p2 = scmp.ne.s32.totalorder %s3401_s26, %s3101_s10  ;;  %p3107_p4 = scmp.lt.u32.totalorder %s3401_s26, %s3662_s0 }
  0x4d   : > { %p3108_p13 = scmp.lt.u32.totalorder %s3106_s25, %s3101_s10  ;;  %p3110_p10 = scmp.lt.u32.totalorder %s3101_s10, %s3401_s26 }
  0x4e   : > { %p3104_p0 = pnand %p3103_p12, %p3102_p2 }
  0x4f   : > { %p3109_p6 = por %p3108_p13, %p3107_p4 }
  0x50   : > { %p3105_p1 = pneg %p3104_p0 }
  0x51   : > { %p3111_p3 = por %p3110_p10, %p3109_p6 }
  0x53   : > { %p3112_p5 = pnand %p3111_p3, %p3105_p1 }
  0x55   : > { %3115 = shalt.err (!%p3112_p5)
}
  0x56   : > { %s3116_s28 = scalar_lea.vmem %s3403_s7, 4608  ;;  %s3223_s6 = smov [#allocation2]  }
  0x57   : > { %p3117_p9 = scmp.ne.s32.totalorder %s3403_s7, %s3116_s28  ;;  %s3121_s21 = sshll.u32 %s3223_s6, 4  ;;  %s3122_s21 = int_to_ptr.vmem [resolvable:$false] %s3121_s21 }
  0x58   : > { %s3123_s8 = scalar_lea.vmem %s3122_s21, 9216  ;;  %p3124_p7 = scmp.lt.s32.totalorder %s3403_s7, %s3122_s21 }
  0x59   : > { %p3119_p2 = pnand %p3117_p9, %p3103_p12  ;;  %p3125_p4 = scmp.lt.s32.totalorder %s3123_s8, %s3116_s28 }
  0x5b   : > { %p3120_p0 = pneg %p3119_p2  ;;  %p3126_p13 = por %p3125_p4, %p3124_p7 }
  0x5d   : > { %p3127_p6 = pnand %p3126_p13, %p3120_p0 }
  0x5f   : > { %3130 = shalt.err (!%p3127_p6)
}
  0x60   : > { %s3224_s10 = smov 256   ;;  %s3225_s11 = smov 16  }
  0x61   : > { %2906 = dma.hbm_to_vmem [thread:$0]  (!%p3390_p11), %s3401_s26, 4608, %s3403_s7, %s3405_s9, %s3224_s10, %s3224_s10, %s3225_s11  }
  0x62   : > { %193 = sbr.rel (%p3303_p8) target bundleno = 509 (0x1fd), region = 32  ;;  %s3436_s19 = sand.u32 (!%p3303_p8), 1, %s3201_s13  }
  0x63   : > { %s2883_s25 = smul.u32 (!%p3303_p8), 288, %s3436_s19  ;;  %s196_s29 = scalar_lea.sflag (!%p3303_p8), [#allocation3], %s3436_s19 }
  0x64   : > { %p3678_p7 = scmp.ne.s32.totalorder (!%p3303_p8), %s3672_s22, 0 }
  0x65   : > { %s3440_s5 = scalar_lea.vmem (!%p3303_p8), [#allocation2], %s2883_s25 }
  0x69   : > { %3184 = dma.done.wait (%p3678_p7), %s196_s29, 4608  }
  0x6a   : > { %3186 = vsyncadd (%p3678_p7), %s196_s29, 4294962688  ;;  %p3679_p11 = scmp.ne.s32.totalorder %s3670_s20, 0 }
  0x6c   : > { %3188 = dma.done.wait (%p3679_p11), [#allocation6], 9232  }
  0x6d   : > { %3190 = vsyncadd (%p3679_p11), [#allocation6], 4294958064  ;;  %v2973_v0 = vld [vmem:[#allocation5 + $0x40] sm:$0xff]   ;;  %v2975_v2 = vld [vmem:[#allocation5 + $0x48] sm:$0xff]   ;;  %vm575_vm0 = vsmask.f32 3328 }
  0x6e   : > { %v2974_v1 = vld [vmem:[#allocation5 + $0x100] sm:$0xff]   ;;  %2585 = vmatprep.subr.bf16.mxu1 %v2973_v0  ;;  %v2976_v3 = vld [vmem:[#allocation5 + $0x108] sm:$0xff]   ;;  %v2977_v4 = vld [vmem:[#allocation5 + $0x50] sm:$0xff]   ;;  %vm576_vm1 = vsmask.f32 7440  ;;  %s2290_s20 = sshll.u32 %s3436_s19, 5 }
  0x6f   : > { %2681 = vmatprep.subr.bf16.mxu0 %v2974_v1  ;;  %2586 = vmatpush3.bf16.msra.mxu1 %v2973_v0  ;;  %v2978_v5 = vld [vmem:[#allocation5 + $0x110] sm:$0xff]   ;;  %v2979_v6 = vld [vmem:[#allocation5 + $0x58] sm:$0xff]   ;;  %v2981_v8 = vld [vmem:[#allocation5 + $0x60] sm:$0xff]   ;;  %s229_s22 = scalar_lea.vmem [#allocation8], %s2290_s20  ;;  %s2453_s30 = sshll.u32 %s3209_s15, 9 }
  0x70   : > { %2682 = vmatpush3.bf16.msra.mxu0 %v2974_v1  ;;  %2587 = vmatprep.subr.bf16.mxu1 %v2975_v2  ;;  %v2980_v7 = vld [vmem:[#allocation5 + $0x118] sm:$0xff]   ;;  %v2982_v9 = vld [vmem:[#allocation5 + $0x120] sm:$0xff]   ;;  %v2983_v10 = vld [vmem:[#allocation5 + $0x68] sm:$0xff]   ;;  %s2171_s24 = sshll.u32 %s229_s22, 4  ;;  %s3613_s15 = scalar_lea.hbm %s3665_s3, %s2453_s30  ;;  %s3608_s24 = int_to_ptr.vmem [resolvable:$true] %s2171_s24 }
  0x71   : > { %2683 = vmatprep.subr.bf16.mxu0 %v2976_v3  ;;  %v260_v11 = vld [vmem:[%s3440_s5 + $0x4] sm:$0xf]  ;;  %v2984_v13 = vld [vmem:[#allocation5 + $0x128] sm:$0xff]   ;;  %v2985_v18 = vld [vmem:[#allocation5 + $0x70] sm:$0xff]   ;;  %s2156_s9 = scalar_lea.sflag [#allocation4], %s3436_s19  ;;  %s3131_s28 = scalar_lea.vmem %s3608_s24, 512 }
  0x72   : > { %v261_v12 = vld [vmem:[%s3440_s5 + $0x24] sm:$0xf]  ;;  %v1014_v15 = vld [vmem:[%s3440_s5 + $0xc] sm:$0xf]  ;;  %v2986_v19 = vld [vmem:[#allocation5 + $0x130] sm:$0xff]   ;;  %p3132_p8 = scmp.ne.s32.totalorder %s3608_s24, %s3131_s28  ;;  %p3682_p12 = scmp.ne.s32.totalorder %s3676_s27, 0 }
  0x73   : > { %2588 = vmatpush3.bf16.msra.mxu1 %v2975_v2  ;;  %v2291_v14 = vcombine.low %v260_v11, %v261_v12  ;;  %v1015_v16 = vld [vmem:[%s3440_s5 + $0x2c] sm:$0xf]  ;;  %v2987_v20 = vld [vmem:[#allocation5 + $0x78] sm:$0xff]   ;;  %v262_v22 = vld [vmem:[%s3440_s5 + $0x44] sm:$0xf]  ;;  %s3226_s6 = smov [#allocation8]  }
  0x74   : > { %2684 = vmatpush3.bf16.msra.mxu0 %v2976_v3  ;;  %2589 = vmatprep.subr.bf16.mxu1 %v2977_v4  ;;  %v2339_v17 = vcombine.low %v1014_v15, %v1015_v16  ;;  %v2988_v21 = vld [vmem:[#allocation5 + $0x138] sm:$0xff]   ;;  %v2989_v23 = vld [vmem:[#allocation5] sm:$0xff]   ;;  %v1016_v25 = vld [vmem:[%s3440_s5 + $0x4c] sm:$0xf]  ;;  %p3133_p1 = pnand %p3132_p8, %p3682_p12  ;;  %s3135_s21 = sshll.u32 %s3226_s6, 4  ;;  %s3136_s21 = int_to_ptr.vmem [resolvable:$false] %s3135_s21 }
  0x75   : > { %2685 = vmatprep.subr.bf16.mxu0 %v2978_v5  ;;  %2601 = vmatprep.mubr.bf16.mxu1 %v2291_v14  ;;  %v263_v24 = vld [vmem:[%s3440_s5 + $0x64] sm:$0xf]  ;;  %v1017_v26 = vld [vmem:[%s3440_s5 + $0x6c] sm:$0xf]  ;;  %v2993_v37 = vld [vmem:[#allocation5 + $0x10] sm:$0xff]   ;;  %s3137_s8 = scalar_lea.vmem %s3136_s21, 1024  ;;  %p3138_p3 = scmp.lt.s32.totalorder %s3608_s24, %s3136_s21 }
  0x76   : > { %2697 = vmatprep.mubr.bf16.mxu0 %v2339_v17  ;;  %v2990_v27 = vld [vmem:[#allocation5 + $0x140] sm:$0xff]   ;;  %v2292_v28 = vcombine.low %v262_v22, %v263_v24  ;;  %v2340_v30 = vcombine.low %v1016_v25, %v1017_v26  ;;  %v2991_v32 = vld [vmem:[#allocation5 + $0x8] sm:$0xff]   ;;  %v2994_v43 = vld [vmem:[#allocation5 + $0x150] sm:$0xff]   ;;  %p3134_p10 = pneg %p3133_p1  ;;  %p3139_p5 = scmp.lt.s32.totalorder %s3137_s8, %s3131_s28 }
  0x77   : > { %2590 = vmatpush3.bf16.msra.mxu1 %v2977_v4  ;;  %v264_v29 = vld [vmem:[%s3440_s5 + $0x84] sm:$0xf]  ;;  %v1018_v33 = vld [vmem:[%s3440_s5 + $0x8c] sm:$0xf]  ;;  %v236_v44 = vld [vmem:[%s3440_s5] sm:$0xf] }
  0x78   : > { %2686 = vmatpush3.bf16.msra.mxu0 %v2978_v5  ;;  %2591 = vmatprep.subr.bf16.mxu1 %v2979_v6  ;;  %v265_v31 = vld [vmem:[%s3440_s5 + $0xa4] sm:$0xf]  ;;  %v1019_v34 = vld [vmem:[%s3440_s5 + $0xac] sm:$0xf]  ;;  %v2995_v45 = vld [vmem:[#allocation5 + $0x18] sm:$0xff]   ;;  %p3140_p9 = por %p3139_p5, %p3138_p3 }
  0x79   : > { %2687 = vmatprep.subr.bf16.mxu0 %v2980_v7  ;;  %v2992_v35 = vld [vmem:[#allocation5 + $0x148] sm:$0xff]   ;;  %v2293_v36 = vcombine.low %v264_v29, %v265_v31  ;;  %v2341_v38 = vcombine.low %v1018_v33, %v1019_v34  ;;  %v266_v39 = vld [vmem:[%s3440_s5 + $0xc4] sm:$0xf]  ;;  %v237_v47 = vld [vmem:[%s3440_s5 + $0x20] sm:$0xf] }
  0x7a   : > { %v267_v40 = vld [vmem:[%s3440_s5 + $0xe4] sm:$0xf]  ;;  %v1020_v41 = vld [vmem:[%s3440_s5 + $0xcc] sm:$0xf]  ;;  %v2996_v48 = vld [vmem:[#allocation5 + $0x158] sm:$0xff]   ;;  %v2303_v58 = vcombine.low %v236_v44, %v237_v47  ;;  %p3141_p2 = pnand %p3140_p9, %p3134_p10 }
  0x7b   : > { %2592 = vmatpush3.bf16.msra.mxu1 %v2979_v6  ;;  %v1021_v42 = vld [vmem:[%s3440_s5 + $0xec] sm:$0xf]  ;;  %v2294_v46 = vcombine.low %v266_v39, %v267_v40  ;;  %v1184_v50 = vld [vmem:[%s3440_s5 + $0x8] sm:$0xf]  ;;  %v1185_v51 = vld [vmem:[%s3440_s5 + $0x18] sm:$0x1] }
  0x7c   : > { %2688 = vmatpush3.bf16.msra.mxu0 %v2980_v7  ;;  %2593 = vmatprep.subr.bf16.mxu1 %v2981_v8  ;;  %v2342_v49 = vcombine.low %v1020_v41, %v1021_v42  ;;  %v1186_v52 = vld [vmem:[%s3440_s5 + $0x28] sm:$0xf]  ;;  %v1187_v53 = vld [vmem:[%s3440_s5 + $0x38] sm:$0x1]  ;;  %v1201_v54 = vshrl.u32 %v1184_v50, 16  ;;  %v1204_v55 = vshll.u32 %v1184_v50, 16  ;;  %vm3476_vm2 = vmor %vm575_vm0, %vm576_vm1 }
  0x7d   : > { %2689 = vmatprep.subr.bf16.mxu0 %v2982_v9  ;;  %v1210_v56 = vshll.u32 %v1185_v51, 16  ;;  %v1215_v57 = vshrl.u32 %v1186_v52, 16  ;;  %v1218_v59 = vshll.u32 %v1186_v52, 16  ;;  %v1224_v60 = vshll.u32 %v1187_v53, 16  ;;  %v2997_v0 = vld [vmem:[#allocation5 + $0x20] sm:$0xff]   ;;  %v3001_v31 = vld [vmem:[#allocation5 + $0x30] sm:$0xff]  }
  0x7e   : > { %v1203_v61 = vrot.slane %v1201_v54, 4  ;;  %v1206_v62 = vrot.slane %v1204_v55, 5  ;;  %v2998_v1 = vld [vmem:[#allocation5 + $0x160] sm:$0xff]   ;;  %v1188_v6 = vld [vmem:[%s3440_s5 + $0x48] sm:$0xf] }
  0x7f   : > { %2594 = vmatpush3.bf16.msra.mxu1 %v2981_v8  ;;  %v1217_v63 = vrot.slane %v1215_v57, 4  ;;  %v1220_v2 = vrot.slane %v1218_v59, 5  ;;  %v1212_v4 = vrot.slane %v1210_v56, 5  ;;  %v1226_v5 = vrot.slane %v1224_v60, 5  ;;  %v1190_v7 = vld [vmem:[%s3440_s5 + $0x68] sm:$0xf] }
  0x80   : > { %2690 = vmatpush3.bf16.msra.mxu0 %v2982_v9  ;;  %2595 = vmatprep.subr.bf16.mxu1 %v2983_v10  ;;  %v1207_v3 = vor.u32 %v1206_v62, %v1203_v61  ;;  %v1191_v11 = vld [vmem:[%s3440_s5 + $0x78] sm:$0x1]  ;;  %v1229_v12 = vshrl.u32 %v1188_v6, 16  ;;  %v1243_v15 = vshrl.u32 %v1190_v7, 16  ;;  %v1246_v16 = vshll.u32 %v1190_v7, 16  ;;  %v3005_v40 = vld [vmem:[#allocation5 + $0x80] sm:$0xff]  }
  0x81   : > { %2691 = vmatprep.subr.bf16.mxu0 %v2984_v13  ;;  %v1221_v9 = vor.u32 %v1220_v2, %v1217_v63  ;;  %v238_v39 = vld [vmem:[%s3440_s5 + $0x40] sm:$0xf]  ;;  %v1192_v42 = vld [vmem:[%s3440_s5 + $0x88] sm:$0xf]  ;;  %v1193_v47 = vld [vmem:[%s3440_s5 + $0x98] sm:$0x1] }
  0x82   : > { %v1208_v14 = vrot.slane %v1207_v3, 4  ;;  %v1248_v24 = vrot.slane %v1246_v16, 5  ;;  %v239_v41 = vld [vmem:[%s3440_s5 + $0x60] sm:$0xf]  ;;  %v1257_v50 = vshrl.u32 %v1192_v42, 16  ;;  %v1260_v51 = vshll.u32 %v1192_v42, 16 }
  0x83   : > { %2596 = vmatpush3.bf16.msra.mxu1 %v2983_v10  ;;  %v1189_v10 = vld [vmem:[%s3440_s5 + $0x58] sm:$0x1]  ;;  %v1222_v17 = vrot.slane %v1221_v9, 4  ;;  %v1266_v52 = vshll.u32 %v1193_v47, 16  ;;  %v241_v54 = vld [vmem:[%s3440_s5 + $0xa0] sm:$0xf]  ;;  %v2304_v57 = vcombine.low %v238_v39, %v239_v41 }
  0x84   : > { %2692 = vmatpush3.bf16.msra.mxu0 %v2984_v13  ;;  %2597 = vmatprep.subr.bf16.mxu1 %v2985_v18  ;;  %v1232_v13 = vshll.u32 %v1188_v6, 16  ;;  %v1213_v22 = vsel %vm3476_vm2, %v1208_v14, %v1212_v4  ;;  %v1262_v59 = vrot.slane %v1260_v51, 5  ;;  %v3007_v62 = vld [vmem:[#allocation5 + $0x88] sm:$0xff]   ;;  %v3503_v6 = vld [vmem:[%s3440_s5 + $0xe0] sm:$0xf]  ;;  %v3009_v16 = vld [vmem:[#allocation5 + $0x90] sm:$0xff]  }
  0x85   : > { %2693 = vmatprep.subr.bf16.mxu0 %v2986_v19  ;;  %v1227_v25 = vsel %vm3476_vm2, %v1222_v17, %v1226_v5  ;;  %v1268_v63 = vrot.slane %v1266_v52, 5  ;;  %v1196_v2 = vld [vmem:[%s3440_s5 + $0xc8] sm:$0xf]  ;;  %v3500_v5 = vld [vmem:[%s3440_s5 + $0xc0] sm:$0xf]  ;;  %v3012_v51 = vld [vmem:[#allocation5 + $0x198] sm:$0xff]  }
  0x86   : > { %v2351_v26 = vcombine.low %v1213_v22, %v1227_v25  ;;  %v1197_v7 = vld [vmem:[%s3440_s5 + $0xd8] sm:$0x1]  ;;  %v1198_v9 = vld [vmem:[%s3440_s5 + $0xe8] sm:$0xf]  ;;  %v1288_v14 = vshll.u32 %v1196_v2, 16  ;;  %v3010_v25 = vld [vmem:[#allocation5 + $0x190] sm:$0xff]  }
  0x87   : > { %2598 = vmatpush3.bf16.msra.mxu1 %v2985_v18  ;;  %v1231_v18 = vrot.slane %v1229_v12, 4  ;;  %v562_v39 = vld [vmem:[%s3440_s5 + $0x30] sm:$0x1] }
  0x88   : > { %2694 = vmatpush3.bf16.msra.mxu0 %v2986_v19  ;;  %2599 = vmatprep.subr.bf16.mxu1 %v2987_v20  ;;  %v1234_v19 = vrot.slane %v1232_v13, 5  ;;  %v1285_v13 = vshrl.u32 %v1196_v2, 16  ;;  %v3013_v2 = vld [vmem:[#allocation5 + $0xa0] sm:$0xff]  }
  0x89   : > { %2695 = vmatprep.subr.bf16.mxu0 %v2988_v21 }
  0x8a   : > { %v1235_v29 = vor.u32 %v1234_v19, %v1231_v18  ;;  %v1299_v18 = vshrl.u32 %v1198_v9, 16  ;;  %v1302_v19 = vshll.u32 %v1198_v9, 16  ;;  %v1287_v22 = vrot.slane %v1285_v13, 4 }
  0x8b   : > { %2600 = vmatpush3.bf16.msra.mxu1 %v2987_v20  ;;  %v2999_v20 = vld [vmem:[#allocation5 + $0x28] sm:$0xff]  }
  0x8c   : > { %2696 = vmatpush3.bf16.msra.mxu0 %v2988_v21  ;;  %2609 = vmatprep.subr.bf16.mxu1 %v2989_v23  ;;  %v3000_v21 = vld [vmem:[#allocation5 + $0x168] sm:$0xff]  }
  0x8d   : > { %2705 = vmatprep.subr.bf16.mxu0 %v2990_v27 }
  0x8e   : > { %2602 = vmatmul.mubr.bf16.vlgmr.msra.gmra.mrb[0].mxu1 %v2292_v28  ;;  %v1252_v28 = vshll.u32 %v1191_v11, 16  ;;  %v3008_v11 = vld [vmem:[#allocation5 + $0x188] sm:$0xff]  }
  0x8f   : > { %2610 = vmatpush3.bf16.msra.mxu1 %v2989_v23  ;;  %2698 = vmatmul.mubr.bf16.vlgmr.msra.gmra.mrb[0].mxu0 %v2340_v30  ;;  %v1245_v23 = vrot.slane %v1243_v15, 4  ;;  %v1294_v15 = vshll.u32 %v1197_v7, 16  ;;  %v3014_v7 = vld [vmem:[#allocation5 + $0x1a0] sm:$0xff]  }
  0x90   : > { %2706 = vmatpush3.bf16.msra.mxu0 %v2990_v27  ;;  %2611 = vmatprep.subr.bf16.mxu1 %v2991_v32  ;;  %v1238_v27 = vshll.u32 %v1189_v10, 16  ;;  %v1254_v34 = vrot.slane %v1252_v28, 5  ;;  %v1199_v10 = vld [vmem:[%s3440_s5 + $0xf8] sm:$0x1]  ;;  %v1304_v28 = vrot.slane %v1302_v19, 5 }
  0x91   : > { %2707 = vmatprep.subr.bf16.mxu0 %v2992_v35  ;;  %2605 = vmatprep.mubr.bf16.mxu1 %v2293_v36  ;;  %v1249_v30 = vor.u32 %v1248_v24, %v1245_v23  ;;  %v1290_v23 = vrot.slane %v1288_v14, 5  ;;  %v1296_v24 = vrot.slane %v1294_v15, 5 }
  0x92   : > { %2701 = vmatprep.mubr.bf16.mxu0 %v2341_v38  ;;  %v1240_v33 = vrot.slane %v1238_v27, 5  ;;  %v3004_v38 = vld [vmem:[#allocation5 + $0x178] sm:$0xff]   ;;  %v1301_v27 = vrot.slane %v1299_v18, 4 }
  0x93   : > { %2612 = vmatpush3.bf16.msra.mxu1 %v2991_v32  ;;  %v3002_v32 = vld [vmem:[#allocation5 + $0x170] sm:$0xff]   ;;  %v1250_v36 = vrot.slane %v1249_v30, 4 }
  0x94   : > { %2708 = vmatpush3.bf16.msra.mxu0 %v2992_v35  ;;  %2613 = vmatprep.subr.bf16.mxu1 %v2993_v37  ;;  %v1236_v35 = vrot.slane %v1235_v29, 4 }
  0x95   : > { %2709 = vmatprep.subr.bf16.mxu0 %v2994_v43 }
  0x96   : > { %2606 = vmatmul.mubr.bf16.gmra.mrb[4].mxu1 %v2294_v46  ;;  %v1241_v44 = vsel %vm3476_vm2, %v1236_v35, %v1240_v33  ;;  %v240_v46 = vld [vmem:[%s3440_s5 + $0x80] sm:$0xf] }
  0x97   : > { %2614 = vmatpush3.bf16.msra.mxu1 %v2993_v37  ;;  %2702 = vmatmul.mubr.bf16.gmra.mrb[4].mxu0 %v2342_v49  ;;  %v3003_v37 = vld [vmem:[#allocation5 + $0x38] sm:$0xff]   ;;  %v2305_v3 = vcombine.low %v240_v46, %v241_v54  ;;  %v559_v33 = vld [vmem:[%s3440_s5] sm:$0xf] }
  0x98   : > { %2710 = vmatpush3.bf16.msra.mxu0 %v2994_v43  ;;  %2615 = vmatprep.subr.bf16.mxu1 %v2995_v45  ;;  %v3006_v43 = vld [vmem:[#allocation5 + $0x180] sm:$0xff]   ;;  %v1195_v49 = vld [vmem:[%s3440_s5 + $0xb8] sm:$0x1]  ;;  %v582_v41 = vshll.u32 %v559_v33, 16 }
  0x99   : > { %2711 = vmatprep.subr.bf16.mxu0 %v2996_v48  ;;  %2625 = vmatprep.mubr.bf16.mxu1 %v2303_v58  ;;  %v1280_v56 = vshll.u32 %v1195_v49, 16  ;;  %v1259_v58 = vrot.slane %v1257_v50, 4  ;;  %v561_v35 = vld [vmem:[%s3440_s5 + $0x20] sm:$0xf]  ;;  %v602_v49 = vshll.u32 %v562_v39, 16 }
  0x9a   : > { %2721 = vmatprep.mubr.bf16.mxu0 %v2351_v26  ;;  %v2363_v50 = vld [vmem:[%s3440_s5 + $0x20] sm:$0xf]  ;;  %v570_v39 = vld [vmem:[%s3440_s5 + $0xb0] sm:$0x1] }
  0x9b   : > { %2616 = vmatpush3.bf16.msra.mxu1 %v2995_v45  ;;  %v1255_v45 = vsel %vm3476_vm2, %v1250_v36, %v1254_v34  ;;  %v1263_v4 = vor.u32 %v1262_v59, %v1259_v58  ;;  %v560_v34 = vld [vmem:[%s3440_s5 + $0x10] sm:$0x1]  ;;  %v3011_v36 = vld [vmem:[#allocation5 + $0x98] sm:$0xff]   ;;  %v604_v59 = vrot.slane %v602_v49, 5  ;;  %v2367_v49 = vld [vmem:[%s3440_s5 + $0xa0] sm:$0xf] }
  0x9c   : > { %2712 = vmatpush3.bf16.msra.mxu0 %v2996_v48  ;;  %2617 = vmatprep.subr.bf16.mxu1 %v2997_v0  ;;  %v1194_v48 = vld [vmem:[%s3440_s5 + $0xa8] sm:$0xf]  ;;  %v2352_v61 = vcombine.low %v1241_v44, %v1255_v45  ;;  %v593_v44 = vshrl.u32 %v561_v35, 16  ;;  %v596_v45 = vshll.u32 %v561_v35, 16 }
  0x9d   : > { %2713 = vmatprep.subr.bf16.mxu0 %v2998_v1  ;;  %v1271_v53 = vshrl.u32 %v1194_v48, 16  ;;  %v1274_v55 = vshll.u32 %v1194_v48, 16  ;;  %v1264_v17 = vrot.slane %v1263_v4, 4  ;;  %v584_v48 = vrot.slane %v582_v41, 5  ;;  %v566_v4 = vld [vmem:[%s3440_s5 + $0x70] sm:$0x1] }
  0x9e   : > { %v595_v54 = vrot.slane %v593_v44, 4  ;;  %v2366_v41 = vld [vmem:[%s3440_s5 + $0x80] sm:$0xf] }
  0x9f   : > { %2618 = vmatpush3.bf16.msra.mxu1 %v2997_v0  ;;  %v1273_v60 = vrot.slane %v1271_v53, 4  ;;  %v1276_v0 = vrot.slane %v1274_v55, 5  ;;  %v1269_v26 = vsel %vm3476_vm2, %v1264_v17, %v1268_v63  ;;  %v598_v55 = vrot.slane %v596_v45, 5  ;;  %v563_v63 = vld [vmem:[%s3440_s5 + $0x40] sm:$0xf]  ;;  %v3016_v17 = vld [vmem:[#allocation5 + $0x1a8] sm:$0xff]  }
  0xa0   : > { %2714 = vmatpush3.bf16.msra.mxu0 %v2998_v1  ;;  %2619 = vmatprep.subr.bf16.mxu1 %v2999_v20  ;;  %v1282_v1 = vrot.slane %v1280_v56, 5  ;;  %v2364_v56 = vld [vmem:[%s3440_s5 + $0x40] sm:$0xf] }
  0xa1   : > { %2715 = vmatprep.subr.bf16.mxu0 %v3000_v21  ;;  %v1277_v12 = vor.u32 %v1276_v0, %v1273_v60  ;;  %v2371_v60 = vcombine.low %v2363_v50, %v2364_v56  ;;  %v564_v0 = vld [vmem:[%s3440_s5 + $0x50] sm:$0x1]  ;;  %v2368_v50 = vld [vmem:[%s3440_s5 + $0xc0] sm:$0xf] }
  0xa2   : > { %v572_v56 = vld [vmem:[%s3440_s5 + $0xd0] sm:$0x1] }
  0xa3   : > { %2620 = vmatpush3.bf16.msra.mxu1 %v2999_v20  ;;  %v1308_v20 = vshll.u32 %v1199_v10, 16 }
  0xa4   : > { %2716 = vmatpush3.bf16.msra.mxu0 %v3000_v21  ;;  %2621 = vmatprep.subr.bf16.mxu1 %v3001_v31  ;;  %v1278_v21 = vrot.slane %v1277_v12, 4  ;;  %v3015_v12 = vld [vmem:[#allocation5 + $0xa8] sm:$0xff]  }
  0xa5   : > { %2717 = vmatprep.subr.bf16.mxu0 %v3002_v32  ;;  %v1310_v29 = vrot.slane %v1308_v20, 5 }
  0xa6   : > { %v1283_v30 = vsel %vm3476_vm2, %v1278_v21, %v1282_v1  ;;  %v565_v1 = vld [vmem:[%s3440_s5 + $0x60] sm:$0xf]  ;;  %v630_v21 = vshll.u32 %v566_v4, 16 }
  0xa7   : > { %2622 = vmatpush3.bf16.msra.mxu1 %v3001_v31  ;;  %v2306_v31 = vcombine.low %v3500_v5, %v3503_v6  ;;  %v607_v5 = vshrl.u32 %v563_v63, 16  ;;  %v610_v6 = vshll.u32 %v563_v63, 16  ;;  %v621_v10 = vshrl.u32 %v565_v1, 16 }
  0xa8   : > { %2718 = vmatpush3.bf16.msra.mxu0 %v3002_v32  ;;  %2623 = vmatprep.subr.bf16.mxu1 %v3003_v37  ;;  %v1291_v32 = vor.u32 %v1290_v23, %v1287_v22 }
  0xa9   : > { %2719 = vmatprep.subr.bf16.mxu0 %v3004_v38  ;;  %v609_v14 = vrot.slane %v607_v5, 4  ;;  %v612_v15 = vrot.slane %v610_v6, 5  ;;  %v623_v19 = vrot.slane %v621_v10, 4  ;;  %v2373_v10 = vcombine.low %v2367_v49, %v2368_v50  ;;  %v2411_v49 = vld [vmem:[%s3440_s5 + $0xa0] sm:$0xf]  ;;  %v3034_v50 = vld [vmem:[#allocation5 + $0x1f0] sm:$0xff]  }
  0xaa   : > { %v1292_v42 = vrot.slane %v1291_v32, 4  ;;  %v3020_v32 = vld [vmem:[#allocation5 + $0x1b8] sm:$0xff]  }
  0xab   : > { %2624 = vmatpush3.bf16.msra.mxu1 %v3003_v37  ;;  %v2353_v37 = vcombine.low %v1269_v26, %v1283_v30  ;;  %v613_v23 = vor.u32 %v612_v15, %v609_v14  ;;  %v3018_v26 = vld [vmem:[#allocation5 + $0x1b0] sm:$0xff]  }
  0xac   : > { %2720 = vmatpush3.bf16.msra.mxu0 %v3004_v38  ;;  %2633 = vmatprep.subr.bf16.mxu1 %v3005_v40  ;;  %v1305_v38 = vor.u32 %v1304_v28, %v1301_v27  ;;  %v1297_v52 = vsel %vm3476_vm2, %v1292_v42, %v1296_v24  ;;  %v632_v28 = vrot.slane %v630_v21, 5 }
  0xad   : > { %2729 = vmatprep.subr.bf16.mxu0 %v3006_v43 }
  0xae   : > { %2626 = vmatmul.mubr.bf16.vlgmr.msra.gmra.mrb[0].mxu1 %v2304_v57  ;;  %v1306_v46 = vrot.slane %v1305_v38, 4  ;;  %v569_v38 = vld [vmem:[%s3440_s5 + $0xa0] sm:$0xf] }
  0xaf   : > { %2634 = vmatpush3.bf16.msra.mxu1 %v3005_v40  ;;  %2722 = vmatmul.mubr.bf16.vlgmr.msra.gmra.mrb[0].mxu0 %v2352_v61  ;;  %v579_v40 = vshrl.u32 %v559_v33, 16  ;;  %v2365_v33 = vld [vmem:[%s3440_s5 + $0x60] sm:$0xf]  ;;  %v649_v45 = vshrl.u32 %v569_v38, 16 }
  0xb0   : > { %2730 = vmatpush3.bf16.msra.mxu0 %v3006_v43  ;;  %2635 = vmatprep.subr.bf16.mxu1 %v3007_v62  ;;  %v588_v43 = vshll.u32 %v560_v34, 16  ;;  %v1311_v57 = vsel %vm3476_vm2, %v1306_v46, %v1310_v29  ;;  %v614_v29 = vrot.slane %v613_v23, 4  ;;  %v567_v34 = vld [vmem:[%s3440_s5 + $0x80] sm:$0xf] }
  0xb1   : > { %2731 = vmatprep.subr.bf16.mxu0 %v3008_v11  ;;  %2629 = vmatprep.mubr.bf16.mxu1 %v2305_v3  ;;  %v581_v47 = vrot.slane %v579_v40, 4  ;;  %v2354_v61 = vcombine.low %v1297_v52, %v1311_v57  ;;  %v3021_v40 = vld [vmem:[#allocation5 + $0xc0] sm:$0xff]   ;;  %v635_v42 = vshrl.u32 %v567_v34, 16 }
  0xb2   : > { %2725 = vmatprep.mubr.bf16.mxu0 %v2353_v37  ;;  %v590_v53 = vrot.slane %v588_v43, 5  ;;  %v568_v37 = vld [vmem:[%s3440_s5 + $0x90] sm:$0x1]  ;;  %v638_v43 = vshll.u32 %v567_v34, 16  ;;  %v3022_v46 = vld [vmem:[#allocation5 + $0x1c0] sm:$0xff]  }
  0xb3   : > { %2636 = vmatpush3.bf16.msra.mxu1 %v3007_v62  ;;  %v585_v58 = vor.u32 %v584_v48, %v581_v47  ;;  %v599_v62 = vor.u32 %v598_v55, %v595_v54  ;;  %v644_v44 = vshll.u32 %v568_v37, 16  ;;  %v652_v47 = vshll.u32 %v569_v38, 16  ;;  %v2384_v37 = vld [vmem:[%s3440_s5 + $0x44] sm:$0xf] }
  0xb4   : > { %2732 = vmatpush3.bf16.msra.mxu0 %v3008_v11  ;;  %2637 = vmatprep.subr.bf16.mxu1 %v3009_v16  ;;  %v624_v11 = vshll.u32 %v565_v1, 16  ;;  %v658_v48 = vshll.u32 %v570_v39, 16  ;;  %v637_v52 = vrot.slane %v635_v42, 4  ;;  %v651_v55 = vrot.slane %v649_v45, 4  ;;  %v3028_v39 = vld [vmem:[#allocation5 + $0x1d8] sm:$0xff]   ;;  %v3029_v42 = vld [vmem:[#allocation5 + $0xe0] sm:$0xff]  }
  0xb5   : > { %2733 = vmatprep.subr.bf16.mxu0 %v3010_v25  ;;  %v586_v3 = vrot.slane %v585_v58, 4  ;;  %v600_v9 = vrot.slane %v599_v62, 4  ;;  %v646_v54 = vrot.slane %v644_v44, 5  ;;  %v2372_v58 = vcombine.low %v2365_v33, %v2366_v41  ;;  %v574_v62 = vld [vmem:[%s3440_s5 + $0xf0] sm:$0x1]  ;;  %v3031_v44 = vld [vmem:[#allocation5 + $0xe8] sm:$0xff]  }
  0xb6   : > { %2630 = vmatmul.mubr.bf16.gmra.mrb[4].mxu1 %v2306_v31  ;;  %v626_v20 = vrot.slane %v624_v11, 5  ;;  %v3019_v31 = vld [vmem:[#allocation5 + $0xb8] sm:$0xff]   ;;  %v686_v6 = vshll.u32 %v574_v62, 16  ;;  %v845_v33 = vld [vmem:[%s3440_s5 + $0x28] sm:$0xf] }
  0xb7   : > { %2638 = vmatpush3.bf16.msra.mxu1 %v3009_v16  ;;  %2726 = vmatmul.mubr.bf16.gmra.mrb[4].mxu0 %v2354_v61  ;;  %v591_v13 = vsel %vm3476_vm2, %v586_v3, %v590_v53  ;;  %v616_v16 = vshll.u32 %v564_v0, 16  ;;  %v605_v18 = vsel %vm3476_vm2, %v600_v9, %v604_v59  ;;  %v640_v53 = vrot.slane %v638_v43, 5  ;;  %v573_v61 = vld [vmem:[%s3440_s5 + $0xe0] sm:$0xf]  ;;  %v3032_v45 = vld [vmem:[#allocation5 + $0x1e8] sm:$0xff]  }
  0xb8   : > { %2734 = vmatpush3.bf16.msra.mxu0 %v3010_v25  ;;  %2639 = vmatprep.subr.bf16.mxu1 %v3011_v36  ;;  %v2315_v22 = vcombine.low %v591_v13, %v605_v18  ;;  %v627_v24 = vor.u32 %v626_v20, %v623_v19  ;;  %v3017_v25 = vld [vmem:[#allocation5 + $0xb0] sm:$0xff]   ;;  %v654_v59 = vrot.slane %v652_v47, 5  ;;  %v677_v4 = vshrl.u32 %v573_v61, 16  ;;  %v3024_v13 = vld [vmem:[#allocation5 + $0x1c8] sm:$0xff]   ;;  %v2369_v20 = vld [vmem:[%s3440_s5 + $0xe0] sm:$0xf] }
  0xb9   : > { %2735 = vmatprep.subr.bf16.mxu0 %v3012_v51  ;;  %2745 = vmatprep.mubr.bf16.mxu0 %v2371_v60  ;;  %v618_v27 = vrot.slane %v616_v16, 5  ;;  %v660_v60 = vrot.slane %v658_v48, 5  ;;  %v641_v63 = vor.u32 %v640_v53, %v637_v52  ;;  %v680_v5 = vshll.u32 %v573_v61, 16  ;;  %v3030_v43 = vld [vmem:[#allocation5 + $0x1e0] sm:$0xff]   ;;  %v3033_v48 = vld [vmem:[#allocation5 + $0xf0] sm:$0xff]   ;;  %v3036_v61 = vld [vmem:[#allocation5 + $0x1f8] sm:$0xff]  }
  0xba   : > { %2649 = vmatprep.mubr.bf16.mxu1 %v2315_v22  ;;  %v628_v30 = vrot.slane %v627_v24, 4  ;;  %v655_v3 = vor.u32 %v654_v59, %v651_v55  ;;  %v679_v16 = vrot.slane %v677_v4, 4  ;;  %v688_v23 = vrot.slane %v686_v6, 5  ;;  %v3025_v24 = vld [vmem:[#allocation5 + $0xd0] sm:$0xff]   ;;  %v2405_v47 = vld [vmem:[%s3440_s5 + $0x40] sm:$0xf] }
  0xbb   : > { %2640 = vmatpush3.bf16.msra.mxu1 %v3011_v36  ;;  %v619_v35 = vsel %vm3476_vm2, %v614_v29, %v618_v27  ;;  %v642_v9 = vrot.slane %v641_v63, 4  ;;  %v2370_v27 = vld [vmem:[%s3440_s5 + $0x100] sm:$0xf]  ;;  %v1844_v55 = vshll.u32 %v2405_v47, 16  ;;  %v846_v62 = vld [vmem:[%s3440_s5 + $0x48] sm:$0xf] }
  0xbc   : > { %2736 = vmatpush3.bf16.msra.mxu0 %v3012_v51  ;;  %2641 = vmatprep.subr.bf16.mxu1 %v3013_v2  ;;  %v633_v36 = vsel %vm3476_vm2, %v628_v30, %v632_v28  ;;  %v571_v51 = vld [vmem:[%s3440_s5 + $0xc0] sm:$0xf]  ;;  %v656_v14 = vrot.slane %v655_v3, 4  ;;  %v3026_v28 = vld [vmem:[#allocation5 + $0x1d0] sm:$0xff]   ;;  %v3027_v30 = vld [vmem:[#allocation5 + $0xd8] sm:$0xff]  }
  0xbd   : > { %2737 = vmatprep.subr.bf16.mxu0 %v3014_v7  ;;  %v2316_v57 = vcombine.low %v619_v35, %v633_v36  ;;  %v663_v0 = vshrl.u32 %v571_v51, 16  ;;  %v666_v1 = vshll.u32 %v571_v51, 16  ;;  %v647_v18 = vsel %vm3476_vm2, %v642_v9, %v646_v54  ;;  %v2383_v36 = vld [vmem:[%s3440_s5 + $0x24] sm:$0xf]  ;;  %v2413_v51 = vld [vmem:[%s3440_s5 + $0xc0] sm:$0xf] }
  0xbe   : > { %v661_v21 = vsel %vm3476_vm2, %v656_v14, %v660_v60  ;;  %v2374_v35 = vcombine.low %v2369_v20, %v2370_v27  ;;  %v2391_v41 = vcombine.low %v2383_v36, %v2384_v37  ;;  %v1841_v54 = vshrl.u32 %v2405_v47, 16  ;;  %v3035_v60 = vld [vmem:[#allocation5 + $0xf8] sm:$0xff]   ;;  %v847_v63 = vld [vmem:[%s3440_s5 + $0x68] sm:$0xf]  ;;  %v2412_v14 = vld [vmem:[%s3440_s5 + $0xb0] sm:$0x1] }
  0xbf   : > { %2642 = vmatpush3.bf16.msra.mxu1 %v3013_v2  ;;  %v672_v2 = vshll.u32 %v572_v56, 16  ;;  %v665_v11 = vrot.slane %v663_v0, 4  ;;  %v1883_v56 = vshrl.u32 %v2411_v49, 16  ;;  %v1900_v59 = vshll.u32 %v2413_v51, 16  ;;  %v2385_v0 = vld [vmem:[%s3440_s5 + $0x64] sm:$0xf] }
  0xc0   : > { %2738 = vmatpush3.bf16.msra.mxu0 %v3014_v7  ;;  %2643 = vmatprep.subr.bf16.mxu1 %v3015_v12  ;;  %v3023_v7 = vld [vmem:[#allocation5 + $0xc8] sm:$0xff]   ;;  %v1846_v6 = vrot.slane %v1844_v55, 5  ;;  %v2387_v20 = vld [vmem:[%s3440_s5 + $0xa4] sm:$0xf]  ;;  %v1892_v27 = vshll.u32 %v2412_v14, 16 }
  0xc1   : > { %2739 = vmatprep.subr.bf16.mxu0 %v3016_v17  ;;  %v674_v15 = vrot.slane %v672_v2, 5  ;;  %v2404_v2 = vld [vmem:[%s3440_s5 + $0x30] sm:$0x1]  ;;  %v1885_v9 = vrot.slane %v1883_v56, 4  ;;  %v2407_v56 = vld [vmem:[%s3440_s5 + $0x60] sm:$0xf] }
  0xc3   : > { %2644 = vmatpush3.bf16.msra.mxu1 %v3015_v12  ;;  %v668_v12 = vrot.slane %v666_v1, 5  ;;  %v2386_v1 = vld [vmem:[%s3440_s5 + $0x84] sm:$0xf] }
  0xc4   : > { %2740 = vmatpush3.bf16.msra.mxu0 %v3016_v17  ;;  %2645 = vmatprep.subr.bf16.mxu1 %v3017_v25  ;;  %v682_v17 = vrot.slane %v680_v5, 5  ;;  %v1843_v5 = vrot.slane %v1841_v54, 4  ;;  %v2417_v54 = vld [vmem:[%s3440_s5 + $0x100] sm:$0xf] }
  0xc5   : > { %2741 = vmatprep.subr.bf16.mxu0 %v3018_v26  ;;  %v669_v19 = vor.u32 %v668_v12, %v665_v11  ;;  %v1902_v12 = vrot.slane %v1900_v59, 5 }
  0xc6   : > { %v683_v22 = vor.u32 %v682_v17, %v679_v16  ;;  %v2328_v16 = vcombine.low %v846_v62, %v847_v63  ;;  %v2392_v17 = vcombine.low %v2385_v0, %v2386_v1  ;;  %v1928_v62 = vshll.u32 %v2417_v54, 16  ;;  %v3041_v63 = vld [vmem:[#allocation5 + $0x220] sm:$0xff]  }
  0xc7   : > { %2646 = vmatpush3.bf16.msra.mxu1 %v3017_v25  ;;  %v2317_v25 = vcombine.low %v647_v18, %v661_v21  ;;  %v848_v18 = vld [vmem:[%s3440_s5 + $0x88] sm:$0xf]  ;;  %v2388_v21 = vld [vmem:[%s3440_s5 + $0xc4] sm:$0xf]  ;;  %v1855_v0 = vshrl.u32 %v2407_v56, 16  ;;  %v1858_v1 = vshll.u32 %v2407_v56, 16 }
  0xc8   : > { %2742 = vmatpush3.bf16.msra.mxu0 %v3018_v26  ;;  %2647 = vmatprep.subr.bf16.mxu1 %v3019_v31  ;;  %v670_v26 = vrot.slane %v669_v19, 4  ;;  %v684_v29 = vrot.slane %v683_v22, 4  ;;  %v849_v19 = vld [vmem:[%s3440_s5 + $0xa8] sm:$0xf] }
  0xc9   : > { %2743 = vmatprep.subr.bf16.mxu0 %v3020_v32 }
  0xca   : > { %v689_v34 = vsel %vm3476_vm2, %v684_v29, %v688_v23  ;;  %v1836_v23 = vshll.u32 %v2404_v2, 16 }
  0xcb   : > { %2648 = vmatpush3.bf16.msra.mxu1 %v3019_v31  ;;  %v675_v31 = vsel %vm3476_vm2, %v670_v26, %v674_v15  ;;  %v2414_v15 = vld [vmem:[%s3440_s5 + $0xd0] sm:$0x1] }
  0xcc   : > { %2744 = vmatpush3.bf16.msra.mxu0 %v3020_v32  ;;  %2657 = vmatprep.subr.bf16.mxu1 %v3021_v40  ;;  %v844_v32 = vld [vmem:[%s3440_s5 + $0x8] sm:$0xf]  ;;  %v2318_v38 = vcombine.low %v675_v31, %v689_v34  ;;  %v1906_v29 = vshll.u32 %v2414_v15, 16  ;;  %v2329_v31 = vcombine.low %v848_v18, %v849_v19  ;;  %v2418_v15 = vld [vmem:[%s3440_s5 + $0x110] sm:$0x1] }
  0xcd   : > { %2753 = vmatprep.subr.bf16.mxu0 %v3022_v46 }
  0xce   : > { %2650 = vmatmul.mubr.bf16.vlgmr.msra.gmra.mrb[0].mxu1 %v2316_v57  ;;  %v1886_v57 = vshll.u32 %v2411_v49, 16 }
  0xcf   : > { %2658 = vmatpush3.bf16.msra.mxu1 %v3021_v40  ;;  %2746 = vmatmul.mubr.bf16.vlgmr.msra.gmra.mrb[0].mxu0 %v2372_v58  ;;  %v2327_v40 = vcombine.low %v844_v32, %v845_v33  ;;  %v1897_v58 = vshrl.u32 %v2413_v51, 16  ;;  %v2393_v32 = vcombine.low %v2387_v20, %v2388_v21  ;;  %v850_v33 = vld [vmem:[%s3440_s5 + $0xc8] sm:$0xf]  ;;  %v1934_v21 = vshll.u32 %v2418_v15, 16 }
  0xd0   : > { %2754 = vmatpush3.bf16.msra.mxu0 %v3022_v46  ;;  %2659 = vmatprep.subr.bf16.mxu1 %v3023_v7  ;;  %v2403_v46 = vld [vmem:[%s3440_s5 + $0x20] sm:$0xf] }
  0xd1   : > { %2755 = vmatprep.subr.bf16.mxu0 %v3024_v13  ;;  %2749 = vmatprep.mubr.bf16.mxu0 %v2373_v10  ;;  %v1827_v52 = vshrl.u32 %v2403_v46, 16  ;;  %v1830_v53 = vshll.u32 %v2403_v46, 16  ;;  %v1888_v10 = vrot.slane %v1886_v57, 5  ;;  %v1899_v11 = vrot.slane %v1897_v58, 4  ;;  %v2409_v57 = vld [vmem:[%s3440_s5 + $0x80] sm:$0xf] }
  0xd2   : > { %2653 = vmatprep.mubr.bf16.mxu1 %v2317_v25  ;;  %v1869_v2 = vshrl.u32 %v2409_v57, 16 }
  0xd3   : > { %2660 = vmatpush3.bf16.msra.mxu1 %v3023_v7  ;;  %v1829_v3 = vrot.slane %v1827_v52, 4  ;;  %v1832_v4 = vrot.slane %v1830_v53, 5  ;;  %v2406_v7 = vld [vmem:[%s3440_s5 + $0x50] sm:$0x1]  ;;  %v1889_v26 = vor.u32 %v1888_v10, %v1885_v9  ;;  %v3040_v52 = vld [vmem:[#allocation5 + $0x218] sm:$0xff]   ;;  %v1930_v10 = vrot.slane %v1928_v62, 5 }
  0xd4   : > { %2756 = vmatpush3.bf16.msra.mxu0 %v3024_v13  ;;  %2661 = vmatprep.subr.bf16.mxu1 %v3025_v24  ;;  %v3037_v13 = vld [vmem:[#allocation5 + $0x200] sm:$0xff]   ;;  %v1850_v25 = vshll.u32 %v2406_v7, 16 }
  0xd5   : > { %2757 = vmatprep.subr.bf16.mxu0 %v3026_v28  ;;  %v1833_v22 = vor.u32 %v1832_v4, %v1829_v3  ;;  %v2415_v53 = vld [vmem:[%s3440_s5 + $0xe0] sm:$0xf]  ;;  %v1872_v3 = vshll.u32 %v2409_v57, 16  ;;  %v3042_v4 = vld [vmem:[#allocation5 + $0x228] sm:$0xff]  }
  0xd6   : > { %2654 = vmatmul.mubr.bf16.gmra.mrb[4].mxu1 %v2318_v38  ;;  %v1852_v37 = vrot.slane %v1850_v25, 5  ;;  %v851_v38 = vld [vmem:[%s3440_s5 + $0xe8] sm:$0xf]  ;;  %v1911_v59 = vshrl.u32 %v2415_v53, 16  ;;  %v2431_v57 = vld [vmem:[#allocation7] ss:$0 sm:$0xff] }
  0xd7   : > { %2662 = vmatpush3.bf16.msra.mxu1 %v3025_v24  ;;  %2750 = vmatmul.mubr.bf16.gmra.mrb[4].mxu0 %v2374_v35  ;;  %v1847_v24 = vor.u32 %v1846_v6, %v1843_v5  ;;  %v1834_v34 = vrot.slane %v1833_v22, 4  ;;  %v1838_v35 = vrot.slane %v1836_v23, 5  ;;  %v2330_v46 = vcombine.low %v850_v33, %v851_v38  ;;  %v2416_v5 = vld [vmem:[%s3440_s5 + $0xf0] sm:$0x1] }
  0xd8   : > { %2758 = vmatpush3.bf16.msra.mxu0 %v3026_v28  ;;  %2663 = vmatprep.subr.bf16.mxu1 %v3027_v30  ;;  %v1903_v28 = vor.u32 %v1902_v12, %v1899_v11  ;;  %v1913_v6 = vrot.slane %v1911_v59, 4  ;;  %v1857_v11 = vrot.slane %v1855_v0, 4  ;;  %v1860_v12 = vrot.slane %v1858_v1, 5  ;;  %v3043_v22 = vld [vmem:[#allocation5 + $0x230] sm:$0xff]  }
  0xd9   : > { %2759 = vmatprep.subr.bf16.mxu0 %v3028_v39  ;;  %2673 = vmatprep.mubr.bf16.mxu1 %v2327_v40  ;;  %v1848_v36 = vrot.slane %v1847_v24, 4  ;;  %v1894_v40 = vrot.slane %v1892_v27, 5  ;;  %v1839_v47 = vsel %vm3476_vm2, %v1834_v34, %v1838_v35  ;;  %v1874_v14 = vrot.slane %v1872_v3, 5 }
  0xda   : > { %2769 = vmatprep.mubr.bf16.mxu0 %v2391_v41  ;;  %v1904_v41 = vrot.slane %v1903_v28, 4  ;;  %v1920_v19 = vshll.u32 %v2416_v5, 16  ;;  %v1861_v23 = vor.u32 %v1860_v12, %v1857_v11 }
  0xdb   : > { %2664 = vmatpush3.bf16.msra.mxu1 %v3027_v30  ;;  %v3038_v30 = vld [vmem:[#allocation5 + $0x208] sm:$0xff]  }
  0xdc   : > { %2760 = vmatpush3.bf16.msra.mxu0 %v3028_v39  ;;  %2665 = vmatprep.subr.bf16.mxu1 %v3029_v42  ;;  %v1890_v39 = vrot.slane %v1889_v26, 4  ;;  %v1922_v28 = vrot.slane %v1920_v19, 5 }
  0xdd   : > { %2761 = vmatprep.subr.bf16.mxu0 %v3030_v43 }
  0xdf   : > { %2666 = vmatpush3.bf16.msra.mxu1 %v3029_v42  ;;  %v1908_v42 = vrot.slane %v1906_v29, 5 }
  0xe0   : > { %2762 = vmatpush3.bf16.msra.mxu0 %v3030_v43  ;;  %2667 = vmatprep.subr.bf16.mxu1 %v3031_v44  ;;  %v2389_v43 = vld [vmem:[%s3440_s5 + $0xe4] sm:$0xf] }
  0xe1   : > { %2763 = vmatprep.subr.bf16.mxu0 %v3032_v45  ;;  %v1909_v51 = vsel %vm3476_vm2, %v1904_v41, %v1908_v42 }
  0xe3   : > { %2668 = vmatpush3.bf16.msra.mxu1 %v3031_v44  ;;  %v2390_v44 = vld [vmem:[%s3440_s5 + $0x104] sm:$0xf] }
  0xe4   : > { %2764 = vmatpush3.bf16.msra.mxu0 %v3032_v45  ;;  %2669 = vmatprep.subr.bf16.mxu1 %v3033_v48  ;;  %v3039_v45 = vld [vmem:[#allocation5 + $0x210] sm:$0xff]   ;;  %v2394_v49 = vcombine.low %v2389_v43, %v2390_v44 }
  0xe5   : > { %2765 = vmatprep.subr.bf16.mxu0 %v3034_v50 }
  0xe7   : > { %2670 = vmatpush3.bf16.msra.mxu1 %v3033_v48  ;;  %v1853_v48 = vsel %vm3476_vm2, %v1848_v36, %v1852_v37 }
  0xe8   : > { %2766 = vmatpush3.bf16.msra.mxu0 %v3034_v50  ;;  %2671 = vmatprep.subr.bf16.mxu1 %v3035_v60  ;;  %v1895_v50 = vsel %vm3476_vm2, %v1890_v39, %v1894_v40  ;;  %v2419_v55 = vcombine.low %v1839_v47, %v1853_v48 }
  0xe9   : > { %2767 = vmatprep.subr.bf16.mxu0 %v3036_v61  ;;  %v2421_v58 = vcombine.low %v1895_v50, %v1909_v51 }
  0xeb   : > { %2672 = vmatpush3.bf16.msra.mxu1 %v3035_v60  ;;  %v1914_v60 = vshll.u32 %v2415_v53, 16 }
  0xec   : > { %2768 = vmatpush3.bf16.msra.mxu0 %v3036_v61  ;;  %2801 = vmatprep.subr.bf16.mxu1 %v3037_v13  ;;  %v1925_v61 = vshrl.u32 %v2417_v54, 16 }
  0xed   : > { %2777 = vmatprep.subr.bf16.mxu0 %v3037_v13  ;;  %v1916_v7 = vrot.slane %v1914_v60, 5 }
  0xee   : > { %2674 = vmatmul.mubr.bf16.vlgmr.msra.gmra.mrb[0].mxu1 %v2328_v16  ;;  %v1927_v9 = vrot.slane %v1925_v61, 4  ;;  %v2408_v16 = vld [vmem:[%s3440_s5 + $0x70] sm:$0x1] }
  0xef   : > { %2770 = vmatmul.mubr.bf16.vlgmr.msra.gmra.mrb[0].mxu0 %v2392_v17  ;;  %2809 = vmatpush3.bf16.msra.mxu1 %v3037_v13  ;;  %v2410_v17 = vld [vmem:[%s3440_s5 + $0x90] sm:$0x1]  ;;  %v1917_v18 = vor.u32 %v1916_v7, %v1913_v6  ;;  %v1864_v24 = vshll.u32 %v2408_v16, 16 }
  0xf0   : > { %2778 = vmatpush3.bf16.msra.mxu0 %v3037_v13  ;;  %2802 = vmatprep.subr.bf16.mxu1 %v3038_v30  ;;  %v1871_v13 = vrot.slane %v1869_v2, 4  ;;  %v1931_v20 = vor.u32 %v1930_v10, %v1927_v9  ;;  %v1878_v26 = vshll.u32 %v2410_v17, 16 }
  0xf1   : > { %2779 = vmatprep.subr.bf16.mxu0 %v3038_v30  ;;  %2677 = vmatprep.mubr.bf16.mxu1 %v2329_v31  ;;  %v1918_v27 = vrot.slane %v1917_v18, 4  ;;  %v3044_v31 = vld [vmem:[#allocation5 + $0x238] sm:$0xff]   ;;  %v1866_v33 = vrot.slane %v1864_v24, 5 }
  0xf2   : > { %2773 = vmatprep.mubr.bf16.mxu0 %v2393_v32  ;;  %v1875_v25 = vor.u32 %v1874_v14, %v1871_v13  ;;  %v1932_v29 = vrot.slane %v1931_v20, 4  ;;  %v1862_v32 = vrot.slane %v1861_v23, 4  ;;  %v1880_v35 = vrot.slane %v1878_v26, 5 }
  0xf3   : > { %2810 = vmatpush3.bf16.msra.mxu1 %v3038_v30  ;;  %v1923_v36 = vsel %vm3476_vm2, %v1918_v27, %v1922_v28 }
  0xf4   : > { %2780 = vmatpush3.bf16.msra.mxu0 %v3038_v30  ;;  %2803 = vmatprep.subr.bf16.mxu1 %v3039_v45  ;;  %v1936_v30 = vrot.slane %v1934_v21, 5  ;;  %v1876_v34 = vrot.slane %v1875_v25, 4  ;;  %v1867_v38 = vsel %vm3476_vm2, %v1862_v32, %v1866_v33 }
  0xf5   : > { %2781 = vmatprep.subr.bf16.mxu0 %v3039_v45 }
  0xf6   : > { %2678 = vmatmul.mubr.bf16.gmra.mrb[4].mxu1 %v2330_v46  ;;  %v1937_v37 = vsel %vm3476_vm2, %v1932_v29, %v1936_v30  ;;  %v1881_v39 = vsel %vm3476_vm2, %v1876_v34, %v1880_v35 }
  0xf7   : > { %2774 = vmatmul.mubr.bf16.gmra.mrb[4].mxu0 %v2394_v49  ;;  %2811 = vmatpush3.bf16.msra.mxu1 %v3039_v45  ;;  %v2422_v40 = vcombine.low %v1923_v36, %v1937_v37  ;;  %v2420_v41 = vcombine.low %v1867_v38, %v1881_v39 }
  0xf8   : > { %2782 = vmatpush3.bf16.msra.mxu0 %v3039_v45  ;;  %2804 = vmatprep.subr.bf16.mxu1 %v3040_v52 }
  0xf9   : > { %2783 = vmatprep.subr.bf16.mxu0 %v3040_v52  ;;  %2793 = vmatprep.mubr.bf16.mxu0 %v2419_v55 }
  0xfa   : > { %2797 = vmatprep.mubr.bf16.mxu1 %v2421_v58 }
  0xfb   : > { %2812 = vmatpush3.bf16.msra.mxu1 %v3040_v52 }
  0xfc   : > { %2784 = vmatpush3.bf16.msra.mxu0 %v3040_v52  ;;  %2805 = vmatprep.subr.bf16.mxu1 %v3041_v63 }
  0xfd   : > { %2785 = vmatprep.subr.bf16.mxu0 %v3041_v63 }
  0xff   : > { %2813 = vmatpush3.bf16.msra.mxu1 %v3041_v63 }
 0x100   : > { %2786 = vmatpush3.bf16.msra.mxu0 %v3041_v63  ;;  %2806 = vmatprep.subr.bf16.mxu1 %v3042_v4 }
 0x101   : > { %2787 = vmatprep.subr.bf16.mxu0 %v3042_v4 }
 0x103   : > { %2814 = vmatpush3.bf16.msra.mxu1 %v3042_v4 }
 0x104   : > { %2788 = vmatpush3.bf16.msra.mxu0 %v3042_v4  ;;  %2807 = vmatprep.subr.bf16.mxu1 %v3043_v22 }
 0x105   : > { %2789 = vmatprep.subr.bf16.mxu0 %v3043_v22 }
 0x107   : > { %2815 = vmatpush3.bf16.msra.mxu1 %v3043_v22 }
 0x108   : > { %2790 = vmatpush3.bf16.msra.mxu0 %v3043_v22  ;;  %2808 = vmatprep.subr.bf16.mxu1 %v3044_v31 }
 0x109   : > { %2791 = vmatprep.subr.bf16.mxu0 %v3044_v31 }
 0x10b   : > { %2816 = vmatpush3.bf16.msra.mxu1 %v3044_v31 }
 0x10c   : > { %2792 = vmatpush3.bf16.msra.mxu0 %v3044_v31 }
 0x10e   : > { %2798 = vmatmul.mubr.bf16.vlgmr.msra.gmra.mrb[8].mxu1 %v2422_v40 }
 0x10f   : > { %2794 = vmatmul.mubr.bf16.vlgmr.msra.gmra.mrb[0].mxu0 %v2420_v41 }
 0x1c1   : > { %v2675_v42 = vpop.f32.mrb[0].mxu1 }
 0x1c2   : > { %v975_v43 = vpop.f32.mrb[1].mxu1 }
 0x1c3   : > { %v2676_v44 = vpop.f32.mrb[2].mxu1 }
 0x1c4   : > { %v978_v45 = vpop.f32.mrb[3].mxu1 }
 0x1c9   : > { %v2679_v46 = vpop.f32.mrb[4].mxu1 }
 0x1ca   : > { %v2775_v47 = vpop.f32.mrb[4].mxu0  ;;  %v991_v48 = vpop.f32.mrb[5].mxu1 }
 0x1cb   : > { %v2821_v49 = vadd.f32 %v2775_v47, %v2679_v46  ;;  %v1787_v50 = vpop.f32.mrb[5].mxu0  ;;  %v2680_v51 = vpop.f32.mrb[6].mxu1 }
 0x1cc   : > { %v2823_v8 = vadd.f32 %v1787_v50, %v991_v48  ;;  %v2776_v52 = vpop.f32.mrb[6].mxu0  ;;  %v994_v53 = vpop.f32.mrb[7].mxu1 }
 0x1cd   : > { %v2825_v54 = vadd.f32 %v2776_v52, %v2680_v51  ;;  %v1790_v55 = vpop.f32.mrb[7].mxu0 }
 0x1ce   : > { %v2827_v56 = vadd.f32 %v1790_v55, %v994_v53 }
 0x1e1   : > { %v2799_v58 = vpop.f32.mrb[8].mxu1 }
 0x1e2   : > { %v2795_v59 = vpop.f32.mrb[0].mxu0  ;;  %v2822_v60 = vadd.f32 %v2821_v49, %v2799_v58  ;;  %v2069_v61 = vpop.f32.mrb[9].mxu1 }
 0x1e3   : > { %v2817_v62 = vadd.f32 %v2795_v59, %v2675_v42  ;;  %v2053_v63 = vpop.f32.mrb[1].mxu0  ;;  %v2824_v0 = vadd.f32 %v2823_v8, %v2069_v61  ;;  %v2800_v1 = vpop.f32.mrb[10].mxu1 }
 0x1e4   : > { %v2105_v2 = vadd.f32 %v2822_v60, %v2431_v57  ;;  %v2818_v3 = vadd.f32 %v2053_v63, %v975_v43  ;;  %v2796_v4 = vpop.f32.mrb[2].mxu0  ;;  %v2826_v5 = vadd.f32 %v2825_v54, %v2800_v1  ;;  %v2072_v6 = vpop.f32.mrb[11].mxu1 }
 0x1e5   : > { %v2101_v7 = vadd.f32 %v2817_v62, %v2431_v57  ;;  %v2103_v9 = vadd.f32 %v2824_v0, %v2431_v57  ;;  %v2819_v10 = vadd.f32 %v2796_v4, %v2676_v44  ;;  %v2056_v11 = vpop.f32.mrb[3].mxu0  ;;  %v2828_v12 = vadd.f32 %v2827_v56, %v2072_v6 }
 0x1e6   : > { %v2099_v13 = vadd.f32 %v2818_v3, %v2431_v57  ;;  %v2106_v14 = vadd.f32 %v2826_v5, %v2431_v57  ;;  %v2820_v15 = vadd.f32 %v2056_v11, %v978_v45  ;;  %v2113_v18 = vmax.f32 %v2105_v2, 0.0 }
 0x1e7   : > { %v2102_v16 = vadd.f32 %v2819_v10, %v2431_v57  ;;  %v2104_v17 = vadd.f32 %v2828_v12, %v2431_v57  ;;  %v2109_v21 = vmax.f32 %v2101_v7, 0.0  ;;  %v2111_v22 = vmax.f32 %v2103_v9, 0.0 }
 0x1e8   : > { %v2114_v19 = vmax.f32 %v2106_v14, 0.0  ;;  %v2100_v20 = vadd.f32 %v2820_v15, %v2431_v57  ;;  %v2107_v25 = vmax.f32 %v2099_v13, 0.0 }
 0x1e9   : > { %v2110_v23 = vmax.f32 %v2102_v16, 0.0  ;;  %v2112_v24 = vmax.f32 %v2104_v17, 0.0 }
 0x1ea   : > { %v2472_v26 = vpack.c.bf16 %v2114_v19, %v2113_v18  ;;  %v2108_v27 = vmax.f32 %v2100_v20, 0.0 }
 0x1eb   : > { %v2462_v28 = vpack.c.bf16 %v2110_v23, %v2109_v21  ;;  %v2467_v29 = vpack.c.bf16 %v2112_v24, %v2111_v22 }
 0x1ec   : > { %2476 = vst [vmem:[%s229_s22 + $0x18] sm:$0xff] %v2472_v26   ;;  %v2457_v30 = vpack.c.bf16 %v2108_v27, %v2107_v25 }
 0x1ed   : > { %2474 = vst [vmem:[%s229_s22 + $0x8] sm:$0xff] %v2462_v28   ;;  %2475 = vst [vmem:[%s229_s22 + $0x10] sm:$0xff] %v2467_v29  }
 0x1ee   : > { %2458 = vst [vmem:[%s229_s22] sm:$0xff] %v2457_v30  }
 0x1ef   : > { %3144 = shalt.err (!%p3141_p2)
}
 0x1f0   : > { %s3145_s10 = scalar_lea.hbm %s3613_s15, 512  ;;  %s3149_s29 = scalar_lea.hbm %s3665_s3, 1024 }
 0x1f1   : > { %p3146_p0 = scmp.ne.s32.totalorder %s3613_s15, %s3145_s10  ;;  %p3150_p6 = scmp.lt.u32.totalorder %s3613_s15, %s3665_s3 }
 0x1f2   : > { %p3151_p7 = scmp.lt.u32.totalorder %s3149_s29, %s3145_s10  ;;  %p3153_p8 = scmp.lt.u32.totalorder %s3145_s10, %s3613_s15 }
 0x1f3   : > { %p3147_p4 = pnand %p3146_p0, %p3682_p12 }
 0x1f4   : > { %p3152_p11 = por %p3151_p7, %p3150_p6 }
 0x1f5   : > { %p3148_p13 = pneg %p3147_p4 }
 0x1f6   : > { %p3154_p1 = por %p3153_p8, %p3152_p11 }
 0x1f8   : > { %p3155_p10 = pnand %p3154_p1, %p3148_p13 }
 0x1fa   : > { %3158 = shalt.err (!%p3155_p10)
}
 0x1fb   : > { %s3227_s22 = smov 64   ;;  %s3228_s30 = smov 4  }
 0x1fc   : > { %2894 = dma.vmem_to_hbm [thread:$0]  (%p3682_p12), %s3608_s24, 512, %s3613_s15, %s2156_s9, %s3227_s22, %s3227_s22, %s3228_s30  }
 0x1fd PF: > { %s2186_s7 = sand.u32 1, %s3197_s12   ;;  %p3683_p3 = scmp.ne.s32.totalorder %s3673_s23, 0 }
 0x1fe   : > { %p3684_p5 = scmp.ge.s32.totalorder %s3217_s17, 2  ;;  %s2187_s26 = scalar_lea.sflag [#allocation4], %s2186_s7 }
 0x200   : > { %p2908_p9 = pnand %p3684_p5, %p3683_p3 }
 0x202   : > { %3192 = dma.done.wait (!%p2908_p9), %s2187_s26, 512  }
 0x203   : > { %3194 = vsyncadd (!%p2908_p9), %s2187_s26, 4294966784  ;;  %s20_s17 = sadd.s32 1, %s3217_s17   ;;  %s3685_s12 = smov %s3201_s13 }
 0x204   : > { %p17_p2 = scmp.ge.s32.totalorder %s20_s17, 4   ;;  %s3686_s13 = smov %s3205_s14 }
 0x205   : > { %s3687_s14 = smov %s3395_s4  ;;  %s3688_s15 = smov %s3213_s16 }
 0x206   : > { %s3689_s16 = smov %s3691_s18  ;;  %19 = sbr.rel (!%p17_p2) target bundleno = 7 (0x7), region = 95 }
 0x20d   :  { %2192 = vsyncpa [#allocation3], 1 }
 0x20e   :  { %2194 = vsyncpa [#allocation3 + $0x1], 1 }
 0x20f   :  { %2195 = vsyncpa [#allocation6], 1 }
 0x210   :  { %2196 = vsyncpa [#allocation4], 1 }
 0x211   :  { %2198 = vsyncpa [#allocation4 + $0x1], 1 }

// kernel: basic_block_forward.3
= control target key start
LH: loop header
LB: loop body
LE: loop exit
PB: predicated region body
PF: predicated region fallthrough
CT: control target
= control target key end

     0   :  { %s4639_s0 = inlined_call_operand.hbm [shape: bf16[2,10,10,128], index: 0, kind: input, shape index: {}]   ;;  %s4640_s1 = inlined_call_operand.hbm [shape: bf16[9,128,128], index: 1, kind: input, shape index: {}]   ;;  %s4641_s2 = inlined_call_operand.hbm [shape: f32[1,128], index: 2, kind: input, shape index: {}]   ;;  %s4642_s3 = inlined_call_operand.hbm [shape: bf16[2,64,128], index: 3, kind: input, shape index: {}]   ;;  %s4643_s4 = inlined_call_operand.hbm [shape: bf16[128,128], index: 4, kind: input, shape index: {}]   ;;  %s4644_s5 = inlined_call_operand.hbm [shape: f32[1,128], index: 5, kind: input, shape index: {}]   ;;  %s4645_s6 = inlined_call_operand.hbm [shape: f32[2,64,128], index: 6, kind: output, shape index: {}]  }
   0x1   :  { %4653 = sst [smem:[#allocation22_spill]] %s4639_s0 }
   0x2   :  { %4654 = sst [smem:[#allocation23_spill]] %s4640_s1 }
   0x3   :  { %4655 = sst [smem:[#allocation24_spill]] %s4641_s2 }
   0x4   :  { %4656 = sst [smem:[#allocation25_spill]] %s4643_s4 }
   0x5   :  { %11 = vsyncpa [#allocation3], 0 }
   0x6   :  { %13 = vsyncpa [#allocation3 + $0x1], 0 }
   0x7   :  { %14 = vsyncpa [#allocation6], 0 }
   0x8   :  { %15 = vsyncpa [#allocation9], 0 }
   0x9   :  { %17 = vsyncpa [#allocation9 + $0x1], 0 }
   0xa   :  { %18 = vsyncpa [#allocation12], 0 }
   0xb   :  { %19 = vsyncpa [#allocation4], 0 }
   0xc   :  { %21 = vsyncpa [#allocation4 + $0x1], 0  ;;  %s3934_s21 = smov 0   ;;  %s3936_s22 = smov 0  }
   0xd   :  { %s3938_s23 = smov 0   ;;  %s3940_s24 = smov 0  }
   0xe   :  { %s3942_s25 = smov 0   ;;  %s3944_s26 = smov 0  }
   0xf LB: > { %4657 = sst [smem:[#allocation20_spill]] %s3866_s21  ;;  %s3965_s27 = sadd.s32 4294967295, %s3886_s26   ;;  %s3886_s26 = sphi %s3944_s26, %s27_s26   ;;  %s3882_s25 = sphi %s3942_s25, %s4692_s25   ;;  %s3878_s24 = sphi %s3940_s24, %s4691_s24   ;;  %s3874_s23 = sphi %s3938_s23, %s4690_s23   ;;  %s3870_s22 = sphi %s3936_s22, %s4689_s22   ;;  %s3866_s21 = sphi %s3934_s21, %s4688_s21  }
  0x10   : > { %s2746_s28 = sadd.s32 4294967294, %s3886_s26   ;;  %p59_p0 = scmp.ne.s32.totalorder %s3870_s22, %s3866_s21 }
  0x11   : > { %p4646_p1 = scmp.eq.s32.totalorder %s3965_s27, 0  ;;  %p203_p3 = scmp.eq.s32.totalorder %s2746_s28, 1 }
  0x12   : > { %p2747_p5 = scmp.ge.s32.totalorder %s3886_s26, 1  ;;  %p210_p7 = scmp.lt.s32.totalorder %s3886_s26, 3 }
  0x13   : > { %p3974_p4 = por %p4646_p1, %p59_p0  ;;  %p3979_p6 = por %p203_p3, %p59_p0 }
  0x14   : > { %p3984_p8 = pnand %p2747_p5, %p210_p7  ;;  %s3888_s8 = smov [#allocation5]  }
  0x15   : > { %s4658_s29 = scalar_select %p3974_p4, 1, 0 }
  0x16   : > { %s4659_s30 = scalar_select %p3979_p6, 1, 0 }
  0x17   : > { %s4661_s7 = scalar_select %p3984_p8, 1, 0 }
  0x18   : > { %4660 = sst [smem:[#allocation21_spill]] %s4659_s30  ;;  %s222_s9 = sshll.u32 %s3888_s8, 4  ;;  %s3988_s9 = int_to_ptr.vmem [resolvable:$true] %s222_s9 }
  0x19   : > { %p3430_p9 = pneg %p3984_p8  ;;  %s3889_s11 = smov [#allocation10]  }
  0x1a   : > { %s246_s12 = sshll.u32 %s3889_s11, 4  ;;  %s3890_s13 = smov [#allocation7]   ;;  %s3999_s12 = int_to_ptr.vmem [resolvable:$true] %s246_s12 }
  0x1b   : > { %p3995_p11 = pnand %p3430_p9, %p4646_p1  ;;  %s4001_s14 = sshll.u32 %s3890_s13, 4  ;;  %s237_s14 = int_to_ptr.vmem [resolvable:$true] %s4001_s14 }
  0x1c   : > { %s4663_s1 = sld [smem:[#allocation23_spill]] }
  0x1d   : > { %p4011_p13 = pneg %p3995_p11 }
  0x22   : > { %s3616_s17 = scalar_lea.hbm %s4663_s1, 9216 }
  0x23   : > { %p3617_p12 = scmp.ne.s32.totalorder %s4663_s1, %s3616_s17  ;;  %p3623_p5 = scmp.lt.u32.totalorder %s3616_s17, %s4663_s1 }
  0x25   : > { %p3619_p0 = pnand %p4011_p13, %p3617_p12 }
  0x27   : > { %p3620_p3 = pneg %p3619_p0 }
  0x29   : > { %p3625_p7 = pnand %p3623_p5, %p3620_p3 }
  0x2b   : > { %3628 = shalt.err (!%p3625_p7)
}
  0x2c   : > { %s3629_s11 = scalar_lea.vmem %s3988_s9, 9216  ;;  %p3637_p2 = scmp.lt.s32.totalorder %s3988_s9, %s3988_s9 }
  0x2d   : > { %p3630_p9 = scmp.ne.s32.totalorder %s3988_s9, %s3629_s11  ;;  %p3638_p6 = scmp.lt.s32.totalorder %s3629_s11, %s3629_s11 }
  0x2f   : > { %p3632_p10 = pnand %p3630_p9, %p4011_p13  ;;  %p3639_p12 = por %p3638_p6, %p3637_p2 }
  0x31   : > { %p3633_p1 = pneg %p3632_p10 }
  0x33   : > { %p3640_p0 = pnand %p3639_p12, %p3633_p1 }
  0x35   : > { %3643 = shalt.err (!%p3640_p0)
}
  0x36   : > { %s4651_s13 = smov 64   ;;  %s3892_s15 = smov 4  }
  0x37   : > { %3433 = dma.hbm_to_vmem [thread:$0]  (!%p3995_p11), %s4663_s1, 9216, %s3988_s9, [#allocation6], %s4651_s13, %s4651_s13, %s3892_s15  }
  0x38   : > { %s4665_s4 = sld [smem:[#allocation25_spill]] }
  0x3e   : > { %s3644_s28 = scalar_lea.hbm %s4665_s4, 1024 }
  0x3f   : > { %p3645_p1 = scmp.ne.s32.totalorder %s4665_s4, %s3644_s28  ;;  %p3651_p10 = scmp.lt.u32.totalorder %s3644_s28, %s4665_s4 }
  0x41   : > { %p3647_p2 = pnand %p3645_p1, %p4011_p13 }
  0x43   : > { %p3648_p6 = pneg %p3647_p2 }
  0x45   : > { %p3653_p3 = pnand %p3651_p10, %p3648_p6 }
  0x47   : > { %3656 = shalt.err (!%p3653_p3)
}
  0x48   : > { %s3657_s9 = scalar_lea.vmem %s3999_s12, 1024  ;;  %p3665_p12 = scmp.lt.s32.totalorder %s3999_s12, %s3999_s12 }
  0x49   : > { %p3658_p5 = scmp.ne.s32.totalorder %s3999_s12, %s3657_s9  ;;  %p3666_p0 = scmp.lt.s32.totalorder %s3657_s9, %s3657_s9 }
  0x4b   : > { %p3660_p7 = pnand %p3658_p5, %p4011_p13  ;;  %p3667_p1 = por %p3666_p0, %p3665_p12 }
  0x4d   : > { %p3661_p9 = pneg %p3660_p7 }
  0x4f   : > { %p3668_p2 = pnand %p3667_p1, %p3661_p9 }
  0x51   : > { %3671 = shalt.err (!%p3668_p2)
}
  0x52   : > { %3439 = dma.hbm_to_vmem [thread:$0]  (!%p3995_p11), %s4665_s4, 1024, %s3999_s12, [#allocation9], %s4651_s13, %s4651_s13, %s3892_s15  }
  0x53   : > { %s4666_s2 = sld [smem:[#allocation24_spill]] }
  0x59   : > { %s3672_s18 = scalar_lea.hbm %s4666_s2, 16 }
  0x5a   : > { %p3673_p6 = scmp.ne.s32.totalorder %s4666_s2, %s3672_s18  ;;  %p3679_p5 = scmp.lt.u32.totalorder %s3672_s18, %s4666_s2 }
  0x5c   : > { %p3675_p10 = pnand %p3673_p6, %p4011_p13 }
  0x5e   : > { %p3676_p3 = pneg %p3675_p10 }
  0x60   : > { %p3681_p7 = pnand %p3679_p5, %p3676_p3 }
  0x62   : > { %3684 = shalt.err (!%p3681_p7)
}
  0x63   : > { %s3685_s9 = scalar_lea.vmem %s237_s14, 16  ;;  %s3692_s12 = scalar_lea.vmem %s237_s14, 32 }
  0x64   : > { %p3686_p9 = scmp.ne.s32.totalorder %s237_s14, %s3685_s9  ;;  %p3693_p1 = scmp.lt.s32.totalorder %s237_s14, %s237_s14 }
  0x65   : > { %p3694_p2 = scmp.lt.s32.totalorder %s3692_s12, %s3685_s9 }
  0x66   : > { %p3688_p12 = pnand %p3686_p9, %p4011_p13 }
  0x67   : > { %p3695_p4 = por %p3694_p2, %p3693_p1 }
  0x68   : > { %p3689_p0 = pneg %p3688_p12 }
  0x6a   : > { %p3696_p8 = pnand %p3695_p4, %p3689_p0 }
  0x6c   : > { %3699 = shalt.err (!%p3696_p8)
}
  0x6d   : > { %3436 = dma.hbm_to_vmem [thread:$0]  (!%p3995_p11), %s4666_s2, 16, %s237_s14, [#allocation6]  }
  0x6e   : > { %s3893_s16 = smov [#allocation11]   ;;  %s3700_s28 = scalar_lea.hbm %s4644_s5, 16 }
  0x6f   : > { %s260_s17 = sshll.u32 %s3893_s16, 4  ;;  %p3701_p6 = scmp.ne.s32.totalorder %s4644_s5, %s3700_s28  ;;  %s261_s17 = int_to_ptr.vmem [resolvable:$true] %s260_s17 }
  0x70   : > { %p3707_p10 = scmp.lt.u32.totalorder %s3700_s28, %s4644_s5 }
  0x71   : > { %p3703_p4 = pnand %p3701_p6, %p4011_p13 }
  0x73   : > { %p3704_p8 = pneg %p3703_p4 }
  0x75   : > { %p3709_p3 = pnand %p3707_p10, %p3704_p8 }
  0x77   : > { %3712 = shalt.err (!%p3709_p3)
}
  0x78   : > { %s3713_s14 = scalar_lea.vmem %s261_s17, 16  ;;  %s3720_s21 = scalar_lea.vmem %s261_s17, 32 }
  0x79   : > { %p3714_p5 = scmp.ne.s32.totalorder %s261_s17, %s3713_s14  ;;  %p3721_p12 = scmp.lt.s32.totalorder %s261_s17, %s261_s17 }
  0x7a   : > { %p3722_p0 = scmp.lt.s32.totalorder %s3720_s21, %s3713_s14 }
  0x7b   : > { %p3716_p7 = pnand %p3714_p5, %p4011_p13 }
  0x7c   : > { %p3723_p1 = por %p3722_p0, %p3721_p12 }
  0x7d   : > { %p3717_p9 = pneg %p3716_p7 }
  0x7f   : > { %p3724_p2 = pnand %p3723_p1, %p3717_p9 }
  0x81   : > { %3727 = shalt.err (!%p3724_p2)
}
  0x82   : > { %3442 = dma.hbm_to_vmem [thread:$0]  (!%p3995_p11), %s4644_s5, 16, %s261_s17, [#allocation12]  }
  0x83   : > { %s39_s20 = sadd.s32 1, %s3882_s25  ;;  %s46_s18 = sadd.s32 1, %s3874_s23 }
  0x84   : > { %p41_p13 = scmp.ge.s32.totalorder %s39_s20, 2  ;;  %p53_p6 = scmp.ne.s32.totalorder %s3874_s23, %s3870_s22 }
  0x85   : > { %p54_p4 = scmp.eq.s32.totalorder %s3886_s26, 0  ;;  %p3458_p8 = scmp.lt.s32.totalorder %s3886_s26, 2 }
  0x86   : > { %s4694_s20 = smov (%p41_p13, %s39_s20), 0  ;;  %p4667_p3 = scmp.eq.s32.totalorder %s3965_s27, 1 }
  0x87   : > { %p55_p10 = por %p54_p4, %p53_p6  ;;  %s43_s19 = ssub.s32 %s3882_s25, %s4694_s20 }
  0x88   : > { %p4108_p5 = por %p4667_p3, %p53_p6  ;;  %s4115_s28 = sand.u32 1, %s3874_s23  }
  0x89   : > { %p44_p11 = scmp.eq.s32.totalorder %s43_s19, 0  ;;  %s3405_s17 = smul.u32 80, %s4115_s28 }
  0x8a   : > { %p4118_p7 = pnand %p3458_p8, %p55_p10  ;;  %s3406_s9 = smul.u32 1280, %s3882_s25 }
  0x8b   : > { %s4123_s11 = scalar_select %p44_p11, %s3874_s23, %s46_s18  }
  0x8c   : > { %s275_s12 = scalar_lea.vmem [#allocation2], %s3405_s17  ;;  %s4670_s0 = sld [smem:[#allocation22_spill]] }
  0x8d   : > { %s282_s14 = sshll.u32 %s275_s12, 4  ;;  %s272_s19 = scalar_lea.sflag [#allocation3], %s4115_s28  ;;  %s4131_s14 = int_to_ptr.vmem [resolvable:$true] %s282_s14 }
  0x8e   : > { %p3730_p12 = pneg %p4118_p7 }
  0x92   : > { %s4129_s16 = scalar_lea.hbm %s4670_s0, %s3406_s9  ;;  %s3733_s9 = scalar_lea.hbm %s4670_s0, 2560 }
  0x93   : > { %s3728_s13 = scalar_lea.hbm %s4129_s16, 1280  ;;  %p3734_p2 = scmp.lt.u32.totalorder %s4129_s16, %s4670_s0 }
  0x94   : > { %p3729_p9 = scmp.ne.s32.totalorder %s4129_s16, %s3728_s13  ;;  %p3735_p13 = scmp.lt.u32.totalorder %s3733_s9, %s3728_s13 }
  0x95   : > { %p3737_p4 = scmp.lt.u32.totalorder %s3728_s13, %s4129_s16 }
  0x96   : > { %p3731_p0 = pnand %p3730_p12, %p3729_p9  ;;  %p3736_p6 = por %p3735_p13, %p3734_p2 }
  0x98   : > { %p3732_p1 = pneg %p3731_p0  ;;  %p3738_p8 = por %p3737_p4, %p3736_p6 }
  0x9a   : > { %p3739_p10 = pnand %p3738_p8, %p3732_p1 }
  0x9c   : > { %3742 = shalt.err (!%p3739_p10)
}
  0x9d   : > { %s3743_s30 = scalar_lea.vmem %s4131_s14, 1280  ;;  %s3894_s18 = smov [#allocation2]  }
  0x9e   : > { %p3744_p3 = scmp.ne.s32.totalorder %s4131_s14, %s3743_s30  ;;  %s3748_s17 = sshll.u32 %s3894_s18, 4  ;;  %s3749_s17 = int_to_ptr.vmem [resolvable:$false] %s3748_s17 }
  0x9f   : > { %s3750_s12 = scalar_lea.vmem %s3749_s17, 2560  ;;  %p3751_p0 = scmp.lt.s32.totalorder %s4131_s14, %s3749_s17 }
  0xa0   : > { %p3746_p11 = pnand %p3744_p3, %p3730_p12  ;;  %p3752_p2 = scmp.lt.s32.totalorder %s3750_s12, %s3743_s30 }
  0xa2   : > { %p3747_p9 = pneg %p3746_p11  ;;  %p3753_p13 = por %p3752_p2, %p3751_p0 }
  0xa4   : > { %p3754_p6 = pnand %p3753_p13, %p3747_p9 }
  0xa6   : > { %3757 = shalt.err (!%p3754_p6)
}
  0xa7   : > { %s4671_s13 = smov 64   ;;  %s292_s9 = sand.u32 1, %s3886_s26  }
  0xa8   : > { %3446 = dma.hbm_to_vmem [thread:$0]  (!%p4118_p7), %s4129_s16, 1280, %s4131_s14, %s272_s19, %s4671_s13, %s4671_s13, %s3892_s15  }
  0xa9   : > { %s2754_s21 = sshll.u32 %s4115_s28, 5  ;;  %s2979_s30 = sshll.u32 %s3882_s25, 9 }
  0xaa   : > { %s296_s18 = scalar_lea.vmem [#allocation8], %s2754_s21  ;;  %s4170_s1 = scalar_lea.hbm %s4642_s3, %s2979_s30 }
  0xab   : > { %s305_s17 = sshll.u32 %s296_s18, 4  ;;  %s4174_s2 = scalar_lea.sflag [#allocation9], %s292_s9  ;;  %s4172_s17 = int_to_ptr.vmem [resolvable:$true] %s305_s17 }
  0xac   : > { %s3758_s4 = scalar_lea.hbm %s4170_s1, 512  ;;  %s3763_s0 = scalar_lea.hbm %s4642_s3, 1024 }
  0xad   : > { %p3759_p1 = scmp.ne.s32.totalorder %s4170_s1, %s3758_s4  ;;  %p3764_p10 = scmp.lt.u32.totalorder %s4170_s1, %s4642_s3 }
  0xae   : > { %p3765_p3 = scmp.lt.u32.totalorder %s3763_s0, %s3758_s4  ;;  %p3767_p9 = scmp.lt.u32.totalorder %s3758_s4, %s4170_s1 }
  0xaf   : > { %p3761_p4 = pnand %p3759_p1, %p3730_p12 }
  0xb0   : > { %p3766_p11 = por %p3765_p3, %p3764_p10 }
  0xb1   : > { %p3762_p8 = pneg %p3761_p4 }
  0xb2   : > { %p3768_p0 = por %p3767_p9, %p3766_p11 }
  0xb4   : > { %p3769_p2 = pnand %p3768_p0, %p3762_p8 }
  0xb6   : > { %3772 = shalt.err (!%p3769_p2)
}
  0xb7   : > { %s3773_s9 = scalar_lea.vmem %s4172_s17, 512  ;;  %s3895_s21 = smov [#allocation8]  }
  0xb8   : > { %p3774_p13 = scmp.ne.s32.totalorder %s4172_s17, %s3773_s9  ;;  %s3778_s30 = sshll.u32 %s3895_s21, 4  ;;  %s3779_s30 = int_to_ptr.vmem [resolvable:$false] %s3778_s30 }
  0xb9   : > { %s3780_s18 = scalar_lea.vmem %s3779_s30, 1024  ;;  %p3781_p4 = scmp.lt.s32.totalorder %s4172_s17, %s3779_s30 }
  0xba   : > { %p3776_p6 = pnand %p3774_p13, %p3730_p12  ;;  %p3782_p10 = scmp.lt.s32.totalorder %s3780_s18, %s3773_s9 }
  0xbc   : > { %p3777_p1 = pneg %p3776_p6  ;;  %p3783_p3 = por %p3782_p10, %p3781_p4 }
  0xbe   : > { %p3784_p11 = pnand %p3783_p3, %p3777_p1 }
  0xc0   : > { %3787 = shalt.err (!%p3784_p11)
}
  0xc1   : > { %3449 = dma.hbm_to_vmem [thread:$0]  (!%p4118_p7), %s4170_s1, 512, %s4172_s17, %s4174_s2, %s4671_s13, %s4671_s13, %s3892_s15  }
  0xc2   : > { %p4672_p12 = scmp.ne.s32.totalorder %s4661_s7, 0 }
  0xc3   : > { %s4206_s4 = sand.u32 (!%p4672_p12), 1, %s3870_s22   ;;  %p4673_p8 = scmp.ne.s32.totalorder (!%p4672_p12), %s4658_s29, 0 }
  0xc4   : > { %317 = sbr.rel (%p4672_p12) target bundleno = 624 (0x270), region = 44  ;;  %s320_s28 = scalar_lea.sflag (!%p4672_p12), [#allocation3], %s4206_s4 }
  0xc5   : > { %s3407_s12 = smul.u32 (!%p4672_p12), 80, %s4206_s4 }
  0xc7   : > { %s4210_s14 = scalar_lea.vmem (!%p4672_p12), [#allocation2], %s3407_s12 }
  0xcb   : > { %3841 = dma.done.wait (%p4673_p8), %s320_s28, 1280  }
  0xcc   : > { %3843 = vsyncadd (%p4673_p8), %s320_s28, 4294966016  ;;  %p4674_p7 = scmp.eq.s32.totalorder %s3965_s27, 0 }
  0xce   : > { %3845 = dma.done.wait (%p4674_p7), [#allocation6], 9232   ;;  %p4675_p9 = pmov %p4674_p7 }
  0xcf   : > { %s336_s1 = sand.u32 1, %s3965_s27   ;;  %s2760_s2 = sshll.u32 %s4206_s4, 5 }
  0xd0   : > { %3847 = vsyncadd (%p4675_p9), [#allocation6], 4294958064  ;;  %s337_s7 = scalar_lea.sflag [#allocation9], %s336_s1  ;;  %s4222_s15 = scalar_lea.vmem [#allocation8], %s2760_s2 }
  0xd1   : > { %3849 = dma.done.wait (%p4673_p8), %s337_s7, 512  }
  0xd2   : > { %3851 = vsyncadd (%p4673_p8), %s337_s7, 4294966784  ;;  %p4676_p0 = pmov %p4674_p7 }
  0xd4   : > { %3853 = dma.done.wait (%p4676_p0), [#allocation9], 1024   ;;  %p4677_p2 = pmov %p4676_p0 }
  0xd5   : > { %p4678_p13 = pmov %p4676_p0 }
  0xd6   : > { %3855 = vsyncadd (%p4677_p2), [#allocation9], 4294966272 }
  0xd7   : > { %3857 = dma.done.wait (%p4678_p13), [#allocation12], 16   ;;  %p4679_p6 = pmov %p4676_p0 }
  0xd8   : > { %v3520_v0 = vld [vmem:[#allocation5 + $0x40] sm:$0xff]   ;;  %v3522_v2 = vld [vmem:[#allocation5 + $0x48] sm:$0xff]   ;;  %v3524_v4 = vld [vmem:[#allocation5 + $0x50] sm:$0xff]   ;;  %vm421_vm0 = vsmask.f32 3328  ;;  %vm843_vm3 = vcmask 1042432  }
  0xd9   : > { %3859 = vsyncadd (%p4679_p6), [#allocation12], 4294967280  ;;  %v3521_v1 = vld [vmem:[#allocation5 + $0x100] sm:$0xff]   ;;  %3101 = vmatprep.subr.bf16.mxu1 %v3520_v0  ;;  %v3523_v3 = vld [vmem:[#allocation5 + $0x108] sm:$0xff]   ;;  %vm422_vm1 = vsmask.f32 7440 }
  0xda   : > { %3197 = vmatprep.subr.bf16.mxu0 %v3521_v1  ;;  %3102 = vmatpush3.bf16.msra.mxu1 %v3520_v0  ;;  %v3525_v5 = vld [vmem:[#allocation5 + $0x110] sm:$0xff]   ;;  %v3526_v6 = vld [vmem:[#allocation5 + $0x58] sm:$0xff]   ;;  %v3528_v8 = vld [vmem:[#allocation5 + $0x60] sm:$0xff]   ;;  %vm844_vm4 = vcmask 1046532   ;;  %s2763_s27 = sshll.u32 %s4206_s4, 6  ;;  %s2980_s13 = sshll.u32 %s3878_s24, 10 }
  0xdb   : > { %3198 = vmatpush3.bf16.msra.mxu0 %v3521_v1  ;;  %3103 = vmatprep.subr.bf16.mxu1 %v3522_v2  ;;  %v3527_v7 = vld [vmem:[#allocation5 + $0x118] sm:$0xff]   ;;  %v3529_v9 = vld [vmem:[#allocation5 + $0x120] sm:$0xff]   ;;  %v3530_v10 = vld [vmem:[#allocation5 + $0x68] sm:$0xff]   ;;  %s4573_s29 = scalar_lea.vmem [#allocation13], %s2763_s27  ;;  %s4587_s16 = scalar_lea.hbm %s4645_s6, %s2980_s13 }
  0xdc   : > { %3199 = vmatprep.subr.bf16.mxu0 %v3523_v3  ;;  %v3531_v11 = vld [vmem:[#allocation5 + $0x128] sm:$0xff]   ;;  %v4237_v12 = vld [vmem:[%s4210_s14] sm:$0xf]  ;;  %v4243_v14 = vld [vmem:[%s4210_s14 + $0x4] sm:$0x1]  ;;  %s2587_s8 = sshll.u32 %s4573_s29, 4  ;;  %s4581_s8 = int_to_ptr.vmem [resolvable:$true] %s2587_s8 }
  0xdd   : > { %v4240_v13 = vld [vmem:[%s4210_s14 + $0x8] sm:$0xf]  ;;  %v4246_v15 = vld [vmem:[%s4210_s14 + $0xc] sm:$0x1]  ;;  %v425_v16 = vshrl.u32 %v4237_v12, 16  ;;  %v428_v17 = vshll.u32 %v4237_v12, 16  ;;  %vm4264_vm2 = vmor %vm421_vm0, %vm422_vm1 }
  0xde   : > { %3104 = vmatpush3.bf16.msra.mxu1 %v3522_v2  ;;  %v434_v18 = vshll.u32 %v4243_v14, 16  ;;  %v439_v19 = vshrl.u32 %v4240_v13, 16  ;;  %v442_v20 = vshll.u32 %v4240_v13, 16  ;;  %v448_v21 = vshll.u32 %v4246_v15, 16  ;;  %v3532_v22 = vld [vmem:[#allocation5 + $0x70] sm:$0xff]   ;;  %v3534_v44 = vld [vmem:[#allocation5 + $0x78] sm:$0xff]   ;;  %vm4390_vm5 = vmor %vm843_vm3, %vm844_vm4 }
  0xdf   : > { %3200 = vmatpush3.bf16.msra.mxu0 %v3523_v3  ;;  %3105 = vmatprep.subr.bf16.mxu1 %v3524_v4  ;;  %v427_v23 = vrot.slane %v425_v16, 4  ;;  %v430_v24 = vrot.slane %v428_v17, 5  ;;  %v3533_v26 = vld [vmem:[#allocation5 + $0x130] sm:$0xff]   ;;  %v2828_v30 = vld [vmem:[%s4210_s14 + $0x8] sm:$0xf]  ;;  %v3536_v61 = vld [vmem:[#allocation5] sm:$0xff]  }
  0xe0   : > { %3201 = vmatprep.subr.bf16.mxu0 %v3525_v5  ;;  %v441_v25 = vrot.slane %v439_v19, 4  ;;  %v436_v27 = vrot.slane %v434_v18, 5  ;;  %v444_v28 = vrot.slane %v442_v20, 5  ;;  %v450_v29 = vrot.slane %v448_v21, 5  ;;  %v4256_v32 = vld [vmem:[%s4210_s14 + $0xc] sm:$0x1] }
  0xe1   : > { %v431_v31 = vor.u32 %v430_v24, %v427_v23  ;;  %v2830_v33 = vld [vmem:[%s4210_s14 + $0x10] sm:$0xf]  ;;  %v4260_v34 = vld [vmem:[%s4210_s14 + $0x14] sm:$0x1]  ;;  %v1223_v37 = vshrl.u32 %v2828_v30, 16  ;;  %v1226_v38 = vshll.u32 %v2828_v30, 16 }
  0xe2   : > { %3106 = vmatpush3.bf16.msra.mxu1 %v3524_v4  ;;  %v445_v36 = vor.u32 %v444_v28, %v441_v25  ;;  %v1232_v39 = vshll.u32 %v4256_v32, 16  ;;  %v1237_v41 = vshrl.u32 %v2830_v33, 16  ;;  %v1240_v42 = vshll.u32 %v2830_v33, 16  ;;  %v4271_v48 = vld [vmem:[%s4210_s14 + $0x10] sm:$0xf]  ;;  %v3535_v49 = vld [vmem:[#allocation5 + $0x138] sm:$0xff]  }
  0xe3   : > { %3202 = vmatpush3.bf16.msra.mxu0 %v3525_v5  ;;  %3107 = vmatprep.subr.bf16.mxu1 %v3526_v6  ;;  %v432_v40 = vrot.slane %v431_v31, 4  ;;  %v1246_v43 = vshll.u32 %v4260_v34, 16  ;;  %v1225_v46 = vrot.slane %v1223_v37, 4  ;;  %v1228_v47 = vrot.slane %v1226_v38, 5  ;;  %v4276_v53 = vld [vmem:[%s4210_s14 + $0x18] sm:$0xf] }
  0xe4   : > { %3203 = vmatprep.subr.bf16.mxu0 %v3527_v7  ;;  %v446_v45 = vrot.slane %v445_v36, 4  ;;  %v1239_v51 = vrot.slane %v1237_v41, 4  ;;  %v1242_v52 = vrot.slane %v1240_v42, 5  ;;  %v1234_v56 = vrot.slane %v1232_v39, 5  ;;  %v4281_v58 = vld [vmem:[%s4210_s14 + $0x14] sm:$0x1] }
  0xe5   : > { %v437_v50 = vsel %vm4264_vm2, %v432_v40, %v436_v27  ;;  %v1229_v55 = vor.u32 %v1228_v47, %v1225_v46  ;;  %v1248_v57 = vrot.slane %v1246_v43, 5  ;;  %v4284_v59 = vld [vmem:[%s4210_s14 + $0x1c] sm:$0x1]  ;;  %v4286_v63 = vld [vmem:[#allocation5 + $0x140] sm:$0xff]   ;;  %v453_v0 = vshrl.u32 %v4271_v48, 16  ;;  %s2572_s24 = scalar_lea.sflag [#allocation4], %s4206_s4 }
  0xe6   : > { %3108 = vmatpush3.bf16.msra.mxu1 %v3526_v6  ;;  %v451_v54 = vsel %vm4264_vm2, %v446_v45, %v450_v29  ;;  %v1243_v62 = vor.u32 %v1242_v52, %v1239_v51  ;;  %v456_v1 = vshll.u32 %v4271_v48, 16  ;;  %v2832_v2 = vld [vmem:[%s4210_s14 + $0x18] sm:$0xf]  ;;  %v462_v4 = vshll.u32 %v4281_v58, 16  ;;  %v2834_v16 = vld [vmem:[%s4210_s14 + $0x20] sm:$0xf] }
  0xe7   : > { %3204 = vmatpush3.bf16.msra.mxu0 %v3527_v7  ;;  %3109 = vmatprep.subr.bf16.mxu1 %v3528_v8  ;;  %v2764_v60 = vcombine.low %v437_v50, %v451_v54  ;;  %v1230_v3 = vrot.slane %v1229_v55, 4  ;;  %v467_v5 = vshrl.u32 %v4276_v53, 16  ;;  %v470_v6 = vshll.u32 %v4276_v53, 16  ;;  %v4295_v7 = vld [vmem:[%s4210_s14 + $0x1c] sm:$0x1]  ;;  %s3788_s19 = scalar_lea.vmem %s4581_s8, 1024 }
  0xe8   : > { %3205 = vmatprep.subr.bf16.mxu0 %v3529_v9  ;;  %v4302_v20 = vld [vmem:[%s4210_s14 + $0x24] sm:$0x1]  ;;  %v464_v23 = vrot.slane %v462_v4, 5  ;;  %v1251_v27 = vshrl.u32 %v2832_v2, 16  ;;  %v1254_v29 = vshll.u32 %v2832_v2, 16  ;;  %v1260_v30 = vshll.u32 %v4295_v7, 16  ;;  %p3789_p1 = scmp.ne.s32.totalorder %s4581_s8, %s3788_s19 }
  0xe9   : > { %3117 = vmatprep.mubr.bf16.mxu1 %v2764_v60  ;;  %v1235_v17 = vsel %vm4264_vm2, %v1230_v3, %v1234_v56  ;;  %v469_v18 = vrot.slane %v467_v5, 4  ;;  %v472_v19 = vrot.slane %v470_v6, 5  ;;  %v1265_v31 = vshrl.u32 %v2834_v16, 16  ;;  %v3539_v55 = vld [vmem:[#allocation5 + $0x148] sm:$0xff]   ;;  %v3540_v56 = vld [vmem:[#allocation5 + $0x10] sm:$0xff]   ;;  %s3896_s9 = smov [#allocation13]  }
  0xea   : > { %3110 = vmatpush3.bf16.msra.mxu1 %v3528_v8  ;;  %v1244_v8 = vrot.slane %v1243_v62, 4  ;;  %v1253_v36 = vrot.slane %v1251_v27, 4  ;;  %v1268_v37 = vshll.u32 %v2834_v16, 16  ;;  %v1274_v38 = vshll.u32 %v4302_v20, 16  ;;  %v4329_v3 = vld [vmem:[%s4210_s14 + $0x2c] sm:$0x1]  ;;  %p3790_p4 = pnand %p3789_p1, %p4108_p5 }
  0xeb   : > { %3206 = vmatpush3.bf16.msra.mxu0 %v3529_v9  ;;  %3111 = vmatprep.subr.bf16.mxu1 %v3530_v10  ;;  %v455_v9 = vrot.slane %v453_v0, 4  ;;  %v473_v25 = vor.u32 %v472_v19, %v469_v18  ;;  %v1256_v40 = vrot.slane %v1254_v29, 5  ;;  %v1267_v41 = vrot.slane %v1265_v31, 4  ;;  %v4320_v0 = vld [vmem:[%s4210_s14 + $0x20] sm:$0xf]  ;;  %v3542_v16 = vld [vmem:[#allocation5 + $0x18] sm:$0xff]  }
  0xec   : > { %3207 = vmatprep.subr.bf16.mxu0 %v3531_v11  ;;  %v1249_v21 = vsel %vm4264_vm2, %v1244_v8, %v1248_v57  ;;  %v1270_v43 = vrot.slane %v1268_v37, 5  ;;  %v1262_v47 = vrot.slane %v1260_v30, 5  ;;  %v1514_v57 = vrot.slane %v4256_v32, 5  ;;  %v2838_v27 = vld [vmem:[%s4210_s14 + $0x30] sm:$0xf]  ;;  %p3791_p10 = pneg %p3790_p4  ;;  %s3792_s21 = sshll.u32 %s3896_s9, 4  ;;  %s3793_s21 = int_to_ptr.vmem [resolvable:$false] %s3792_s21 }
  0xed   : > { %v2844_v24 = vcombine.low %v1235_v17, %v1249_v21  ;;  %v474_v33 = vrot.slane %v473_v25, 4  ;;  %v1257_v46 = vor.u32 %v1256_v40, %v1253_v36  ;;  %v1518_v60 = vrot.slane %v4260_v34, 5  ;;  %v3544_v29 = vld [vmem:[#allocation5 + $0x20] sm:$0xff]   ;;  %v3543_v36 = vld [vmem:[#allocation5 + $0x158] sm:$0xff]   ;;  %s3794_s30 = scalar_lea.vmem %s3793_s21, 2048  ;;  %p3795_p3 = scmp.lt.s32.totalorder %s4581_s8, %s3793_s21 }
  0xee   : > { %3112 = vmatpush3.bf16.msra.mxu1 %v3530_v10  ;;  %v458_v10 = vrot.slane %v456_v1, 5  ;;  %v1271_v50 = vor.u32 %v1270_v43, %v1267_v41  ;;  %v4323_v1 = vld [vmem:[%s4210_s14 + $0x28] sm:$0xf]  ;;  %v481_v4 = vshrl.u32 %v4320_v0, 16  ;;  %v484_v5 = vshll.u32 %v4320_v0, 16  ;;  %p3796_p11 = scmp.lt.s32.totalorder %s3794_s30, %s3788_s19 }
  0xef   : > { %3208 = vmatpush3.bf16.msra.mxu0 %v3531_v11  ;;  %3113 = vmatprep.subr.bf16.mxu1 %v3532_v22  ;;  %v476_v11 = vshll.u32 %v4284_v59, 16  ;;  %v1258_v51 = vrot.slane %v1257_v46, 4  ;;  %v495_v8 = vshrl.u32 %v4323_v1, 16  ;;  %v3546_v46 = vld [vmem:[#allocation5 + $0x28] sm:$0xff]   ;;  %v1526_v32 = vrot.slane %v4302_v20, 5 }
  0xf0   : > { %3209 = vmatprep.subr.bf16.mxu0 %v3533_v26  ;;  %3213 = vmatprep.mubr.bf16.mxu0 %v2844_v24  ;;  %v1272_v52 = vrot.slane %v1271_v50, 4  ;;  %v483_v17 = vrot.slane %v481_v4, 4  ;;  %v486_v18 = vrot.slane %v484_v5, 5  ;;  %v2836_v24 = vld [vmem:[%s4210_s14 + $0x28] sm:$0xf]  ;;  %v3545_v5 = vld [vmem:[#allocation5 + $0x160] sm:$0xff]   ;;  %p3797_p12 = por %p3796_p11, %p3795_p3 }
  0xf1   : > { %v1263_v54 = vsel %vm4264_vm2, %v1258_v51, %v1262_v47  ;;  %v497_v21 = vrot.slane %v495_v8, 4  ;;  %v1279_v31 = vshrl.u32 %v2836_v24, 16 }
  0xf2   : > { %3114 = vmatpush3.bf16.msra.mxu1 %v3532_v22  ;;  %v459_v22 = vor.u32 %v458_v10, %v455_v9  ;;  %v498_v9 = vshll.u32 %v4323_v1, 16  ;;  %v504_v10 = vshll.u32 %v4329_v3, 16  ;;  %v487_v25 = vor.u32 %v486_v18, %v483_v17  ;;  %v4370_v17 = vld [vmem:[%s4210_s14 + $0x3c] sm:$0x1]  ;;  %p3798_p8 = pnand %p3797_p12, %p3791_p10 }
  0xf3   : > { %3210 = vmatpush3.bf16.msra.mxu0 %v3533_v26  ;;  %3115 = vmatprep.subr.bf16.mxu1 %v3534_v44  ;;  %v478_v26 = vrot.slane %v476_v11, 5  ;;  %v3541_v11 = vld [vmem:[#allocation5 + $0x150] sm:$0xff]  }
  0xf4   : > { %3211 = vmatprep.subr.bf16.mxu0 %v3535_v49  ;;  %v460_v28 = vrot.slane %v459_v22, 4  ;;  %v500_v22 = vrot.slane %v498_v9, 5  ;;  %v488_v37 = vrot.slane %v487_v25, 4 }
  0xf5   : > { %v479_v42 = vsel %vm4264_vm2, %v474_v33, %v478_v26  ;;  %v4340_v26 = vld [vmem:[%s4210_s14 + $0x2c] sm:$0x1]  ;;  %v1282_v33 = vshll.u32 %v2836_v24, 16 }
  0xf6   : > { %3116 = vmatpush3.bf16.msra.mxu1 %v3534_v44  ;;  %v465_v39 = vsel %vm4264_vm2, %v460_v28, %v464_v23  ;;  %v3538_v44 = vld [vmem:[#allocation5 + $0x8] sm:$0xff]   ;;  %v506_v23 = vrot.slane %v504_v10, 5  ;;  %v4344_v28 = vld [vmem:[%s4210_s14 + $0x34] sm:$0x1]  ;;  %v501_v30 = vor.u32 %v500_v22, %v497_v21 }
  0xf7   : > { %3212 = vmatpush3.bf16.msra.mxu0 %v3535_v49  ;;  %3125 = vmatprep.subr.bf16.mxu1 %v3536_v61  ;;  %v2765_v45 = vcombine.low %v465_v39, %v479_v42  ;;  %v1276_v49 = vrot.slane %v1274_v38, 5  ;;  %v1293_v38 = vshrl.u32 %v2838_v27, 16  ;;  %v1296_v39 = vshll.u32 %v2838_v27, 16 }
  0xf8   : > { %3221 = vmatprep.subr.bf16.mxu0 %v4286_v63  ;;  %v1302_v40 = vshll.u32 %v4344_v28, 16  ;;  %v502_v41 = vrot.slane %v501_v30, 4  ;;  %v1281_v42 = vrot.slane %v1279_v31, 4  ;;  %v1284_v43 = vrot.slane %v1282_v33, 5  ;;  %v4376_v31 = vld [vmem:[%s4210_s14 + $0x44] sm:$0x1] }
  0xf9   : > { %3118 = vmatmul.mubr.bf16.vlgmr.msra.gmra.mrb[0].mxu1 %v2765_v45  ;;  %v1277_v62 = vsel %vm4264_vm2, %v1272_v52, %v1276_v49  ;;  %v4349_v45 = vld [vmem:[%s4210_s14 + $0x30] sm:$0xf]  ;;  %v1295_v49 = vrot.slane %v1293_v38, 4  ;;  %v1298_v50 = vrot.slane %v1296_v39, 5  ;;  %v4354_v52 = vld [vmem:[%s4210_s14 + $0x38] sm:$0xf] }
  0xfa   : > { %3126 = vmatpush3.bf16.msra.mxu1 %v3536_v61  ;;  %v2845_v2 = vcombine.low %v1263_v54, %v1277_v62  ;;  %v4326_v61 = vld [vmem:[%s4210_s14 + $0x24] sm:$0x1]  ;;  %v1304_v51 = vrot.slane %v1302_v40, 5  ;;  %v507_v54 = vsel %vm4264_vm2, %v502_v41, %v506_v23  ;;  %v4362_v62 = vld [vmem:[%s4210_s14 + $0x3c] sm:$0x1]  ;;  %v512_v4 = vshll.u32 %v4349_v45, 16 }
  0xfb   : > { %3127 = vmatprep.subr.bf16.mxu1 %v3538_v44  ;;  %v490_v6 = vshll.u32 %v4326_v61, 16  ;;  %v1299_v8 = vor.u32 %v1298_v50, %v1295_v49  ;;  %v523_v10 = vshrl.u32 %v4354_v52, 16  ;;  %v526_v22 = vshll.u32 %v4354_v52, 16  ;;  %v2842_v23 = vld [vmem:[%s4210_s14 + $0x40] sm:$0xf]  ;;  %v3547_v38 = vld [vmem:[#allocation5 + $0x168] sm:$0xff]  }
  0xfc   : > { %3214 = vmatmul.mubr.bf16.vlgmr.msra.gmra.mrb[0].mxu0 %v2845_v2  ;;  %v509_v2 = vshrl.u32 %v4349_v45, 16  ;;  %v514_v21 = vrot.slane %v512_v4, 5  ;;  %v532_v30 = vshll.u32 %v4362_v62, 16  ;;  %v3548_v39 = vld [vmem:[#allocation5 + $0x30] sm:$0xff]  }
  0xfd   : > { %3222 = vmatpush3.bf16.msra.mxu0 %v4286_v63  ;;  %v492_v19 = vrot.slane %v490_v6, 5  ;;  %v1288_v63 = vshll.u32 %v4340_v26, 16  ;;  %v1300_v24 = vrot.slane %v1299_v8, 4  ;;  %v525_v27 = vrot.slane %v523_v10, 4  ;;  %v2856_v8 = vld [vmem:[%s4210_s14 + $0x8] sm:$0xe] }
  0xfe   : > { %3128 = vmatpush3.bf16.msra.mxu1 %v3538_v44  ;;  %3223 = vmatprep.subr.bf16.mxu0 %v3539_v55  ;;  %v534_v41 = vrot.slane %v532_v30, 5 }
  0xff   : > { %3129 = vmatprep.subr.bf16.mxu1 %v3540_v56  ;;  %v1290_v44 = vrot.slane %v1288_v63, 5  ;;  %v493_v47 = vsel %vm4264_vm2, %v488_v37, %v492_v19  ;;  %v511_v19 = vrot.slane %v509_v2, 4  ;;  %v528_v63 = vrot.slane %v526_v22, 5 }
 0x100   : > { %v2766_v6 = vcombine.low %v493_v47, %v507_v54  ;;  %v1305_v40 = vsel %vm4264_vm2, %v1300_v24, %v1304_v51  ;;  %v1324_v2 = vshll.u32 %v2842_v23, 16 }
 0x101   : > { %3224 = vmatpush3.bf16.msra.mxu0 %v3539_v55  ;;  %v1285_v55 = vor.u32 %v1284_v43, %v1281_v42  ;;  %v1316_v43 = vshll.u32 %v4370_v17, 16  ;;  %v529_v49 = vor.u32 %v528_v63, %v525_v27 }
 0x102   : > { %3130 = vmatpush3.bf16.msra.mxu1 %v3540_v56  ;;  %3225 = vmatprep.subr.bf16.mxu0 %v3541_v11  ;;  %v4359_v56 = vld [vmem:[%s4210_s14 + $0x34] sm:$0x1] }
 0x103   : > { %3131 = vmatprep.subr.bf16.mxu1 %v3542_v16  ;;  %v518_v9 = vshll.u32 %v4359_v56, 16  ;;  %v1286_v18 = vrot.slane %v1285_v55, 4  ;;  %3121 = vmatprep.mubr.bf16.mxu1 %v2766_v6  ;;  %v1318_v54 = vrot.slane %v1316_v43, 5  ;;  %v1321_v55 = vshrl.u32 %v2842_v23, 16  ;;  %v3551_v43 = vld [vmem:[#allocation5 + $0x178] sm:$0xff]  }
 0x104   : > { %v530_v4 = vrot.slane %v529_v49, 4  ;;  %v1330_v6 = vshll.u32 %v4376_v31, 16  ;;  %v2776_v23 = vcombine.low %v4237_v12, %v4240_v13  ;;  %v3554_v49 = vld [vmem:[#allocation5 + $0x180] sm:$0xff]  }
 0x105   : > { %3226 = vmatpush3.bf16.msra.mxu0 %v3541_v11  ;;  %v520_v25 = vrot.slane %v518_v9, 5  ;;  %v1291_v33 = vsel %vm4264_vm2, %v1286_v18, %v1290_v44  ;;  %v515_v11 = vor.u32 %v514_v21, %v511_v19  ;;  %v1323_v10 = vrot.slane %v1321_v55, 4  ;;  %v3550_v18 = vld [vmem:[#allocation5 + $0x38] sm:$0xff]   ;;  %v3549_v21 = vld [vmem:[#allocation5 + $0x170] sm:$0xff]  }
 0x106   : > { %3132 = vmatpush3.bf16.msra.mxu1 %v3542_v16  ;;  %v2840_v16 = vld [vmem:[%s4210_s14 + $0x38] sm:$0xf]  ;;  %3227 = vmatprep.subr.bf16.mxu0 %v3543_v36  ;;  %v535_v22 = vsel %vm4264_vm2, %v530_v4, %v534_v41  ;;  %v2861_v55 = vld [vmem:[%s4210_s14 + $0x30] sm:$0xe] }
 0x107   : > { %3133 = vmatprep.subr.bf16.mxu1 %v3544_v29  ;;  %v1307_v37 = vshrl.u32 %v2840_v16, 16  ;;  %v1310_v42 = vshll.u32 %v2840_v16, 16  ;;  %v516_v47 = vrot.slane %v515_v11, 4  ;;  %v1326_v16 = vrot.slane %v1324_v2, 5  ;;  %v2858_v11 = vld [vmem:[%s4210_s14 + $0x18] sm:$0xe] }
 0x108   : > { %v2862_v4 = vld [vmem:[%s4210_s14 + $0x38] sm:$0xe] }
 0x109   : > { %3228 = vmatpush3.bf16.msra.mxu0 %v3543_v36  ;;  %v1309_v44 = vrot.slane %v1307_v37, 4  ;;  %v1312_v50 = vrot.slane %v1310_v42, 5  ;;  %v521_v51 = vsel %vm4264_vm2, %v516_v47, %v520_v25  ;;  %v2857_v36 = vld [vmem:[%s4210_s14 + $0x10] sm:$0xe]  ;;  %v1327_v30 = vor.u32 %v1326_v16, %v1323_v10  ;;  %v2859_v37 = vld [vmem:[%s4210_s14 + $0x20] sm:$0xe] }
 0x10a   : > { %3134 = vmatpush3.bf16.msra.mxu1 %v3544_v29  ;;  %v2846_v29 = vcombine.low %v1291_v33, %v1305_v40  ;;  %3229 = vmatprep.subr.bf16.mxu0 %v3545_v5  ;;  %v2865_v24 = vrot.slane %v2857_v36, 9  ;;  %v2767_v25 = vcombine.low %v521_v51, %v535_v22  ;;  %v1332_v33 = vrot.slane %v1330_v6, 5  ;;  %v3553_v40 = vld [vmem:[#allocation5 + $0x80] sm:$0xff]   ;;  %v3556_v47 = vld [vmem:[#allocation5 + $0x88] sm:$0xff]   ;;  %v3560_v10 = vld [vmem:[#allocation5 + $0x98] sm:$0xff]  }
 0x10b   : > { %3135 = vmatprep.subr.bf16.mxu1 %v3546_v46  ;;  %v1313_v9 = vor.u32 %v1312_v50, %v1309_v44  ;;  %v1328_v13 = vrot.slane %v1327_v30, 4  ;;  %v2867_v41 = vrot.slane %v2859_v37, 9  ;;  %v848_v44 = vrot.slane %v4243_v14, 5  ;;  %v2860_v50 = vld [vmem:[%s4210_s14 + $0x28] sm:$0xe] }
 0x10c   : > { %3217 = vmatprep.mubr.bf16.mxu0 %v2846_v29  ;;  %v1519_v63 = vsel %vm4390_vm5, %v2865_v24, %v1518_v60  ;;  %3122 = vmatmul.mubr.bf16.gmra.mrb[4].mxu1 %v2767_v25  ;;  %v2866_v60 = vrot.slane %v2858_v11, 9  ;;  %v2777_v29 = vcombine.low %v4271_v48, %v4276_v53  ;;  %v1530_v48 = vrot.slane %v4340_v26, 5  ;;  %v2863_v36 = vld [vmem:[%s4210_s14 + $0x40] sm:$0xe]  ;;  %v3561_v25 = vld [vmem:[#allocation5 + $0x198] sm:$0xff]  }
 0x10d   : > { %3230 = vmatpush3.bf16.msra.mxu0 %v3545_v5  ;;  %v1314_v27 = vrot.slane %v1313_v9, 4  ;;  %3141 = vmatprep.mubr.bf16.mxu1 %v2776_v23  ;;  %v1333_v34 = vsel %vm4264_vm2, %v1328_v13, %v1332_v33  ;;  %v2868_v2 = vrot.slane %v2860_v50, 9  ;;  %v1538_v51 = vrot.slane %v4370_v17, 5  ;;  %v3559_v17 = vld [vmem:[#allocation5 + $0x190] sm:$0xff]  }
 0x10e   : > { %3136 = vmatpush3.bf16.msra.mxu1 %v3546_v46  ;;  %v2864_v46 = vrot.slane %v2856_v8, 9  ;;  %3231 = vmatprep.subr.bf16.mxu0 %v3547_v38  ;;  %v2869_v14 = vrot.slane %v2861_v55, 9  ;;  %v1542_v26 = vrot.slane %v4376_v31, 5  ;;  %v852_v6 = vrot.slane %v4246_v15, 5  ;;  %v3573_v37 = vld [vmem:[%s4210_s14 + $0x10] ss:$8 sps:$4 sm:$0xff]  }
 0x10f   : > { %3137 = vmatprep.subr.bf16.mxu1 %v3548_v39  ;;  %v1319_v12 = vsel %vm4264_vm2, %v1314_v27, %v1318_v54  ;;  %v1534_v54 = vrot.slane %v4344_v28, 5  ;;  %v1531_v8 = vsel %vm4390_vm5, %v2868_v2, %v1530_v48  ;;  %v2779_v28 = vcombine.low %v4349_v45, %v4354_v52  ;;  %v3562_v27 = vld [vmem:[#allocation5 + $0xa0] sm:$0xff]   ;;  %v3576_v2 = vld [vmem:[#allocation5 + $0xc8] sm:$0xff]  }
 0x110   : > { %v1515_v5 = vsel %vm4390_vm5, %v2864_v46, %v1514_v57  ;;  %v2847_v42 = vcombine.low %v1319_v12, %v1333_v34  ;;  %v2870_v9 = vrot.slane %v2862_v4, 9  ;;  %v2871_v31 = vrot.slane %v2863_v36, 9  ;;  %v819_v46 = vld [vmem:[%s4210_s14] sm:$0xe]  ;;  %v825_v48 = vld [vmem:[%s4210_s14 + $0x30] sm:$0xe] }
 0x111   : > { %3232 = vmatpush3.bf16.msra.mxu0 %v3547_v38  ;;  %v2872_v57 = vcombine.low %v1515_v5, %v1519_v63  ;;  %v1527_v38 = vsel %vm4390_vm5, %v2867_v41, %v1526_v32  ;;  %v1535_v16 = vsel %vm4390_vm5, %v2869_v14, %v1534_v54  ;;  %v2788_v52 = vrot.slane %v819_v46, 9  ;;  %v821_v63 = vld [vmem:[%s4210_s14 + $0x10] sm:$0xe] }
 0x112   : > { %3138 = vmatpush3.bf16.msra.mxu1 %v3548_v39  ;;  %v1522_v39 = vrot.slane %v4295_v7, 5  ;;  %3233 = vmatprep.subr.bf16.mxu0 %v3549_v21  ;;  %v2778_v7 = vcombine.low %v4320_v0, %v4323_v1  ;;  %v3557_v0 = vld [vmem:[#allocation5 + $0x188] sm:$0xff]   ;;  %v3558_v1 = vld [vmem:[#allocation5 + $0x90] sm:$0xff]   ;;  %v2874_v15 = vcombine.low %v1531_v8, %v1535_v16  ;;  %v1543_v45 = vsel %vm4390_vm5, %v2871_v31, %v1542_v26  ;;  %v3563_v34 = vld [vmem:[#allocation5 + $0x1a0] sm:$0xff]  }
 0x113   : > { %3139 = vmatprep.subr.bf16.mxu1 %v3550_v18  ;;  %3218 = vmatmul.mubr.bf16.gmra.mrb[4].mxu0 %v2847_v42  ;;  %v856_v23 = vrot.slane %v4281_v58, 5  ;;  %v860_v24 = vrot.slane %v4284_v59, 5  ;;  %v849_v33 = vsel %vm4390_vm5, %v2788_v52, %v848_v44  ;;  %v822_v58 = vld [vmem:[%s4210_s14 + $0x18] sm:$0xe]  ;;  %v2790_v12 = vrot.slane %v821_v63, 9  ;;  %v3572_v44 = vld [vmem:[#allocation5 + $0xc0] sm:$0xff]  }
 0x114   : > { %3237 = vmatprep.mubr.bf16.mxu0 %v2872_v57  ;;  %v1523_v20 = vsel %vm4390_vm5, %v2866_v60, %v1522_v39  ;;  %v2791_v13 = vrot.slane %v822_v58, 9  ;;  %v3564_v39 = vld [vmem:[#allocation5 + $0xa8] sm:$0xff]   ;;  %v3567_v57 = vld [vmem:[#allocation5 + $0xb0] sm:$0xff]   ;;  %v864_v41 = vrot.slane %v4326_v61, 5  ;;  %v3570_v42 = vld [vmem:[#allocation5 + $0xb8] sm:$0xff]  }
 0x115   : > { %3234 = vmatpush3.bf16.msra.mxu0 %v3549_v21  ;;  %v2873_v53 = vcombine.low %v1523_v20, %v1527_v38  ;;  %v820_v21 = vld [vmem:[%s4210_s14 + $0x8] sm:$0xe]  ;;  %v857_v59 = vsel %vm4390_vm5, %v2790_v12, %v856_v23  ;;  %v3568_v20 = vld [vmem:[#allocation5 + $0x1b0] sm:$0xff]   ;;  %v3574_v54 = vld [vmem:[#allocation5 + $0x1c0] sm:$0xff]  }
 0x116   : > { %3140 = vmatpush3.bf16.msra.mxu1 %v3550_v18  ;;  %3235 = vmatprep.subr.bf16.mxu0 %v3551_v43  ;;  %v1539_v18 = vsel %vm4390_vm5, %v2870_v9, %v1538_v51  ;;  %v2789_v22 = vrot.slane %v820_v21, 9  ;;  %v3565_v60 = vld [vmem:[#allocation5 + $0x1a8] sm:$0xff]   ;;  %v2904_v14 = vld [vmem:[%s4210_s14 + $0x10] sm:$0xf]  ;;  %v2908_v58 = vld [vmem:[%s4210_s14 + $0x20] sm:$0xf] }
 0x117   : > { %3149 = vmatprep.subr.bf16.mxu1 %v3553_v40  ;;  %v2875_v30 = vcombine.low %v1539_v18, %v1543_v45  ;;  %v3575_v51 = vld [vmem:[%s4210_s14 + $0x20] ss:$8 sps:$4 sm:$0xff]   ;;  %v2906_v8 = vld [vmem:[%s4210_s14 + $0x18] sm:$0xf]  ;;  %v1889_v36 = vshrl.u32 %v2904_v14, 16  ;;  %v1892_v9 = vshll.u32 %v2904_v14, 16 }
 0x118   : > { %v853_v11 = vsel %vm4390_vm5, %v2789_v22, %v852_v6  ;;  %v3578_v4 = vld [vmem:[#allocation5 + $0xd0] sm:$0xff]   ;;  %v1906_v31 = vshll.u32 %v2906_v8, 16  ;;  %v3577_v18 = vld [vmem:[#allocation5 + $0x1c8] sm:$0xff]  }
 0x119   : > { %3142 = vmatmul.mubr.bf16.vlgmr.msra.gmra.mrb[0].mxu1 %v2777_v29  ;;  %3236 = vmatpush3.bf16.msra.mxu0 %v3551_v43  ;;  %v2796_v5 = vcombine.low %v849_v33, %v853_v11  ;;  %v823_v43 = vld [vmem:[%s4210_s14 + $0x20] sm:$0xe]  ;;  %v824_v29 = vld [vmem:[%s4210_s14 + $0x28] sm:$0xe]  ;;  %v4476_v6 = vld [vmem:[%s4210_s14 + $0x14] sm:$0x1] }
 0x11a   : > { %3150 = vmatpush3.bf16.msra.mxu1 %v3553_v40  ;;  %3145 = vmatprep.mubr.bf16.mxu1 %v2778_v7  ;;  %v861_v40 = vsel %vm4390_vm5, %v2791_v13, %v860_v24  ;;  %v868_v7 = vrot.slane %v4329_v3, 5  ;;  %v2792_v38 = vrot.slane %v823_v43, 9  ;;  %v3587_v16 = vld [vmem:[%s4210_s14 + $0x30] ss:$8 sps:$4 sm:$0xff]   ;;  %v1891_v46 = vrot.slane %v1889_v36, 4 }
 0x11b   : > { %3151 = vmatprep.subr.bf16.mxu1 %v3556_v47  ;;  %3245 = vmatprep.subr.bf16.mxu0 %v3554_v49  ;;  %v2797_v32 = vcombine.low %v857_v59, %v861_v40  ;;  %v1894_v21 = vrot.slane %v1892_v9, 5  ;;  %v1908_v22 = vrot.slane %v1906_v31, 5  ;;  %v3592_v23 = vld [vmem:[%s4210_s14 + $0x8] ss:$8 sps:$4 sm:$0xff]  }
 0x11c   : > { %3238 = vmatmul.mubr.bf16.vlgmr.msra.gmra.mrb[0].mxu0 %v2873_v53  ;;  %v826_v53 = vld [vmem:[%s4210_s14 + $0x38] sm:$0xe]  ;;  %v865_v61 = vsel %vm4390_vm5, %v2792_v38, %v864_v41  ;;  %v3579_v11 = vld [vmem:[#allocation5 + $0x1d0] sm:$0xff]   ;;  %v2910_v59 = vld [vmem:[%s4210_s14 + $0x28] sm:$0xf] }
 0x11d   : > { %3246 = vmatpush3.bf16.msra.mxu0 %v3554_v49  ;;  %3241 = vmatprep.mubr.bf16.mxu0 %v2874_v15  ;;  %v872_v49 = vrot.slane %v4359_v56, 5  ;;  %v2794_v56 = vrot.slane %v825_v48, 9  ;;  %v2795_v50 = vrot.slane %v826_v53, 9  ;;  %v1895_v24 = vor.u32 %v1894_v21, %v1891_v46  ;;  %v3589_v12 = vld [vmem:[%s4210_s14 + $0x40] ss:$8 sps:$4 sm:$0xff]  }
 0x11e   : > { %3152 = vmatpush3.bf16.msra.mxu1 %v3556_v47  ;;  %3247 = vmatprep.subr.bf16.mxu0 %v3557_v0  ;;  %v2793_v47 = vrot.slane %v824_v29, 9  ;;  %v3582_v40 = vld [vmem:[#allocation5 + $0xe0] sm:$0xff]   ;;  %v1931_v41 = vshrl.u32 %v2910_v59, 16 }
 0x11f   : > { %3153 = vmatprep.subr.bf16.mxu1 %v3558_v1  ;;  %v3583_v43 = vld [vmem:[#allocation5 + $0x1e0] sm:$0xff]  }
 0x120   : > { %v869_v3 = vsel %vm4390_vm5, %v2793_v47, %v868_v7  ;;  %v4494_v29 = vld [vmem:[%s4210_s14 + $0x24] sm:$0x1]  ;;  %v4497_v7 = vld [vmem:[%s4210_s14 + $0x2c] sm:$0x1]  ;;  %v1933_v47 = vrot.slane %v1931_v41, 4 }
 0x121   : > { %3146 = vmatmul.mubr.bf16.gmra.mrb[4].mxu1 %v2779_v28  ;;  %3248 = vmatpush3.bf16.msra.mxu0 %v3557_v0  ;;  %v3571_v0 = vld [vmem:[#allocation5 + $0x1b8] sm:$0xff]   ;;  %v2798_v55 = vcombine.low %v865_v61, %v869_v3  ;;  %v1926_v48 = vshll.u32 %v4494_v29, 16  ;;  %v1940_v53 = vshll.u32 %v4497_v7, 16  ;;  %v3585_v61 = vld [vmem:[#allocation5 + $0x1e8] sm:$0xff]  }
 0x122   : > { %3154 = vmatpush3.bf16.msra.mxu1 %v3558_v1  ;;  %3249 = vmatprep.subr.bf16.mxu0 %v3559_v17  ;;  %v876_v1 = vrot.slane %v4362_v62, 5  ;;  %v873_v62 = vsel %vm4390_vm5, %v2794_v56, %v872_v49  ;;  %v4480_v28 = vld [vmem:[%s4210_s14 + $0x1c] sm:$0x1]  ;;  %v2912_v56 = vld [vmem:[%s4210_s14 + $0x30] sm:$0xf] }
 0x123   : > { %3155 = vmatprep.subr.bf16.mxu1 %v3560_v10  ;;  %3165 = vmatprep.mubr.bf16.mxu1 %v2796_v5  ;;  %v1912_v15 = vshll.u32 %v4480_v28, 16  ;;  %v1896_v5 = vrot.slane %v1895_v24, 4  ;;  %v1948_v14 = vshll.u32 %v2912_v56, 16 }
 0x124   : > { %3242 = vmatmul.mubr.bf16.gmra.mrb[4].mxu0 %v2875_v30  ;;  %v877_v26 = vsel %vm4390_vm5, %v2795_v50, %v876_v1  ;;  %v4503_v50 = vld [vmem:[%s4210_s14 + $0x34] sm:$0x1] }
 0x125   : > { %3250 = vmatpush3.bf16.msra.mxu0 %v3559_v17  ;;  %3261 = vmatprep.mubr.bf16.mxu0 %v3573_v37  ;;  %v1898_v17 = vshll.u32 %v4476_v6, 16  ;;  %v2799_v52 = vcombine.low %v873_v62, %v877_v26  ;;  %v1914_v33 = vrot.slane %v1912_v15, 5  ;;  %v3581_v37 = vld [vmem:[#allocation5 + $0x1d8] sm:$0xff]   ;;  %v1928_v26 = vrot.slane %v1926_v48, 5 }
 0x126   : > { %3156 = vmatpush3.bf16.msra.mxu1 %v3560_v10  ;;  %3251 = vmatprep.subr.bf16.mxu0 %v3561_v25  ;;  %v1903_v10 = vshrl.u32 %v2906_v8, 16  ;;  %v1942_v8 = vrot.slane %v1940_v53, 5  ;;  %v1950_v31 = vrot.slane %v1948_v14, 5  ;;  %v2932_v53 = vld [vmem:[%s4210_s14 + $0x10] sm:$0xe] }
 0x127   : > { %3157 = vmatprep.subr.bf16.mxu1 %v3562_v27  ;;  %v2940_v14 = vrot.slane %v2932_v53, 9 }
 0x128   : > { %v1905_v45 = vrot.slane %v1903_v10, 4 }
 0x129   : > { %3252 = vmatpush3.bf16.msra.mxu0 %v3561_v25  ;;  %v1900_v25 = vrot.slane %v1898_v17, 5  ;;  %v2916_v17 = vld [vmem:[%s4210_s14 + $0x40] sm:$0xf] }
 0x12a   : > { %3158 = vmatpush3.bf16.msra.mxu1 %v3562_v27  ;;  %3253 = vmatprep.subr.bf16.mxu0 %v3563_v34  ;;  %v3580_v27 = vld [vmem:[#allocation5 + $0xd8] sm:$0xff]   ;;  %v1909_v30 = vor.u32 %v1908_v22, %v1905_v45  ;;  %v1973_v45 = vshrl.u32 %v2916_v17, 16 }
 0x12b   : > { %3159 = vmatprep.subr.bf16.mxu1 %v3564_v39  ;;  %v1901_v13 = vsel %vm4264_vm2, %v1896_v5, %v1900_v25  ;;  %v3591_v22 = vld [vmem:[#allocation5 + $0x1f8] sm:$0xff]   ;;  %v4514_v25 = vld [vmem:[%s4210_s14 + $0x44] sm:$0x1] }
 0x12c   : > { %v1910_v63 = vrot.slane %v1909_v30, 4 }
 0x12d   : > { %3254 = vmatpush3.bf16.msra.mxu0 %v3563_v34  ;;  %v1917_v34 = vshrl.u32 %v2908_v58, 16 }
 0x12e   : > { %3160 = vmatpush3.bf16.msra.mxu1 %v3564_v39  ;;  %3255 = vmatprep.subr.bf16.mxu0 %v3565_v60  ;;  %v1915_v39 = vsel %vm4264_vm2, %v1910_v63, %v1914_v33  ;;  %v3593_v33 = vld [vmem:[%s4210_s14 + $0x18] ss:$8 sps:$4 sm:$0xff]  }
 0x12f   : > { %3161 = vmatprep.subr.bf16.mxu1 %v3567_v57 }
 0x131   : > { %3256 = vmatpush3.bf16.msra.mxu0 %v3565_v60  ;;  %v3584_v60 = vld [vmem:[#allocation5 + $0xe8] sm:$0xff]  }
 0x132   : > { %3162 = vmatpush3.bf16.msra.mxu1 %v3567_v57  ;;  %3257 = vmatprep.subr.bf16.mxu0 %v3568_v20  ;;  %v1920_v57 = vshll.u32 %v2908_v58, 16  ;;  %v1975_v58 = vrot.slane %v1973_v45, 4  ;;  %v3606_v45 = vld [vmem:[#allocation5 + $0x228] sm:$0xff]  }
 0x133   : > { %3163 = vmatprep.subr.bf16.mxu1 %v3570_v42 }
 0x134   : > { %v1922_v38 = vrot.slane %v1920_v57, 5  ;;  %v3598_v57 = vld [vmem:[%s4210_s14 + $0x28] ss:$8 sps:$4 sm:$0xff]  }
 0x135   : > { %3258 = vmatpush3.bf16.msra.mxu0 %v3568_v20  ;;  %v1919_v20 = vrot.slane %v1917_v34, 4 }
 0x136   : > { %3164 = vmatpush3.bf16.msra.mxu1 %v3570_v42  ;;  %3259 = vmatprep.subr.bf16.mxu0 %v3571_v0  ;;  %v1934_v42 = vshll.u32 %v2910_v59, 16 }
 0x137   : > { %3173 = vmatprep.subr.bf16.mxu1 %v3572_v44  ;;  %v1923_v3 = vor.u32 %v1922_v38, %v1919_v20  ;;  %v3594_v38 = vld [vmem:[#allocation5 + $0x200] sm:$0xff]  }
 0x138   : > { %v1936_v49 = vrot.slane %v1934_v42, 5  ;;  %v1982_v42 = vshll.u32 %v4514_v25, 16 }
 0x139   : > { %3166 = vmatmul.mubr.bf16.vlgmr.msra.gmra.mrb[0].mxu1 %v2797_v32  ;;  %3260 = vmatpush3.bf16.msra.mxu0 %v3571_v0  ;;  %v2920_v32 = vcombine.low %v1901_v13, %v1915_v39  ;;  %v3590_v0 = vld [vmem:[#allocation5 + $0xf8] sm:$0xff]   ;;  %v1924_v10 = vrot.slane %v1923_v3, 4 }
 0x13a   : > { %3174 = vmatpush3.bf16.msra.mxu1 %v3572_v44  ;;  %3169 = vmatprep.mubr.bf16.mxu1 %v2798_v55  ;;  %v3586_v44 = vld [vmem:[#allocation5 + $0xf0] sm:$0xff]   ;;  %v1937_v1 = vor.u32 %v1936_v49, %v1933_v47 }
 0x13b   : > { %3175 = vmatprep.subr.bf16.mxu1 %v3576_v2  ;;  %3269 = vmatprep.subr.bf16.mxu0 %v3574_v54  ;;  %v3588_v55 = vld [vmem:[#allocation5 + $0x1f0] sm:$0xff]  }
 0x13c   : > { %3262 = vmatmul.mubr.bf16.vlgmr.msra.gmra.mrb[0].mxu0 %v3575_v51  ;;  %v1945_v51 = vshrl.u32 %v2912_v56, 16  ;;  %v1938_v46 = vrot.slane %v1937_v1, 4  ;;  %v3601_v47 = vld [vmem:[#allocation10 + $0x10] sm:$0xff]  }
 0x13d   : > { %3270 = vmatpush3.bf16.msra.mxu0 %v3574_v54  ;;  %3265 = vmatprep.mubr.bf16.mxu0 %v3587_v16  ;;  %v2914_v54 = vld [vmem:[%s4210_s14 + $0x38] sm:$0xf] }
 0x13e   : > { %3176 = vmatpush3.bf16.msra.mxu1 %v3576_v2  ;;  %3271 = vmatprep.subr.bf16.mxu0 %v3577_v18  ;;  %v4507_v2 = vld [vmem:[%s4210_s14 + $0x3c] sm:$0x1]  ;;  %v1959_v62 = vshrl.u32 %v2914_v54, 16  ;;  %v1962_v36 = vshll.u32 %v2914_v54, 16  ;;  %v1947_v16 = vrot.slane %v1945_v51, 4  ;;  %v1943_v34 = vsel %vm4264_vm2, %v1938_v46, %v1942_v8  ;;  %v3612_v8 = vld [vmem:[%s4222_s15] sm:$0xff]  }
 0x13f   : > { %3177 = vmatprep.subr.bf16.mxu1 %v3578_v4  ;;  %v1968_v9 = vshll.u32 %v4507_v2, 16  ;;  %v3596_v54 = vld [vmem:[#allocation5 + $0x208] sm:$0xff]   ;;  %v3604_v46 = vld [vmem:[#allocation5 + $0x220] sm:$0xff]  }
 0x140   : > { %v1961_v15 = vrot.slane %v1959_v62, 4  ;;  %v1964_v21 = vrot.slane %v1962_v36, 5  ;;  %v3603_v36 = vld [vmem:[#allocation10 + $0x18] sm:$0xff]  }
 0x141   : > { %3170 = vmatmul.mubr.bf16.gmra.mrb[4].mxu1 %v2799_v52  ;;  %3272 = vmatpush3.bf16.msra.mxu0 %v3577_v18  ;;  %v2918_v18 = vld [vmem:[%s4210_s14 + $0x48] sm:$0xf]  ;;  %v1976_v52 = vshll.u32 %v2916_v17, 16  ;;  %v1970_v63 = vrot.slane %v1968_v9, 5 }
 0x142   : > { %3178 = vmatpush3.bf16.msra.mxu1 %v3578_v4  ;;  %3189 = vmatprep.mubr.bf16.mxu1 %v3592_v23  ;;  %v1954_v4 = vshll.u32 %v4503_v50, 16  ;;  %v1951_v23 = vor.u32 %v1950_v31, %v1947_v16  ;;  %v1990_v30 = vshll.u32 %v2918_v18, 16  ;;  %v1965_v5 = vor.u32 %v1964_v21, %v1961_v15  ;;  %v3605_v31 = vld [vmem:[#allocation10 + $0x20] sm:$0xff]   ;;  %v3602_v15 = vld [vmem:[#allocation5 + $0x218] sm:$0xff]  }
 0x143   : > { %3179 = vmatprep.subr.bf16.mxu1 %v3580_v27  ;;  %3273 = vmatprep.subr.bf16.mxu0 %v3579_v11  ;;  %v3609_v21 = vld [vmem:[#allocation10 + $0x30] sm:$0xff]  }
 0x144   : > { %3266 = vmatmul.mubr.bf16.gmra.mrb[4].mxu0 %v3589_v12  ;;  %v1956_v24 = vrot.slane %v1954_v4, 5  ;;  %v4518_v12 = vld [vmem:[%s4210_s14 + $0x4c] sm:$0x1]  ;;  %v1992_v59 = vrot.slane %v1990_v30, 5  ;;  %v1966_v39 = vrot.slane %v1965_v5, 4  ;;  %v2180_v4 = vrot.slane %v4476_v6, 5 }
 0x145   : > { %3274 = vmatpush3.bf16.msra.mxu0 %v3579_v11  ;;  %3285 = vmatprep.mubr.bf16.mxu0 %v2920_v32  ;;  %v3595_v11 = vld [vmem:[#allocation10] sm:$0xff]   ;;  %v1929_v32 = vsel %vm4264_vm2, %v1924_v10, %v1928_v26  ;;  %v1996_v20 = vshll.u32 %v4518_v12, 16  ;;  %v2184_v26 = vrot.slane %v4480_v28, 5  ;;  %v3600_v10 = vld [vmem:[#allocation5 + $0x210] sm:$0xff]  }
 0x146   : > { %3180 = vmatpush3.bf16.msra.mxu1 %v3580_v27  ;;  %3275 = vmatprep.subr.bf16.mxu0 %v3581_v37  ;;  %v1987_v27 = vshrl.u32 %v2918_v18, 16  ;;  %v2921_v48 = vcombine.low %v1929_v32, %v1943_v34  ;;  %v2181_v6 = vsel %vm4390_vm5, %v2940_v14, %v2180_v4  ;;  %v3607_v18 = vld [vmem:[#allocation10 + $0x28] sm:$0xff]   ;;  %v3614_v32 = vld [vmem:[%s4222_s15 + $0x10] sm:$0xff]  }
 0x147   : > { %3181 = vmatprep.subr.bf16.mxu1 %v3582_v40  ;;  %v1998_v56 = vrot.slane %v1996_v20, 5  ;;  %v2937_v30 = vld [vmem:[%s4210_s14 + $0x38] sm:$0xe] }
 0x148   : > { %v1989_v13 = vrot.slane %v1987_v27, 4  ;;  %v2936_v27 = vld [vmem:[%s4210_s14 + $0x30] sm:$0xe] }
 0x149   : > { %3276 = vmatpush3.bf16.msra.mxu0 %v3581_v37  ;;  %v1978_v37 = vrot.slane %v1976_v52, 5  ;;  %v3611_v52 = vld [vmem:[#allocation10 + $0x38] sm:$0xff]  }
 0x14a   : > { %3182 = vmatpush3.bf16.msra.mxu1 %v3582_v40  ;;  %3277 = vmatprep.subr.bf16.mxu0 %v3583_v43  ;;  %v1952_v40 = vrot.slane %v1951_v23, 4  ;;  %v2934_v23 = vld [vmem:[%s4210_s14 + $0x20] sm:$0xe] }
 0x14b   : > { %3183 = vmatprep.subr.bf16.mxu1 %v3584_v60  ;;  %v1979_v41 = vor.u32 %v1978_v37, %v1975_v58  ;;  %v3610_v58 = vld [vmem:[#allocation5 + $0x238] sm:$0xff]   ;;  %v2944_v37 = vrot.slane %v2936_v27, 9 }
 0x14c   : > { %v1957_v49 = vsel %vm4264_vm2, %v1952_v40, %v1956_v24  ;;  %v2935_v24 = vld [vmem:[%s4210_s14 + $0x28] sm:$0xe]  ;;  %v2200_v40 = vrot.slane %v4507_v2, 5 }
 0x14d   : > { %3278 = vmatpush3.bf16.msra.mxu0 %v3583_v43  ;;  %v1993_v43 = vor.u32 %v1992_v59, %v1989_v13  ;;  %v1980_v3 = vrot.slane %v1979_v41, 4  ;;  %v2943_v5 = vrot.slane %v2935_v24, 9  ;;  %v2196_v13 = vrot.slane %v4503_v50, 5  ;;  %v2939_v2 = vld [vmem:[%s4210_s14 + $0x48] sm:$0xe] }
 0x14e   : > { %3184 = vmatpush3.bf16.msra.mxu1 %v3584_v60  ;;  %3279 = vmatprep.subr.bf16.mxu0 %v3585_v61  ;;  %v3597_v60 = vld [vmem:[#allocation10 + $0x8] sm:$0xff]   ;;  %v2945_v59 = vrot.slane %v2937_v30, 9  ;;  %v2204_v41 = vrot.slane %v4514_v25, 5  ;;  %v2947_v20 = vrot.slane %v2939_v2, 9 }
 0x14f   : > { %3185 = vmatprep.subr.bf16.mxu1 %v3586_v44  ;;  %v1994_v1 = vrot.slane %v1993_v43, 4  ;;  %v2197_v34 = vsel %vm4390_vm5, %v2944_v37, %v2196_v13 }
 0x150   : > { %v2201_v50 = vsel %vm4390_vm5, %v2945_v59, %v2200_v40 }
 0x151   : > { %3280 = vmatpush3.bf16.msra.mxu0 %v3585_v61  ;;  %v2933_v61 = vld [vmem:[%s4210_s14 + $0x18] sm:$0xe]  ;;  %v1999_v17 = vsel %vm4264_vm2, %v1994_v1, %v1998_v56 }
 0x152   : > { %3186 = vmatpush3.bf16.msra.mxu1 %v3586_v44  ;;  %3281 = vmatprep.subr.bf16.mxu0 %v3588_v55  ;;  %v1971_v44 = vsel %vm4264_vm2, %v1966_v39, %v1970_v63  ;;  %v2941_v62 = vrot.slane %v2933_v61, 9  ;;  %v2192_v63 = vrot.slane %v4497_v7, 5  ;;  %v3613_v39 = vld [vmem:[%s4222_s15 + $0x8] sm:$0xff]  }
 0x153   : > { %3187 = vmatprep.subr.bf16.mxu1 %v3590_v0  ;;  %v2922_v51 = vcombine.low %v1957_v49, %v1971_v44 }
 0x154   : > { %v2185_v28 = vsel %vm4390_vm5, %v2941_v62, %v2184_v26  ;;  %v2193_v7 = vsel %vm4390_vm5, %v2943_v5, %v2192_v63 }
 0x155   : > { %3282 = vmatpush3.bf16.msra.mxu0 %v3588_v55  ;;  %v3599_v55 = vld [vmem:[%s4210_s14 + $0x38] ss:$8 sps:$4 sm:$0xff]   ;;  %v2948_v35 = vcombine.low %v2181_v6, %v2185_v28 }
 0x156   : > { %3188 = vmatpush3.bf16.msra.mxu1 %v3590_v0  ;;  %3283 = vmatprep.subr.bf16.mxu0 %v3591_v22  ;;  %v1984_v0 = vrot.slane %v1982_v42, 5  ;;  %v2950_v42 = vcombine.low %v2197_v34, %v2201_v50 }
 0x157   : > { %3317 = vmatprep.subr.bf16.mxu1 %v3595_v11 }
 0x158   : > { %v1985_v9 = vsel %vm4264_vm2, %v1980_v3, %v1984_v0 }
 0x159   : > { %3190 = vmatmul.mubr.bf16.vlgmr.msra.gmra.mrb[0].mxu1 %v3593_v33  ;;  %3284 = vmatpush3.bf16.msra.mxu0 %v3591_v22  ;;  %v2923_v16 = vcombine.low %v1985_v9, %v1999_v17  ;;  %v3608_v22 = vld [vmem:[#allocation5 + $0x230] sm:$0xff]   ;;  %v2942_v33 = vrot.slane %v2934_v23, 9 }
 0x15a   : > { %3318 = vmatpush3.bf16.msra.mxu1 %v3595_v11  ;;  %3193 = vmatprep.mubr.bf16.mxu1 %v3598_v57  ;;  %v2188_v11 = vrot.slane %v4494_v29, 5  ;;  %v2938_v57 = vld [vmem:[%s4210_s14 + $0x40] sm:$0xe] }
 0x15b   : > { %3319 = vmatprep.subr.bf16.mxu1 %v3597_v60  ;;  %3293 = vmatprep.subr.bf16.mxu0 %v3594_v38  ;;  %v2946_v43 = vrot.slane %v2938_v57, 9 }
 0x15c   : > { %3286 = vmatmul.mubr.bf16.vlgmr.msra.gmra.mrb[0].mxu0 %v2921_v48  ;;  %v2189_v29 = vsel %vm4390_vm5, %v2942_v33, %v2188_v11 }
 0x15d   : > { %3294 = vmatpush3.bf16.msra.mxu0 %v3594_v38  ;;  %3289 = vmatprep.mubr.bf16.mxu0 %v2922_v51  ;;  %v2208_v38 = vrot.slane %v4518_v12, 5  ;;  %v2205_v49 = vsel %vm4390_vm5, %v2946_v43, %v2204_v41 }
 0x15e   : > { %3320 = vmatpush3.bf16.msra.mxu1 %v3597_v60  ;;  %3295 = vmatprep.subr.bf16.mxu0 %v3596_v54  ;;  %v2949_v60 = vcombine.low %v2189_v29, %v2193_v7 }
 0x15f   : > { %3321 = vmatprep.subr.bf16.mxu1 %v3601_v47  ;;  %v2209_v44 = vsel %vm4390_vm5, %v2947_v20, %v2208_v38 }
 0x160   : > { %v2951_v48 = vcombine.low %v2205_v49, %v2209_v44 }
 0x161   : > { %3194 = vmatmul.mubr.bf16.gmra.mrb[4].mxu1 %v3599_v55  ;;  %3296 = vmatpush3.bf16.msra.mxu0 %v3596_v54  ;;  %v2961_v54 = vld [vmem:[#allocation11] ss:$0 sm:$0xff] }
 0x162   : > { %3322 = vmatpush3.bf16.msra.mxu1 %v3601_v47  ;;  %3333 = vmatprep.mubr.bf16.mxu1 %v3612_v8  ;;  %v3615_v47 = vld [vmem:[%s4222_s15 + $0x18] sm:$0xff]  }
 0x163   : > { %3323 = vmatprep.subr.bf16.mxu1 %v3603_v36  ;;  %3297 = vmatprep.subr.bf16.mxu0 %v3600_v10 }
 0x164   : > { %3290 = vmatmul.mubr.bf16.gmra.mrb[4].mxu0 %v2923_v16 }
 0x165   : > { %3298 = vmatpush3.bf16.msra.mxu0 %v3600_v10  ;;  %3309 = vmatprep.mubr.bf16.mxu0 %v2948_v35 }
 0x166   : > { %3324 = vmatpush3.bf16.msra.mxu1 %v3603_v36  ;;  %3299 = vmatprep.subr.bf16.mxu0 %v3602_v15  ;;  %v2960_v36 = vld [vmem:[#allocation7] ss:$0 sm:$0xff] }
 0x167   : > { %3325 = vmatprep.subr.bf16.mxu1 %v3605_v31 }
 0x169   : > { %3300 = vmatpush3.bf16.msra.mxu0 %v3602_v15 }
 0x16a   : > { %3326 = vmatpush3.bf16.msra.mxu1 %v3605_v31  ;;  %3301 = vmatprep.subr.bf16.mxu0 %v3604_v46 }
 0x16b   : > { %3327 = vmatprep.subr.bf16.mxu1 %v3607_v18 }
 0x16d   : > { %3302 = vmatpush3.bf16.msra.mxu0 %v3604_v46 }
 0x16e   : > { %3328 = vmatpush3.bf16.msra.mxu1 %v3607_v18  ;;  %3303 = vmatprep.subr.bf16.mxu0 %v3606_v45 }
 0x16f   : > { %3329 = vmatprep.subr.bf16.mxu1 %v3609_v21 }
 0x171   : > { %3304 = vmatpush3.bf16.msra.mxu0 %v3606_v45 }
 0x172   : > { %3330 = vmatpush3.bf16.msra.mxu1 %v3609_v21  ;;  %3305 = vmatprep.subr.bf16.mxu0 %v3608_v22 }
 0x173   : > { %3331 = vmatprep.subr.bf16.mxu1 %v3611_v52 }
 0x175   : > { %3306 = vmatpush3.bf16.msra.mxu0 %v3608_v22 }
 0x176   : > { %3332 = vmatpush3.bf16.msra.mxu1 %v3611_v52  ;;  %3307 = vmatprep.subr.bf16.mxu0 %v3610_v58 }
 0x179   : > { %3334 = vmatmul.mubr.bf16.vlgmr.msra.gmra.mrb[8].mxu1 %v3613_v39  ;;  %3308 = vmatpush3.bf16.msra.mxu0 %v3610_v58 }
 0x17a   : > { %3337 = vmatprep.mubr.bf16.mxu1 %v3614_v32 }
 0x17c   : > { %3310 = vmatmul.mubr.bf16.vlgmr.msra.gmra.mrb[0].mxu0 %v2949_v60 }
 0x17d   : > { %3313 = vmatprep.mubr.bf16.mxu0 %v2950_v42 }
 0x181   : > { %3338 = vmatmul.mubr.bf16.gmra.mrb[12].mxu1 %v3615_v47 }
 0x184   : > { %3314 = vmatmul.mubr.bf16.gmra.mrb[4].mxu0 %v2951_v48 }
 0x22c   : > { %v3191_v53 = vpop.f32.mrb[0].mxu1 }
 0x22d   : > { %v1167_v25 = vpop.f32.mrb[1].mxu1 }
 0x22e   : > { %v3192_v61 = vpop.f32.mrb[2].mxu1 }
 0x22f   : > { %v1170_v3 = vpop.f32.mrb[3].mxu1 }
 0x234   : > { %v3195_v0 = vpop.f32.mrb[4].mxu1 }
 0x235   : > { %v1183_v1 = vpop.f32.mrb[5].mxu1 }
 0x236   : > { %v3196_v12 = vpop.f32.mrb[6].mxu1 }
 0x237   : > { %v1186_v56 = vpop.f32.mrb[7].mxu1 }
 0x24c   : > { %v3335_v55 = vpop.f32.mrb[8].mxu1 }
 0x24d   : > { %v2516_v51 = vpop.f32.mrb[9].mxu1  ;;  %v2525_v14 = vadd.f32 %v3335_v55, %v2961_v54 }
 0x24e   : > { %v3336_v4 = vpop.f32.mrb[10].mxu1  ;;  %v2517_v62 = vadd.f32 %v2961_v54, %v2516_v51 }
 0x24f   : > { %v2519_v19 = vpop.f32.mrb[11].mxu1  ;;  %v2528_v26 = vadd.f32 %v3336_v4, %v2961_v54  ;;  %v3311_v8 = vpop.f32.mrb[0].mxu0  ;;  %v2549_v10 = vmax.f32 %v2525_v14, 0.0 }
 0x250   : > { %v2520_v9 = vadd.f32 %v2961_v54, %v2519_v19  ;;  %v3341_v17 = vadd.f32 %v3311_v8, %v3191_v53  ;;  %v2325_v6 = vpop.f32.mrb[1].mxu0  ;;  %v2547_v16 = vmax.f32 %v2517_v62, 0.0 }
 0x251   : > { %v3342_v28 = vadd.f32 %v2325_v6, %v1167_v25  ;;  %v3312_v31 = vpop.f32.mrb[2].mxu0  ;;  %v2550_v18 = vmax.f32 %v2528_v26, 0.0 }
 0x252   : > { %v2373_v15 = vadd.f32 %v3341_v17, %v2960_v36  ;;  %v3343_v35 = vadd.f32 %v3312_v31, %v3192_v61  ;;  %v2328_v46 = vpop.f32.mrb[3].mxu0  ;;  %v2548_v22 = vmax.f32 %v2520_v9, 0.0 }
 0x253   : > { %v2371_v45 = vadd.f32 %v3342_v28, %v2960_v36  ;;  %v3344_v52 = vadd.f32 %v2328_v46, %v1170_v3 }
 0x254   : > { %v3339_v21 = vpop.f32.mrb[12].mxu1  ;;  %v2557_v24 = vadd.f32 %v2549_v10, %v2373_v15  ;;  %v2374_v27 = vadd.f32 %v3343_v35, %v2960_v36 }
 0x255   : > { %v2532_v23 = vpop.f32.mrb[13].mxu1  ;;  %v2541_v30 = vadd.f32 %v3339_v21, %v2961_v54  ;;  %v2555_v11 = vadd.f32 %v2547_v16, %v2371_v45  ;;  %v2372_v5 = vadd.f32 %v3344_v52, %v2960_v36 }
 0x256   : > { %v3340_v33 = vpop.f32.mrb[14].mxu1  ;;  %v2533_v63 = vadd.f32 %v2961_v54, %v2532_v23  ;;  %2565 = vst [vmem:[%s4573_s29 + $0x10] sm:$0xff] %v2557_v24  ;;  %v2558_v37 = vadd.f32 %v2550_v18, %v2374_v27 }
 0x257   : > { %v2535_v58 = vpop.f32.mrb[15].mxu1  ;;  %v2544_v13 = vadd.f32 %v3340_v33, %v2961_v54  ;;  %2563 = vst [vmem:[%s4573_s29] sm:$0xff] %v2555_v11  ;;  %v2556_v59 = vadd.f32 %v2548_v22, %v2372_v5  ;;  %v3315_v40 = vpop.f32.mrb[4].mxu0  ;;  %v2553_v29 = vmax.f32 %v2541_v30, 0.0 }
 0x258   : > { %v2536_v39 = vadd.f32 %v2961_v54, %v2535_v58  ;;  %2566 = vst [vmem:[%s4573_s29 + $0x18] sm:$0xff] %v2558_v37  ;;  %v3345_v32 = vadd.f32 %v3315_v40, %v3195_v0  ;;  %v2341_v7 = vpop.f32.mrb[5].mxu0  ;;  %v2551_v50 = vmax.f32 %v2533_v63, 0.0 }
 0x259   : > { %2564 = vst [vmem:[%s4573_s29 + $0x8] sm:$0xff] %v2556_v59  ;;  %v3346_v34 = vadd.f32 %v2341_v7, %v1183_v1  ;;  %v3316_v57 = vpop.f32.mrb[6].mxu0  ;;  %v2554_v41 = vmax.f32 %v2544_v13, 0.0 }
 0x25a   : > { %v2377_v2 = vadd.f32 %v3345_v32, %v2960_v36  ;;  %v3347_v60 = vadd.f32 %v3316_v57, %v3196_v12  ;;  %v2344_v42 = vpop.f32.mrb[7].mxu0  ;;  %v2552_v38 = vmax.f32 %v2536_v39, 0.0 }
 0x25b   : > { %v2375_v43 = vadd.f32 %v3346_v34, %v2960_v36  ;;  %v3348_v20 = vadd.f32 %v2344_v42, %v1186_v56 }
 0x25c   : > { %v2561_v47 = vadd.f32 %v2553_v29, %v2377_v2  ;;  %v2378_v49 = vadd.f32 %v3347_v60, %v2960_v36 }
 0x25d   : > { %v2559_v44 = vadd.f32 %v2551_v50, %v2375_v43  ;;  %v2376_v48 = vadd.f32 %v3348_v20, %v2960_v36 }
 0x25e   : > { %2569 = vst [vmem:[%s4573_s29 + $0x30] sm:$0xff] %v2561_v47  ;;  %v2562_v53 = vadd.f32 %v2554_v41, %v2378_v49 }
 0x25f   : > { %2567 = vst [vmem:[%s4573_s29 + $0x20] sm:$0xff] %v2559_v44  ;;  %v2560_v25 = vadd.f32 %v2552_v38, %v2376_v48 }
 0x260   : > { %2570 = vst [vmem:[%s4573_s29 + $0x38] sm:$0xff] %v2562_v53 }
 0x261   : > { %2568 = vst [vmem:[%s4573_s29 + $0x28] sm:$0xff] %v2560_v25 }
 0x262   : > { %3801 = shalt.err (!%p3798_p8)
}
 0x263   : > { %s3802_s18 = scalar_lea.hbm %s4587_s16, 1024  ;;  %s3806_s14 = scalar_lea.hbm %s4645_s6, 2048 }
 0x264   : > { %p3803_p7 = scmp.ne.s32.totalorder %s4587_s16, %s3802_s18  ;;  %p3807_p2 = scmp.lt.u32.totalorder %s4587_s16, %s4645_s6 }
 0x265   : > { %p3808_p13 = scmp.lt.u32.totalorder %s3806_s14, %s3802_s18  ;;  %p3810_p1 = scmp.lt.u32.totalorder %s3802_s18, %s4587_s16 }
 0x266   : > { %p3804_p9 = pnand %p3803_p7, %p4108_p5 }
 0x267   : > { %p3809_p6 = por %p3808_p13, %p3807_p2 }
 0x268   : > { %p3805_p0 = pneg %p3804_p9 }
 0x269   : > { %p3811_p4 = por %p3810_p1, %p3809_p6 }
 0x26b   : > { %p3812_p10 = pnand %p3811_p4, %p3805_p0 }
 0x26d   : > { %3815 = shalt.err (!%p3812_p10)
}
 0x26e   : > { %s3897_s7 = smov 128   ;;  %s3898_s15 = smov 8  }
 0x26f   : > { %3428 = dma.vmem_to_hbm [thread:$0]  (%p4108_p5), %s4581_s8, 1024, %s4587_s16, %s2572_s24, %s3897_s7, %s3897_s7, %s3898_s15  }
 0x270 PF: > { %s4684_s27 = sld [smem:[#allocation20_spill]]  ;;  %s4685_s29 = sld [smem:[#allocation21_spill]] }
 0x271   : > { %p4687_p11 = scmp.ge.s32.totalorder %s3886_s26, 2 }
 0x276   : > { %s2602_s13 = sand.u32 1, %s4684_s27   ;;  %p4686_p3 = scmp.ne.s32.totalorder %s4685_s29, 0 }
 0x277   : > { %s2603_s17 = scalar_lea.sflag [#allocation4], %s2602_s13 }
 0x278   : > { %p3451_p12 = pnand %p4687_p11, %p4686_p3 }
 0x27a   : > { %3861 = dma.done.wait (!%p3451_p12), %s2603_s17, 1024  }
 0x27b   : > { %3863 = vsyncadd (!%p3451_p12), %s2603_s17, 4294966272  ;;  %s27_s26 = sadd.s32 1, %s3886_s26   ;;  %s4688_s21 = smov %s3870_s22 }
 0x27c   : > { %p24_p8 = scmp.ge.s32.totalorder %s27_s26, 4   ;;  %s4689_s22 = smov %s3874_s23 }
 0x27d   : > { %s4690_s23 = smov %s4123_s11  ;;  %s4691_s24 = smov %s3882_s25 }
 0x27e   : > { %s4692_s25 = smov %s4694_s20  ;;  %26 = sbr.rel (!%p24_p8) target bundleno = 15 (0xf), region = 129 }
 0x285   :  { %2608 = vsyncpa [#allocation3], 1 }
 0x286   :  { %2610 = vsyncpa [#allocation3 + $0x1], 1 }
 0x287   :  { %2611 = vsyncpa [#allocation6], 1 }
 0x288   :  { %2612 = vsyncpa [#allocation9], 1 }
 0x289   :  { %2614 = vsyncpa [#allocation9 + $0x1], 1 }
 0x28a   :  { %2615 = vsyncpa [#allocation12], 1 }
 0x28b   :  { %2616 = vsyncpa [#allocation4], 1 }
 0x28c   :  { %2618 = vsyncpa [#allocation4 + $0x1], 1 }

</bundles_post_ra>
